<compile_context>
chip_gen: v7x
topology: tpu7x:2x2x1
jax: 0.10.0
libtpu: 0.0.40
codegen_flags: <defaults>
</compile_context>

<pallas_src>
import jax
import jax.numpy as jnp
from jax.experimental import pallas as pl
from jax.experimental.pallas import tpu as pltpu


# ----------------------------- Pallas kernel -----------------------------

def _lstm_fc_kernel(x2d_ref,                 # (L*Bp, Ep) bf16  time-major, E zero-padded to 128
                    wih0_ref, b0_ref,        # (Ep, 4H) bf16, (1, 4H) f32   (b0 = b_ih0 + b_hh0)
                    wcomb_ref,               # (H, 8H) bf16  = [W_ih1 | W_hh0] shared-LHS fusion
                    whh1_ref, b1_ref,        # (H, 4H) bf16, (1, 4H) f32   (b1 = b_ih1 + b_hh1)
                    wfc_ref, bfc_ref,        # (L*H, Np) bf16, (1, Np) f32
                    out_ref,                 # (Bp, Np) f32
                    xg0_ref,                 # scratch VMEM (L*Bp, 4H) f32
                    hs_ref):                 # scratch VMEM (Bp, L*H) bf16
    Bp = out_ref.shape[0]
    H = whh1_ref.shape[0]
    L = x2d_ref.shape[0] // Bp
    G = 4 * H

    # Hoisted layer-0 input projection (+ bias), off the recurrence critical path.
    # Lives in VMEM scratch so it does not occupy vregs across the unrolled loop.
    xg0_ref[...] = (jnp.dot(x2d_ref[...], wih0_ref[...],
                            preferred_element_type=jnp.float32) + b0_ref[...])

    # Bias broadcast hoisted out of the unrolled loop (JAX does not CSE broadcast_in_dim).
    b1b = jnp.broadcast_to(b1_ref[...], (Bp, G)).astype(jnp.float32)

    def gates(g, c):
        # PyTorch gate order: i, f, g, o — all gate math in f32 (no bf16 VPU/EUP on v5e).
        i_g = jax.nn.sigmoid(g[:, 0 * H:1 * H])
        f_g = jax.nn.sigmoid(g[:, 1 * H:2 * H])
        g_g = jnp.tanh(g[:, 2 * H:3 * H])
        o_g = jax.nn.sigmoid(g[:, 3 * H:4 * H])
        c_new = f_g * c + i_g * g_g
        h_new = o_g * jnp.tanh(c_new)
        return h_new, c_new

    c0 = jnp.zeros((Bp, H), jnp.float32)
    c1 = jnp.zeros((Bp, H), jnp.float32)
    # Carried pre-activations: g0rec = h0[t-1] @ W_hh0 ; g1rec = h1[t-1] @ W_hh1 + b1.
    g0rec = jnp.zeros((Bp, G), jnp.float32)
    g1rec = b1b

    for t in range(L):                       # static unrolled time loop (L known at trace time)
        # Layer 0: precomputed input projection + carried recurrent half (no dot on this edge).
        g0 = xg0_ref[t * Bp:(t + 1) * Bp, :] + g0rec
        h0, c0 = gates(g0, c0)
        h0b = h0.astype(jnp.bfloat16)

        # One shared-LHS dot: h0 @ [W_ih1 | W_hh0] -> layer-1 x-contribution for step t and
        # layer-0 recurrent pre-activation for step t+1 in a single MXU issue.
        if t + 1 < L:
            comb = jnp.dot(h0b, wcomb_ref[...], preferred_element_type=jnp.float32)
            g1x = comb[:, :G]
            g0rec = comb[:, G:]
        else:
            g1x = jnp.dot(h0b, wcomb_ref[:, 0:G], preferred_element_type=jnp.float32)

        g1 = g1x + g1rec
        h1, c1 = gates(g1, c1)
        h1b = h1.astype(jnp.bfloat16)

        # Store h1 directly into the (Bp, L*H) slab; avoids the end-of-loop concat and keeps
        # only one h1 value live at a time.
        hs_ref[:, t * H:(t + 1) * H] = h1b

        # Hoisted layer-1 recurrent half for step t+1 (overlaps step t+1's layer-0 work).
        if t + 1 < L:
            g1rec = jnp.dot(h1b, whh1_ref[...], preferred_element_type=jnp.float32) + b1b

    # Single post-loop FC projection: out.reshape(B, L*H) @ W_fc^T + b_fc (lane-padded to Np).
    out_ref[...] = (jnp.dot(hs_ref[...], wfc_ref[...], preferred_element_type=jnp.float32)
                    + bfc_ref[...])


def lstm_forward_pallas(text_emb, params):
    """text_emb: (B, L, E) float32 embedded tokens. Returns (B, 10) logits."""
    B, L, E = text_emb.shape
    H = params["whh0"].shape[0]
    n_out = params["bfc"].shape[-1]

    Bp = ((B + 7) // 8) * 8                  # pad batch to the f32 sublane minimum
    Ep = ((E + 127) // 128) * 128            # pad E to a full lane group (clean bf16 tiles)
    n_out_p = ((n_out + 127) // 128) * 128   # pad FC output to a full lane group

    # Zero padding contributes nothing numerically; padded rows/cols are sliced away below.
    x = jnp.pad(text_emb, ((0, Bp - B), (0, 0), (0, Ep - E)))
    # Time-major (L, Bp, Ep) -> (L*Bp, Ep): the hoisted layer-0 projection is sliced by
    # contiguous Bp-row blocks per timestep. bf16 MXU operand, f32 accumulation in-kernel.
    x2d = jnp.transpose(x, (1, 0, 2)).reshape(L * Bp, Ep).astype(jnp.bfloat16)

    bf16 = lambda a: a.astype(jnp.bfloat16)
    wih0_p = jnp.pad(params["wih0"], ((0, Ep - E), (0, 0)))
    # Shared-LHS fusion: both per-step dots with LHS h0[t] use the column-concat [W_ih1 | W_hh0].
    wcomb = jnp.concatenate([params["wih1"], params["whh0"]], axis=1)   # (H, 8H)
    wfc_p = jnp.pad(params["wfc"], ((0, 0), (0, n_out_p - n_out)))
    bfc_p = jnp.pad(params["bfc"], ((0, 0), (0, n_out_p - n_out)))

    args = (
        x2d,
        bf16(wih0_p), params["b0"],
        bf16(wcomb),
        bf16(params["whh1"]), params["b1"],
        bf16(wfc_p), bfc_p,
    )
    vmem_spec = pl.BlockSpec(memory_space=pltpu.MemorySpace.VMEM)
    # TODO(synk): on v7x, for larger batches add a leading grid axis over batch halves with
    # dimension_semantics=("parallel",) to use the second TensorCore; at Bp=8 it is moot.
    out = pl.pallas_call(
        _lstm_fc_kernel,
        out_shape=jax.ShapeDtypeStruct((Bp, n_out_p), jnp.float32),
        in_specs=[vmem_spec] * len(args),
        out_specs=vmem_spec,
        scratch_shapes=[pltpu.VMEM((L * Bp, 4 * H), jnp.float32),   # xg0 projection
                        pltpu.VMEM((Bp, L * H), jnp.bfloat16)],     # per-step h1 slab
        # Whole problem (<1.5 MiB) is VMEM-resident on every generation; no grid/tiling needed.
        compiler_params=pltpu.CompilerParams(vmem_limit_bytes=32 * 1024 * 1024),
    )(*args)
    return out[:B, :n_out]


# --------------------------- parameter setup ---------------------------

def init_params(key, vocab_size, max_len, embedding_size=100, hidden=128, n_out=10):
    ks = jax.random.split(key, 12)
    u = lambda k, shape, s=0.1: jax.random.uniform(k, shape, jnp.float32, -s, s)

    # PyTorch-shaped parameters
    embedding = u(ks[0], (vocab_size, embedding_size))
    w_ih_l0 = u(ks[1], (4 * hidden, embedding_size))
    w_hh_l0 = u(ks[2], (4 * hidden, hidden))
    b_ih_l0 = u(ks[3], (4 * hidden,))
    b_hh_l0 = u(ks[4], (4 * hidden,))
    w_ih_l1 = u(ks[5], (4 * hidden, hidden))
    w_hh_l1 = u(ks[6], (4 * hidden, hidden))
    b_ih_l1 = u(ks[7], (4 * hidden,))
    b_hh_l1 = u(ks[8], (4 * hidden,))
    w_fc = u(ks[9], (n_out, hidden * max_len))
    b_fc = u(ks[10], (n_out,))

    # Kernel layout: transposed (in_dim, out_dim), biases combined (b_ih + b_hh) and kept 2D.
    params = dict(
        embedding=embedding,
        wih0=w_ih_l0.T, whh0=w_hh_l0.T, b0=(b_ih_l0 + b_hh_l0)[None, :],
        wih1=w_ih_l1.T, whh1=w_hh_l1.T, b1=(b_ih_l1 + b_hh_l1)[None, :],
        wfc=w_fc.T, bfc=b_fc[None, :],
    )
    return params


# ------------------------ pure-JAX reference check ------------------------

def lstm_forward_ref(text_emb, params, mm_dtype=jnp.float32):
    """Reference. mm_dtype=float32 -> exact PyTorch semantics; bfloat16 -> numerics-matched
    to the kernel's bf16-operand / f32-accumulate matmuls."""
    B, L, E = text_emb.shape
    H = params["whh0"].shape[0]

    def mm(a, w):
        return jnp.dot(a.astype(mm_dtype), w.astype(mm_dtype),
                       preferred_element_type=jnp.float32)

    def cell(x, h, c, wih, whh, b):
        g = mm(x, wih) + mm(h, whh) + b
        i_g = jax.nn.sigmoid(g[:, 0 * H:1 * H])
        f_g = jax.nn.sigmoid(g[:, 1 * H:2 * H])
        g_g = jnp.tanh(g[:, 2 * H:3 * H])
        o_g = jax.nn.sigmoid(g[:, 3 * H:4 * H])
        c_new = f_g * c + i_g * g_g
        return o_g * jnp.tanh(c_new), c_new

    h0 = c0 = h1 = c1 = jnp.zeros((B, H), jnp.float32)
    outs = []
    for t in range(L):
        h0, c0 = cell(text_emb[:, t, :], h0, c0, params["wih0"], params["whh0"], params["b0"])
        h1, c1 = cell(h0, h1, c1, params["wih1"], params["whh1"], params["b1"])
        outs.append(h1)
    flat = jnp.concatenate(outs, axis=1)  # (B, L*H), matches out.reshape(B, L*H)
    return mm(flat, params["wfc"]) + params["bfc"]


# ------------------------------- main -------------------------------

if __name__ == "__main__":
    vocab_size = 50
    max_len = 8
    batch = 2
    embedding_size = 100
    hidden = 128

    key = jax.random.PRNGKey(0)
    kp, kt = jax.random.split(key)
    params = init_params(kp, vocab_size, max_len, embedding_size, hidden)

    # text: (B, L) int32 token ids
    text = jax.random.randint(kt, (batch, max_len), 0, vocab_size, dtype=jnp.int32)

    # Embedding lookup (glue, plain JAX gather)
    text_emb = jnp.take(params["embedding"], text, axis=0)  # (B, L, E) float32

    out = lstm_forward_pallas(text_emb, params)
    out = jax.block_until_ready(out)
    assert out.shape == (batch, 10)

    # Tight check vs a numerics-matched (bf16 matmul operands, f32 accumulate) reference.
    ref_bf16 = lstm_forward_ref(text_emb, params, mm_dtype=jnp.bfloat16)
    assert jnp.allclose(out, ref_bf16, rtol=1e-2, atol=1e-3), "mismatch vs bf16-matmul reference"

    # Loose check vs the exact f32 PyTorch-semantics reference (bounds bf16 operand drift).
    ref_f32 = lstm_forward_ref(text_emb, params, mm_dtype=jnp.float32)
    assert jnp.allclose(out, ref_f32, rtol=2e-2, atol=2e-2), "mismatch vs f32 reference"

    print("KERNEL_OK")
</pallas_src>

<mosaic_0001>
module attributes {stable_mosaic.version = 11 : i64} {
  func.func @_lstm_fc_kernel(%arg0: memref<64x128xbf16, #tpu.memory_space<vmem>>, %arg1: memref<128x512xbf16, #tpu.memory_space<vmem>>, %arg2: memref<1x512xf32, #tpu.memory_space<vmem>>, %arg3: memref<128x1024xbf16, #tpu.memory_space<vmem>>, %arg4: memref<128x512xbf16, #tpu.memory_space<vmem>>, %arg5: memref<1x512xf32, #tpu.memory_space<vmem>>, %arg6: memref<1024x128xbf16, #tpu.memory_space<vmem>>, %arg7: memref<1x128xf32, #tpu.memory_space<vmem>>, %arg8: memref<8x128xf32, #tpu.memory_space<vmem>>, %arg9: memref<64x512xf32, #tpu.memory_space<vmem>>, %arg10: memref<8x1024xbf16, #tpu.memory_space<vmem>>) attributes {dimension_semantics = [], scalar_prefetch = 0 : i64, scratch_operands = 2 : i64, tpu.core_type = #tpu.core_type<tc>} {
    %c0 = arith.constant 0 : index
    %c0_0 = arith.constant 0 : index
    %0 = vector.load %arg0[%c0, %c0_0] : memref<64x128xbf16, #tpu.memory_space<vmem>>, vector<64x128xbf16>
    %c0_1 = arith.constant 0 : index
    %c0_2 = arith.constant 0 : index
    %1 = vector.load %arg1[%c0_1, %c0_2] : memref<128x512xbf16, #tpu.memory_space<vmem>>, vector<128x512xbf16>
    %cst = arith.constant dense<0.000000e+00> : vector<64x512xf32>
    %2 = tpu.matmul %0, %1, %cst {dimension_numbers = #tpu.dot_dimension_numbers<[1], [0], [0], [1], [0, 0, 1, 1], [], []>} : vector<64x128xbf16>, vector<128x512xbf16>, vector<64x512xf32> -> vector<64x512xf32>
    %c0_3 = arith.constant 0 : index
    %c0_4 = arith.constant 0 : index
    %3 = vector.load %arg2[%c0_3, %c0_4] : memref<1x512xf32, #tpu.memory_space<vmem>>, vector<1x512xf32>
    %4 = vector.broadcast %3 : vector<1x512xf32> to vector<64x512xf32>
    %5 = arith.addf %2, %4 : vector<64x512xf32>
    %c0_5 = arith.constant 0 : index
    %c0_6 = arith.constant 0 : index
    %6 = vector.load %arg9[%c0_5, %c0_6] : memref<64x512xf32, #tpu.memory_space<vmem>>, vector<64x512xf32>
    tpu.vector_store %arg9[%c0_5, %c0_6], %5 {strides = array<i32>} : memref<64x512xf32, #tpu.memory_space<vmem>>, vector<64x512xf32>,
    %c0_7 = arith.constant 0 : index
    %c0_8 = arith.constant 0 : index
    %7 = vector.load %arg5[%c0_7, %c0_8] : memref<1x512xf32, #tpu.memory_space<vmem>>, vector<1x512xf32>
    %8 = vector.shape_cast %7 : vector<1x512xf32> to vector<1x512xf32>
    %9 = vector.broadcast %8 : vector<1x512xf32> to vector<8x512xf32>
    %cst_9 = arith.constant 0.000000e+00 : f32
    %10 = vector.broadcast %cst_9 : f32 to vector<8x128xf32>
    %cst_10 = arith.constant 0.000000e+00 : f32
    %11 = vector.broadcast %cst_10 : f32 to vector<8x128xf32>
    %cst_11 = arith.constant 0.000000e+00 : f32
    %12 = vector.broadcast %cst_11 : f32 to vector<8x512xf32>
    %c0_12 = arith.constant 0 : index
    %c0_13 = arith.constant 0 : index
    %13 = vector.load %arg9[%c0_12, %c0_13] : memref<64x512xf32, #tpu.memory_space<vmem>>, vector<8x512xf32>
    %14 = arith.addf %13, %12 : vector<8x512xf32>
    %15 = vector.extract_strided_slice %14 {offsets = [0, 0], sizes = [8, 128], strides = [1, 1]} : vector<8x512xf32> to vector<8x128xf32>
    %16 = arith.negf %15 : vector<8x128xf32>
    %17 = math.exp %16 : vector<8x128xf32>
    %cst_14 = arith.constant 1.000000e+00 : f32
    %18 = vector.broadcast %cst_14 : f32 to vector<8x128xf32>
    %19 = arith.addf %18, %17 : vector<8x128xf32>
    %20 = arith.divf %18, %19 : vector<8x128xf32>
    %21 = vector.extract_strided_slice %14 {offsets = [0, 128], sizes = [8, 128], strides = [1, 1]} : vector<8x512xf32> to vector<8x128xf32>
    %22 = arith.negf %21 : vector<8x128xf32>
    %23 = math.exp %22 : vector<8x128xf32>
    %cst_15 = arith.constant 1.000000e+00 : f32
    %24 = vector.broadcast %cst_15 : f32 to vector<8x128xf32>
    %25 = arith.addf %24, %23 : vector<8x128xf32>
    %26 = arith.divf %24, %25 : vector<8x128xf32>
    %27 = vector.extract_strided_slice %14 {offsets = [0, 256], sizes = [8, 128], strides = [1, 1]} : vector<8x512xf32> to vector<8x128xf32>
    %28 = math.tanh %27 : vector<8x128xf32>
    %29 = vector.extract_strided_slice %14 {offsets = [0, 384], sizes = [8, 128], strides = [1, 1]} : vector<8x512xf32> to vector<8x128xf32>
    %30 = arith.negf %29 : vector<8x128xf32>
    %31 = math.exp %30 : vector<8x128xf32>
    %cst_16 = arith.constant 1.000000e+00 : f32
    %32 = vector.broadcast %cst_16 : f32 to vector<8x128xf32>
    %33 = arith.addf %32, %31 : vector<8x128xf32>
    %34 = arith.divf %32, %33 : vector<8x128xf32>
    %35 = arith.mulf %26, %10 : vector<8x128xf32>
    %36 = arith.mulf %20, %28 : vector<8x128xf32>
    %37 = arith.addf %35, %36 : vector<8x128xf32>
    %38 = math.tanh %37 : vector<8x128xf32>
    %39 = arith.mulf %34, %38 : vector<8x128xf32>
    %40 = arith.truncf %39 : vector<8x128xf32> to vector<8x128xbf16>
    %c0_17 = arith.constant 0 : index
    %c0_18 = arith.constant 0 : index
    %41 = vector.load %arg3[%c0_17, %c0_18] : memref<128x1024xbf16, #tpu.memory_space<vmem>>, vector<128x1024xbf16>
    %cst_19 = arith.constant dense<0.000000e+00> : vector<8x1024xf32>
    %42 = tpu.matmul %40, %41, %cst_19 {dimension_numbers = #tpu.dot_dimension_numbers<[1], [0], [0], [1], [0, 0, 1, 1], [], []>} : vector<8x128xbf16>, vector<128x1024xbf16>, vector<8x1024xf32> -> vector<8x1024xf32>
    %43 = vector.extract_strided_slice %42 {offsets = [0, 0], sizes = [8, 512], strides = [1, 1]} : vector<8x1024xf32> to vector<8x512xf32>
    %44 = vector.extract_strided_slice %42 {offsets = [0, 512], sizes = [8, 512], strides = [1, 1]} : vector<8x1024xf32> to vector<8x512xf32>
    %45 = arith.addf %43, %9 : vector<8x512xf32>
    %46 = vector.extract_strided_slice %45 {offsets = [0, 0], sizes = [8, 128], strides = [1, 1]} : vector<8x512xf32> to vector<8x128xf32>
    %47 = arith.negf %46 : vector<8x128xf32>
    %48 = math.exp %47 : vector<8x128xf32>
    %cst_20 = arith.constant 1.000000e+00 : f32
    %49 = vector.broadcast %cst_20 : f32 to vector<8x128xf32>
    %50 = arith.addf %49, %48 : vector<8x128xf32>
    %51 = arith.divf %49, %50 : vector<8x128xf32>
    %52 = vector.extract_strided_slice %45 {offsets = [0, 128], sizes = [8, 128], strides = [1, 1]} : vector<8x512xf32> to vector<8x128xf32>
    %53 = arith.negf %52 : vector<8x128xf32>
    %54 = math.exp %53 : vector<8x128xf32>
    %cst_21 = arith.constant 1.000000e+00 : f32
    %55 = vector.broadcast %cst_21 : f32 to vector<8x128xf32>
    %56 = arith.addf %55, %54 : vector<8x128xf32>
    %57 = arith.divf %55, %56 : vector<8x128xf32>
    %58 = vector.extract_strided_slice %45 {offsets = [0, 256], sizes = [8, 128], strides = [1, 1]} : vector<8x512xf32> to vector<8x128xf32>
    %59 = math.tanh %58 : vector<8x128xf32>
    %60 = vector.extract_strided_slice %45 {offsets = [0, 384], sizes = [8, 128], strides = [1, 1]} : vector<8x512xf32> to vector<8x128xf32>
    %61 = arith.negf %60 : vector<8x128xf32>
    %62 = math.exp %61 : vector<8x128xf32>
    %cst_22 = arith.constant 1.000000e+00 : f32
    %63 = vector.broadcast %cst_22 : f32 to vector<8x128xf32>
    %64 = arith.addf %63, %62 : vector<8x128xf32>
    %65 = arith.divf %63, %64 : vector<8x128xf32>
    %66 = arith.mulf %57, %11 : vector<8x128xf32>
    %67 = arith.mulf %51, %59 : vector<8x128xf32>
    %68 = arith.addf %66, %67 : vector<8x128xf32>
    %69 = math.tanh %68 : vector<8x128xf32>
    %70 = arith.mulf %65, %69 : vector<8x128xf32>
    %71 = arith.truncf %70 : vector<8x128xf32> to vector<8x128xbf16>
    %c0_23 = arith.constant 0 : index
    %c0_24 = arith.constant 0 : index
    %72 = vector.load %arg10[%c0_23, %c0_24] : memref<8x1024xbf16, #tpu.memory_space<vmem>>, vector<8x128xbf16>
    tpu.vector_store %arg10[%c0_23, %c0_24], %71 {strides = array<i32>} : memref<8x1024xbf16, #tpu.memory_space<vmem>>, vector<8x128xbf16>,
    %c0_25 = arith.constant 0 : index
    %c0_26 = arith.constant 0 : index
    %73 = vector.load %arg4[%c0_25, %c0_26] : memref<128x512xbf16, #tpu.memory_space<vmem>>, vector<128x512xbf16>
    %cst_27 = arith.constant dense<0.000000e+00> : vector<8x512xf32>
    %74 = tpu.matmul %71, %73, %cst_27 {dimension_numbers = #tpu.dot_dimension_numbers<[1], [0], [0], [1], [0, 0, 1, 1], [], []>} : vector<8x128xbf16>, vector<128x512xbf16>, vector<8x512xf32> -> vector<8x512xf32>
    %75 = arith.addf %74, %9 : vector<8x512xf32>
    %c8 = arith.constant 8 : index
    %c0_28 = arith.constant 0 : index
    %76 = vector.load %arg9[%c8, %c0_28] : memref<64x512xf32, #tpu.memory_space<vmem>>, vector<8x512xf32>
    %77 = arith.addf %76, %44 : vector<8x512xf32>
    %78 = vector.extract_strided_slice %77 {offsets = [0, 0], sizes = [8, 128], strides = [1, 1]} : vector<8x512xf32> to vector<8x128xf32>
    %79 = arith.negf %78 : vector<8x128xf32>
    %80 = math.exp %79 : vector<8x128xf32>
    %cst_29 = arith.constant 1.000000e+00 : f32
    %81 = vector.broadcast %cst_29 : f32 to vector<8x128xf32>
    %82 = arith.addf %81, %80 : vector<8x128xf32>
    %83 = arith.divf %81, %82 : vector<8x128xf32>
    %84 = vector.extract_strided_slice %77 {offsets = [0, 128], sizes = [8, 128], strides = [1, 1]} : vector<8x512xf32> to vector<8x128xf32>
    %85 = arith.negf %84 : vector<8x128xf32>
    %86 = math.exp %85 : vector<8x128xf32>
    %cst_30 = arith.constant 1.000000e+00 : f32
    %87 = vector.broadcast %cst_30 : f32 to vector<8x128xf32>
    %88 = arith.addf %87, %86 : vector<8x128xf32>
    %89 = arith.divf %87, %88 : vector<8x128xf32>
    %90 = vector.extract_strided_slice %77 {offsets = [0, 256], sizes = [8, 128], strides = [1, 1]} : vector<8x512xf32> to vector<8x128xf32>
    %91 = math.tanh %90 : vector<8x128xf32>
    %92 = vector.extract_strided_slice %77 {offsets = [0, 384], sizes = [8, 128], strides = [1, 1]} : vector<8x512xf32> to vector<8x128xf32>
    %93 = arith.negf %92 : vector<8x128xf32>
    %94 = math.exp %93 : vector<8x128xf32>
    %cst_31 = arith.constant 1.000000e+00 : f32
    %95 = vector.broadcast %cst_31 : f32 to vector<8x128xf32>
    %96 = arith.addf %95, %94 : vector<8x128xf32>
    %97 = arith.divf %95, %96 : vector<8x128xf32>
    %98 = arith.mulf %89, %37 : vector<8x128xf32>
    %99 = arith.mulf %83, %91 : vector<8x128xf32>
    %100 = arith.addf %98, %99 : vector<8x128xf32>
    %101 = math.tanh %100 : vector<8x128xf32>
    %102 = arith.mulf %97, %101 : vector<8x128xf32>
    %103 = arith.truncf %102 : vector<8x128xf32> to vector<8x128xbf16>
    %c0_32 = arith.constant 0 : index
    %c0_33 = arith.constant 0 : index
    %104 = vector.load %arg3[%c0_32, %c0_33] : memref<128x1024xbf16, #tpu.memory_space<vmem>>, vector<128x1024xbf16>
    %cst_34 = arith.constant dense<0.000000e+00> : vector<8x1024xf32>
    %105 = tpu.matmul %103, %104, %cst_34 {dimension_numbers = #tpu.dot_dimension_numbers<[1], [0], [0], [1], [0, 0, 1, 1], [], []>} : vector<8x128xbf16>, vector<128x1024xbf16>, vector<8x1024xf32> -> vector<8x1024xf32>
    %106 = vector.extract_strided_slice %105 {offsets = [0, 0], sizes = [8, 512], strides = [1, 1]} : vector<8x1024xf32> to vector<8x512xf32>
    %107 = vector.extract_strided_slice %105 {offsets = [0, 512], sizes = [8, 512], strides = [1, 1]} : vector<8x1024xf32> to vector<8x512xf32>
    %108 = arith.addf %106, %75 : vector<8x512xf32>
    %109 = vector.extract_strided_slice %108 {offsets = [0, 0], sizes = [8, 128], strides = [1, 1]} : vector<8x512xf32> to vector<8x128xf32>
    %110 = arith.negf %109 : vector<8x128xf32>
    %111 = math.exp %110 : vector<8x128xf32>
    %cst_35 = arith.constant 1.000000e+00 : f32
    %112 = vector.broadcast %cst_35 : f32 to vector<8x128xf32>
    %113 = arith.addf %112, %111 : vector<8x128xf32>
    %114 = arith.divf %112, %113 : vector<8x128xf32>
    %115 = vector.extract_strided_slice %108 {offsets = [0, 128], sizes = [8, 128], strides = [1, 1]} : vector<8x512xf32> to vector<8x128xf32>
    %116 = arith.negf %115 : vector<8x128xf32>
    %117 = math.exp %116 : vector<8x128xf32>
    %cst_36 = arith.constant 1.000000e+00 : f32
    %118 = vector.broadcast %cst_36 : f32 to vector<8x128xf32>
    %119 = arith.addf %118, %117 : vector<8x128xf32>
    %120 = arith.divf %118, %119 : vector<8x128xf32>
    %121 = vector.extract_strided_slice %108 {offsets = [0, 256], sizes = [8, 128], strides = [1, 1]} : vector<8x512xf32> to vector<8x128xf32>
    %122 = math.tanh %121 : vector<8x128xf32>
    %123 = vector.extract_strided_slice %108 {offsets = [0, 384], sizes = [8, 128], strides = [1, 1]} : vector<8x512xf32> to vector<8x128xf32>
    %124 = arith.negf %123 : vector<8x128xf32>
    %125 = math.exp %124 : vector<8x128xf32>
    %cst_37 = arith.constant 1.000000e+00 : f32
    %126 = vector.broadcast %cst_37 : f32 to vector<8x128xf32>
    %127 = arith.addf %126, %125 : vector<8x128xf32>
    %128 = arith.divf %126, %127 : vector<8x128xf32>
    %129 = arith.mulf %120, %68 : vector<8x128xf32>
    %130 = arith.mulf %114, %122 : vector<8x128xf32>
    %131 = arith.addf %129, %130 : vector<8x128xf32>
    %132 = math.tanh %131 : vector<8x128xf32>
    %133 = arith.mulf %128, %132 : vector<8x128xf32>
    %134 = arith.truncf %133 : vector<8x128xf32> to vector<8x128xbf16>
    %c0_38 = arith.constant 0 : index
    %c128 = arith.constant 128 : index
    %135 = vector.load %arg10[%c0_38, %c128] : memref<8x1024xbf16, #tpu.memory_space<vmem>>, vector<8x128xbf16>
    tpu.vector_store %arg10[%c0_38, %c128], %134 {strides = array<i32>} : memref<8x1024xbf16, #tpu.memory_space<vmem>>, vector<8x128xbf16>,
    %c0_39 = arith.constant 0 : index
    %c0_40 = arith.constant 0 : index
    %136 = vector.load %arg4[%c0_39, %c0_40] : memref<128x512xbf16, #tpu.memory_space<vmem>>, vector<128x512xbf16>
    %cst_41 = arith.constant dense<0.000000e+00> : vector<8x512xf32>
    %137 = tpu.matmul %134, %136, %cst_41 {dimension_numbers = #tpu.dot_dimension_numbers<[1], [0], [0], [1], [0, 0, 1, 1], [], []>} : vector<8x128xbf16>, vector<128x512xbf16>, vector<8x512xf32> -> vector<8x512xf32>
    %138 = arith.addf %137, %9 : vector<8x512xf32>
    %c16 = arith.constant 16 : index
    %c0_42 = arith.constant 0 : index
    %139 = vector.load %arg9[%c16, %c0_42] : memref<64x512xf32, #tpu.memory_space<vmem>>, vector<8x512xf32>
    %140 = arith.addf %139, %107 : vector<8x512xf32>
    %141 = vector.extract_strided_slice %140 {offsets = [0, 0], sizes = [8, 128], strides = [1, 1]} : vector<8x512xf32> to vector<8x128xf32>
    %142 = arith.negf %141 : vector<8x128xf32>
    %143 = math.exp %142 : vector<8x128xf32>
    %cst_43 = arith.constant 1.000000e+00 : f32
    %144 = vector.broadcast %cst_43 : f32 to vector<8x128xf32>
    %145 = arith.addf %144, %143 : vector<8x128xf32>
    %146 = arith.divf %144, %145 : vector<8x128xf32>
    %147 = vector.extract_strided_slice %140 {offsets = [0, 128], sizes = [8, 128], strides = [1, 1]} : vector<8x512xf32> to vector<8x128xf32>
    %148 = arith.negf %147 : vector<8x128xf32>
    %149 = math.exp %148 : vector<8x128xf32>
    %cst_44 = arith.constant 1.000000e+00 : f32
    %150 = vector.broadcast %cst_44 : f32 to vector<8x128xf32>
    %151 = arith.addf %150, %149 : vector<8x128xf32>
    %152 = arith.divf %150, %151 : vector<8x128xf32>
    %153 = vector.extract_strided_slice %140 {offsets = [0, 256], sizes = [8, 128], strides = [1, 1]} : vector<8x512xf32> to vector<8x128xf32>
    %154 = math.tanh %153 : vector<8x128xf32>
    %155 = vector.extract_strided_slice %140 {offsets = [0, 384], sizes = [8, 128], strides = [1, 1]} : vector<8x512xf32> to vector<8x128xf32>
    %156 = arith.negf %155 : vector<8x128xf32>
    %157 = math.exp %156 : vector<8x128xf32>
    %cst_45 = arith.constant 1.000000e+00 : f32
    %158 = vector.broadcast %cst_45 : f32 to vector<8x128xf32>
    %159 = arith.addf %158, %157 : vector<8x128xf32>
    %160 = arith.divf %158, %159 : vector<8x128xf32>
    %161 = arith.mulf %152, %100 : vector<8x128xf32>
    %162 = arith.mulf %146, %154 : vector<8x128xf32>
    %163 = arith.addf %161, %162 : vector<8x128xf32>
    %164 = math.tanh %163 : vector<8x128xf32>
    %165 = arith.mulf %160, %164 : vector<8x128xf32>
    %166 = arith.truncf %165 : vector<8x128xf32> to vector<8x128xbf16>
    %c0_46 = arith.constant 0 : index
    %c0_47 = arith.constant 0 : index
    %167 = vector.load %arg3[%c0_46, %c0_47] : memref<128x1024xbf16, #tpu.memory_space<vmem>>, vector<128x1024xbf16>
    %cst_48 = arith.constant dense<0.000000e+00> : vector<8x1024xf32>
    %168 = tpu.matmul %166, %167, %cst_48 {dimension_numbers = #tpu.dot_dimension_numbers<[1], [0], [0], [1], [0, 0, 1, 1], [], []>} : vector<8x128xbf16>, vector<128x1024xbf16>, vector<8x1024xf32> -> vector<8x1024xf32>
    %169 = vector.extract_strided_slice %168 {offsets = [0, 0], sizes = [8, 512], strides = [1, 1]} : vector<8x1024xf32> to vector<8x512xf32>
    %170 = vector.extract_strided_slice %168 {offsets = [0, 512], sizes = [8, 512], strides = [1, 1]} : vector<8x1024xf32> to vector<8x512xf32>
    %171 = arith.addf %169, %138 : vector<8x512xf32>
    %172 = vector.extract_strided_slice %171 {offsets = [0, 0], sizes = [8, 128], strides = [1, 1]} : vector<8x512xf32> to vector<8x128xf32>
    %173 = arith.negf %172 : vector<8x128xf32>
    %174 = math.exp %173 : vector<8x128xf32>
    %cst_49 = arith.constant 1.000000e+00 : f32
    %175 = vector.broadcast %cst_49 : f32 to vector<8x128xf32>
    %176 = arith.addf %175, %174 : vector<8x128xf32>
    %177 = arith.divf %175, %176 : vector<8x128xf32>
    %178 = vector.extract_strided_slice %171 {offsets = [0, 128], sizes = [8, 128], strides = [1, 1]} : vector<8x512xf32> to vector<8x128xf32>
    %179 = arith.negf %178 : vector<8x128xf32>
    %180 = math.exp %179 : vector<8x128xf32>
    %cst_50 = arith.constant 1.000000e+00 : f32
    %181 = vector.broadcast %cst_50 : f32 to vector<8x128xf32>
    %182 = arith.addf %181, %180 : vector<8x128xf32>
    %183 = arith.divf %181, %182 : vector<8x128xf32>
    %184 = vector.extract_strided_slice %171 {offsets = [0, 256], sizes = [8, 128], strides = [1, 1]} : vector<8x512xf32> to vector<8x128xf32>
    %185 = math.tanh %184 : vector<8x128xf32>
    %186 = vector.extract_strided_slice %171 {offsets = [0, 384], sizes = [8, 128], strides = [1, 1]} : vector<8x512xf32> to vector<8x128xf32>
    %187 = arith.negf %186 : vector<8x128xf32>
    %188 = math.exp %187 : vector<8x128xf32>
    %cst_51 = arith.constant 1.000000e+00 : f32
    %189 = vector.broadcast %cst_51 : f32 to vector<8x128xf32>
    %190 = arith.addf %189, %188 : vector<8x128xf32>
    %191 = arith.divf %189, %190 : vector<8x128xf32>
    %192 = arith.mulf %183, %131 : vector<8x128xf32>
    %193 = arith.mulf %177, %185 : vector<8x128xf32>
    %194 = arith.addf %192, %193 : vector<8x128xf32>
    %195 = math.tanh %194 : vector<8x128xf32>
    %196 = arith.mulf %191, %195 : vector<8x128xf32>
    %197 = arith.truncf %196 : vector<8x128xf32> to vector<8x128xbf16>
    %c0_52 = arith.constant 0 : index
    %c256 = arith.constant 256 : index
    %198 = vector.load %arg10[%c0_52, %c256] : memref<8x1024xbf16, #tpu.memory_space<vmem>>, vector<8x128xbf16>
    tpu.vector_store %arg10[%c0_52, %c256], %197 {strides = array<i32>} : memref<8x1024xbf16, #tpu.memory_space<vmem>>, vector<8x128xbf16>,
    %c0_53 = arith.constant 0 : index
    %c0_54 = arith.constant 0 : index
    %199 = vector.load %arg4[%c0_53, %c0_54] : memref<128x512xbf16, #tpu.memory_space<vmem>>, vector<128x512xbf16>
    %cst_55 = arith.constant dense<0.000000e+00> : vector<8x512xf32>
    %200 = tpu.matmul %197, %199, %cst_55 {dimension_numbers = #tpu.dot_dimension_numbers<[1], [0], [0], [1], [0, 0, 1, 1], [], []>} : vector<8x128xbf16>, vector<128x512xbf16>, vector<8x512xf32> -> vector<8x512xf32>
    %201 = arith.addf %200, %9 : vector<8x512xf32>
    %c24 = arith.constant 24 : index
    %c0_56 = arith.constant 0 : index
    %202 = vector.load %arg9[%c24, %c0_56] : memref<64x512xf32, #tpu.memory_space<vmem>>, vector<8x512xf32>
    %203 = arith.addf %202, %170 : vector<8x512xf32>
    %204 = vector.extract_strided_slice %203 {offsets = [0, 0], sizes = [8, 128], strides = [1, 1]} : vector<8x512xf32> to vector<8x128xf32>
    %205 = arith.negf %204 : vector<8x128xf32>
    %206 = math.exp %205 : vector<8x128xf32>
    %cst_57 = arith.constant 1.000000e+00 : f32
    %207 = vector.broadcast %cst_57 : f32 to vector<8x128xf32>
    %208 = arith.addf %207, %206 : vector<8x128xf32>
    %209 = arith.divf %207, %208 : vector<8x128xf32>
    %210 = vector.extract_strided_slice %203 {offsets = [0, 128], sizes = [8, 128], strides = [1, 1]} : vector<8x512xf32> to vector<8x128xf32>
    %211 = arith.negf %210 : vector<8x128xf32>
    %212 = math.exp %211 : vector<8x128xf32>
    %cst_58 = arith.constant 1.000000e+00 : f32
    %213 = vector.broadcast %cst_58 : f32 to vector<8x128xf32>
    %214 = arith.addf %213, %212 : vector<8x128xf32>
    %215 = arith.divf %213, %214 : vector<8x128xf32>
    %216 = vector.extract_strided_slice %203 {offsets = [0, 256], sizes = [8, 128], strides = [1, 1]} : vector<8x512xf32> to vector<8x128xf32>
    %217 = math.tanh %216 : vector<8x128xf32>
    %218 = vector.extract_strided_slice %203 {offsets = [0, 384], sizes = [8, 128], strides = [1, 1]} : vector<8x512xf32> to vector<8x128xf32>
    %219 = arith.negf %218 : vector<8x128xf32>
    %220 = math.exp %219 : vector<8x128xf32>
    %cst_59 = arith.constant 1.000000e+00 : f32
    %221 = vector.broadcast %cst_59 : f32 to vector<8x128xf32>
    %222 = arith.addf %221, %220 : vector<8x128xf32>
    %223 = arith.divf %221, %222 : vector<8x128xf32>
    %224 = arith.mulf %215, %163 : vector<8x128xf32>
    %225 = arith.mulf %209, %217 : vector<8x128xf32>
    %226 = arith.addf %224, %225 : vector<8x128xf32>
    %227 = math.tanh %226 : vector<8x128xf32>
    %228 = arith.mulf %223, %227 : vector<8x128xf32>
    %229 = arith.truncf %228 : vector<8x128xf32> to vector<8x128xbf16>
    %c0_60 = arith.constant 0 : index
    %c0_61 = arith.constant 0 : index
    %230 = vector.load %arg3[%c0_60, %c0_61] : memref<128x1024xbf16, #tpu.memory_space<vmem>>, vector<128x1024xbf16>
    %cst_62 = arith.constant dense<0.000000e+00> : vector<8x1024xf32>
    %231 = tpu.matmul %229, %230, %cst_62 {dimension_numbers = #tpu.dot_dimension_numbers<[1], [0], [0], [1], [0, 0, 1, 1], [], []>} : vector<8x128xbf16>, vector<128x1024xbf16>, vector<8x1024xf32> -> vector<8x1024xf32>
    %232 = vector.extract_strided_slice %231 {offsets = [0, 0], sizes = [8, 512], strides = [1, 1]} : vector<8x1024xf32> to vector<8x512xf32>
    %233 = vector.extract_strided_slice %231 {offsets = [0, 512], sizes = [8, 512], strides = [1, 1]} : vector<8x1024xf32> to vector<8x512xf32>
    %234 = arith.addf %232, %201 : vector<8x512xf32>
    %235 = vector.extract_strided_slice %234 {offsets = [0, 0], sizes = [8, 128], strides = [1, 1]} : vector<8x512xf32> to vector<8x128xf32>
    %236 = arith.negf %235 : vector<8x128xf32>
    %237 = math.exp %236 : vector<8x128xf32>
    %cst_63 = arith.constant 1.000000e+00 : f32
    %238 = vector.broadcast %cst_63 : f32 to vector<8x128xf32>
    %239 = arith.addf %238, %237 : vector<8x128xf32>
    %240 = arith.divf %238, %239 : vector<8x128xf32>
    %241 = vector.extract_strided_slice %234 {offsets = [0, 128], sizes = [8, 128], strides = [1, 1]} : vector<8x512xf32> to vector<8x128xf32>
    %242 = arith.negf %241 : vector<8x128xf32>
    %243 = math.exp %242 : vector<8x128xf32>
    %cst_64 = arith.constant 1.000000e+00 : f32
    %244 = vector.broadcast %cst_64 : f32 to vector<8x128xf32>
    %245 = arith.addf %244, %243 : vector<8x128xf32>
    %246 = arith.divf %244, %245 : vector<8x128xf32>
    %247 = vector.extract_strided_slice %234 {offsets = [0, 256], sizes = [8, 128], strides = [1, 1]} : vector<8x512xf32> to vector<8x128xf32>
    %248 = math.tanh %247 : vector<8x128xf32>
    %249 = vector.extract_strided_slice %234 {offsets = [0, 384], sizes = [8, 128], strides = [1, 1]} : vector<8x512xf32> to vector<8x128xf32>
    %250 = arith.negf %249 : vector<8x128xf32>
    %251 = math.exp %250 : vector<8x128xf32>
    %cst_65 = arith.constant 1.000000e+00 : f32
    %252 = vector.broadcast %cst_65 : f32 to vector<8x128xf32>
    %253 = arith.addf %252, %251 : vector<8x128xf32>
    %254 = arith.divf %252, %253 : vector<8x128xf32>
    %255 = arith.mulf %246, %194 : vector<8x128xf32>
    %256 = arith.mulf %240, %248 : vector<8x128xf32>
    %257 = arith.addf %255, %256 : vector<8x128xf32>
    %258 = math.tanh %257 : vector<8x128xf32>
    %259 = arith.mulf %254, %258 : vector<8x128xf32>
    %260 = arith.truncf %259 : vector<8x128xf32> to vector<8x128xbf16>
    %c0_66 = arith.constant 0 : index
    %c384 = arith.constant 384 : index
    %261 = vector.load %arg10[%c0_66, %c384] : memref<8x1024xbf16, #tpu.memory_space<vmem>>, vector<8x128xbf16>
    tpu.vector_store %arg10[%c0_66, %c384], %260 {strides = array<i32>} : memref<8x1024xbf16, #tpu.memory_space<vmem>>, vector<8x128xbf16>,
    %c0_67 = arith.constant 0 : index
    %c0_68 = arith.constant 0 : index
    %262 = vector.load %arg4[%c0_67, %c0_68] : memref<128x512xbf16, #tpu.memory_space<vmem>>, vector<128x512xbf16>
    %cst_69 = arith.constant dense<0.000000e+00> : vector<8x512xf32>
    %263 = tpu.matmul %260, %262, %cst_69 {dimension_numbers = #tpu.dot_dimension_numbers<[1], [0], [0], [1], [0, 0, 1, 1], [], []>} : vector<8x128xbf16>, vector<128x512xbf16>, vector<8x512xf32> -> vector<8x512xf32>
    %264 = arith.addf %263, %9 : vector<8x512xf32>
    %c32 = arith.constant 32 : index
    %c0_70 = arith.constant 0 : index
    %265 = vector.load %arg9[%c32, %c0_70] : memref<64x512xf32, #tpu.memory_space<vmem>>, vector<8x512xf32>
    %266 = arith.addf %265, %233 : vector<8x512xf32>
    %267 = vector.extract_strided_slice %266 {offsets = [0, 0], sizes = [8, 128], strides = [1, 1]} : vector<8x512xf32> to vector<8x128xf32>
    %268 = arith.negf %267 : vector<8x128xf32>
    %269 = math.exp %268 : vector<8x128xf32>
    %cst_71 = arith.constant 1.000000e+00 : f32
    %270 = vector.broadcast %cst_71 : f32 to vector<8x128xf32>
    %271 = arith.addf %270, %269 : vector<8x128xf32>
    %272 = arith.divf %270, %271 : vector<8x128xf32>
    %273 = vector.extract_strided_slice %266 {offsets = [0, 128], sizes = [8, 128], strides = [1, 1]} : vector<8x512xf32> to vector<8x128xf32>
    %274 = arith.negf %273 : vector<8x128xf32>
    %275 = math.exp %274 : vector<8x128xf32>
    %cst_72 = arith.constant 1.000000e+00 : f32
    %276 = vector.broadcast %cst_72 : f32 to vector<8x128xf32>
    %277 = arith.addf %276, %275 : vector<8x128xf32>
    %278 = arith.divf %276, %277 : vector<8x128xf32>
    %279 = vector.extract_strided_slice %266 {offsets = [0, 256], sizes = [8, 128], strides = [1, 1]} : vector<8x512xf32> to vector<8x128xf32>
    %280 = math.tanh %279 : vector<8x128xf32>
    %281 = vector.extract_strided_slice %266 {offsets = [0, 384], sizes = [8, 128], strides = [1, 1]} : vector<8x512xf32> to vector<8x128xf32>
    %282 = arith.negf %281 : vector<8x128xf32>
    %283 = math.exp %282 : vector<8x128xf32>
    %cst_73 = arith.constant 1.000000e+00 : f32
    %284 = vector.broadcast %cst_73 : f32 to vector<8x128xf32>
    %285 = arith.addf %284, %283 : vector<8x128xf32>
    %286 = arith.divf %284, %285 : vector<8x128xf32>
    %287 = arith.mulf %278, %226 : vector<8x128xf32>
    %288 = arith.mulf %272, %280 : vector<8x128xf32>
    %289 = arith.addf %287, %288 : vector<8x128xf32>
    %290 = math.tanh %289 : vector<8x128xf32>
    %291 = arith.mulf %286, %290 : vector<8x128xf32>
    %292 = arith.truncf %291 : vector<8x128xf32> to vector<8x128xbf16>
    %c0_74 = arith.constant 0 : index
    %c0_75 = arith.constant 0 : index
    %293 = vector.load %arg3[%c0_74, %c0_75] : memref<128x1024xbf16, #tpu.memory_space<vmem>>, vector<128x1024xbf16>
    %cst_76 = arith.constant dense<0.000000e+00> : vector<8x1024xf32>
    %294 = tpu.matmul %292, %293, %cst_76 {dimension_numbers = #tpu.dot_dimension_numbers<[1], [0], [0], [1], [0, 0, 1, 1], [], []>} : vector<8x128xbf16>, vector<128x1024xbf16>, vector<8x1024xf32> -> vector<8x1024xf32>
    %295 = vector.extract_strided_slice %294 {offsets = [0, 0], sizes = [8, 512], strides = [1, 1]} : vector<8x1024xf32> to vector<8x512xf32>
    %296 = vector.extract_strided_slice %294 {offsets = [0, 512], sizes = [8, 512], strides = [1, 1]} : vector<8x1024xf32> to vector<8x512xf32>
    %297 = arith.addf %295, %264 : vector<8x512xf32>
    %298 = vector.extract_strided_slice %297 {offsets = [0, 0], sizes = [8, 128], strides = [1, 1]} : vector<8x512xf32> to vector<8x128xf32>
    %299 = arith.negf %298 : vector<8x128xf32>
    %300 = math.exp %299 : vector<8x128xf32>
    %cst_77 = arith.constant 1.000000e+00 : f32
    %301 = vector.broadcast %cst_77 : f32 to vector<8x128xf32>
    %302 = arith.addf %301, %300 : vector<8x128xf32>
    %303 = arith.divf %301, %302 : vector<8x128xf32>
    %304 = vector.extract_strided_slice %297 {offsets = [0, 128], sizes = [8, 128], strides = [1, 1]} : vector<8x512xf32> to vector<8x128xf32>
    %305 = arith.negf %304 : vector<8x128xf32>
    %306 = math.exp %305 : vector<8x128xf32>
    %cst_78 = arith.constant 1.000000e+00 : f32
    %307 = vector.broadcast %cst_78 : f32 to vector<8x128xf32>
    %308 = arith.addf %307, %306 : vector<8x128xf32>
    %309 = arith.divf %307, %308 : vector<8x128xf32>
    %310 = vector.extract_strided_slice %297 {offsets = [0, 256], sizes = [8, 128], strides = [1, 1]} : vector<8x512xf32> to vector<8x128xf32>
    %311 = math.tanh %310 : vector<8x128xf32>
    %312 = vector.extract_strided_slice %297 {offsets = [0, 384], sizes = [8, 128], strides = [1, 1]} : vector<8x512xf32> to vector<8x128xf32>
    %313 = arith.negf %312 : vector<8x128xf32>
    %314 = math.exp %313 : vector<8x128xf32>
    %cst_79 = arith.constant 1.000000e+00 : f32
    %315 = vector.broadcast %cst_79 : f32 to vector<8x128xf32>
    %316 = arith.addf %315, %314 : vector<8x128xf32>
    %317 = arith.divf %315, %316 : vector<8x128xf32>
    %318 = arith.mulf %309, %257 : vector<8x128xf32>
    %319 = arith.mulf %303, %311 : vector<8x128xf32>
    %320 = arith.addf %318, %319 : vector<8x128xf32>
    %321 = math.tanh %320 : vector<8x128xf32>
    %322 = arith.mulf %317, %321 : vector<8x128xf32>
    %323 = arith.truncf %322 : vector<8x128xf32> to vector<8x128xbf16>
    %c0_80 = arith.constant 0 : index
    %c512 = arith.constant 512 : index
    %324 = vector.load %arg10[%c0_80, %c512] : memref<8x1024xbf16, #tpu.memory_space<vmem>>, vector<8x128xbf16>
    tpu.vector_store %arg10[%c0_80, %c512], %323 {strides = array<i32>} : memref<8x1024xbf16, #tpu.memory_space<vmem>>, vector<8x128xbf16>,
    %c0_81 = arith.constant 0 : index
    %c0_82 = arith.constant 0 : index
    %325 = vector.load %arg4[%c0_81, %c0_82] : memref<128x512xbf16, #tpu.memory_space<vmem>>, vector<128x512xbf16>
    %cst_83 = arith.constant dense<0.000000e+00> : vector<8x512xf32>
    %326 = tpu.matmul %323, %325, %cst_83 {dimension_numbers = #tpu.dot_dimension_numbers<[1], [0], [0], [1], [0, 0, 1, 1], [], []>} : vector<8x128xbf16>, vector<128x512xbf16>, vector<8x512xf32> -> vector<8x512xf32>
    %327 = arith.addf %326, %9 : vector<8x512xf32>
    %c40 = arith.constant 40 : index
    %c0_84 = arith.constant 0 : index
    %328 = vector.load %arg9[%c40, %c0_84] : memref<64x512xf32, #tpu.memory_space<vmem>>, vector<8x512xf32>
    %329 = arith.addf %328, %296 : vector<8x512xf32>
    %330 = vector.extract_strided_slice %329 {offsets = [0, 0], sizes = [8, 128], strides = [1, 1]} : vector<8x512xf32> to vector<8x128xf32>
    %331 = arith.negf %330 : vector<8x128xf32>
    %332 = math.exp %331 : vector<8x128xf32>
    %cst_85 = arith.constant 1.000000e+00 : f32
    %333 = vector.broadcast %cst_85 : f32 to vector<8x128xf32>
    %334 = arith.addf %333, %332 : vector<8x128xf32>
    %335 = arith.divf %333, %334 : vector<8x128xf32>
    %336 = vector.extract_strided_slice %329 {offsets = [0, 128], sizes = [8, 128], strides = [1, 1]} : vector<8x512xf32> to vector<8x128xf32>
    %337 = arith.negf %336 : vector<8x128xf32>
    %338 = math.exp %337 : vector<8x128xf32>
    %cst_86 = arith.constant 1.000000e+00 : f32
    %339 = vector.broadcast %cst_86 : f32 to vector<8x128xf32>
    %340 = arith.addf %339, %338 : vector<8x128xf32>
    %341 = arith.divf %339, %340 : vector<8x128xf32>
    %342 = vector.extract_strided_slice %329 {offsets = [0, 256], sizes = [8, 128], strides = [1, 1]} : vector<8x512xf32> to vector<8x128xf32>
    %343 = math.tanh %342 : vector<8x128xf32>
    %344 = vector.extract_strided_slice %329 {offsets = [0, 384], sizes = [8, 128], strides = [1, 1]} : vector<8x512xf32> to vector<8x128xf32>
    %345 = arith.negf %344 : vector<8x128xf32>
    %346 = math.exp %345 : vector<8x128xf32>
    %cst_87 = arith.constant 1.000000e+00 : f32
    %347 = vector.broadcast %cst_87 : f32 to vector<8x128xf32>
    %348 = arith.addf %347, %346 : vector<8x128xf32>
    %349 = arith.divf %347, %348 : vector<8x128xf32>
    %350 = arith.mulf %341, %289 : vector<8x128xf32>
    %351 = arith.mulf %335, %343 : vector<8x128xf32>
    %352 = arith.addf %350, %351 : vector<8x128xf32>
    %353 = math.tanh %352 : vector<8x128xf32>
    %354 = arith.mulf %349, %353 : vector<8x128xf32>
    %355 = arith.truncf %354 : vector<8x128xf32> to vector<8x128xbf16>
    %c0_88 = arith.constant 0 : index
    %c0_89 = arith.constant 0 : index
    %356 = vector.load %arg3[%c0_88, %c0_89] : memref<128x1024xbf16, #tpu.memory_space<vmem>>, vector<128x1024xbf16>
    %cst_90 = arith.constant dense<0.000000e+00> : vector<8x1024xf32>
    %357 = tpu.matmul %355, %356, %cst_90 {dimension_numbers = #tpu.dot_dimension_numbers<[1], [0], [0], [1], [0, 0, 1, 1], [], []>} : vector<8x128xbf16>, vector<128x1024xbf16>, vector<8x1024xf32> -> vector<8x1024xf32>
    %358 = vector.extract_strided_slice %357 {offsets = [0, 0], sizes = [8, 512], strides = [1, 1]} : vector<8x1024xf32> to vector<8x512xf32>
    %359 = vector.extract_strided_slice %357 {offsets = [0, 512], sizes = [8, 512], strides = [1, 1]} : vector<8x1024xf32> to vector<8x512xf32>
    %360 = arith.addf %358, %327 : vector<8x512xf32>
    %361 = vector.extract_strided_slice %360 {offsets = [0, 0], sizes = [8, 128], strides = [1, 1]} : vector<8x512xf32> to vector<8x128xf32>
    %362 = arith.negf %361 : vector<8x128xf32>
    %363 = math.exp %362 : vector<8x128xf32>
    %cst_91 = arith.constant 1.000000e+00 : f32
    %364 = vector.broadcast %cst_91 : f32 to vector<8x128xf32>
    %365 = arith.addf %364, %363 : vector<8x128xf32>
    %366 = arith.divf %364, %365 : vector<8x128xf32>
    %367 = vector.extract_strided_slice %360 {offsets = [0, 128], sizes = [8, 128], strides = [1, 1]} : vector<8x512xf32> to vector<8x128xf32>
    %368 = arith.negf %367 : vector<8x128xf32>
    %369 = math.exp %368 : vector<8x128xf32>
    %cst_92 = arith.constant 1.000000e+00 : f32
    %370 = vector.broadcast %cst_92 : f32 to vector<8x128xf32>
    %371 = arith.addf %370, %369 : vector<8x128xf32>
    %372 = arith.divf %370, %371 : vector<8x128xf32>
    %373 = vector.extract_strided_slice %360 {offsets = [0, 256], sizes = [8, 128], strides = [1, 1]} : vector<8x512xf32> to vector<8x128xf32>
    %374 = math.tanh %373 : vector<8x128xf32>
    %375 = vector.extract_strided_slice %360 {offsets = [0, 384], sizes = [8, 128], strides = [1, 1]} : vector<8x512xf32> to vector<8x128xf32>
    %376 = arith.negf %375 : vector<8x128xf32>
    %377 = math.exp %376 : vector<8x128xf32>
    %cst_93 = arith.constant 1.000000e+00 : f32
    %378 = vector.broadcast %cst_93 : f32 to vector<8x128xf32>
    %379 = arith.addf %378, %377 : vector<8x128xf32>
    %380 = arith.divf %378, %379 : vector<8x128xf32>
    %381 = arith.mulf %372, %320 : vector<8x128xf32>
    %382 = arith.mulf %366, %374 : vector<8x128xf32>
    %383 = arith.addf %381, %382 : vector<8x128xf32>
    %384 = math.tanh %383 : vector<8x128xf32>
    %385 = arith.mulf %380, %384 : vector<8x128xf32>
    %386 = arith.truncf %385 : vector<8x128xf32> to vector<8x128xbf16>
    %c0_94 = arith.constant 0 : index
    %c640 = arith.constant 640 : index
    %387 = vector.load %arg10[%c0_94, %c640] : memref<8x1024xbf16, #tpu.memory_space<vmem>>, vector<8x128xbf16>
    tpu.vector_store %arg10[%c0_94, %c640], %386 {strides = array<i32>} : memref<8x1024xbf16, #tpu.memory_space<vmem>>, vector<8x128xbf16>,
    %c0_95 = arith.constant 0 : index
    %c0_96 = arith.constant 0 : index
    %388 = vector.load %arg4[%c0_95, %c0_96] : memref<128x512xbf16, #tpu.memory_space<vmem>>, vector<128x512xbf16>
    %cst_97 = arith.constant dense<0.000000e+00> : vector<8x512xf32>
    %389 = tpu.matmul %386, %388, %cst_97 {dimension_numbers = #tpu.dot_dimension_numbers<[1], [0], [0], [1], [0, 0, 1, 1], [], []>} : vector<8x128xbf16>, vector<128x512xbf16>, vector<8x512xf32> -> vector<8x512xf32>
    %390 = arith.addf %389, %9 : vector<8x512xf32>
    %c48 = arith.constant 48 : index
    %c0_98 = arith.constant 0 : index
    %391 = vector.load %arg9[%c48, %c0_98] : memref<64x512xf32, #tpu.memory_space<vmem>>, vector<8x512xf32>
    %392 = arith.addf %391, %359 : vector<8x512xf32>
    %393 = vector.extract_strided_slice %392 {offsets = [0, 0], sizes = [8, 128], strides = [1, 1]} : vector<8x512xf32> to vector<8x128xf32>
    %394 = arith.negf %393 : vector<8x128xf32>
    %395 = math.exp %394 : vector<8x128xf32>
    %cst_99 = arith.constant 1.000000e+00 : f32
    %396 = vector.broadcast %cst_99 : f32 to vector<8x128xf32>
    %397 = arith.addf %396, %395 : vector<8x128xf32>
    %398 = arith.divf %396, %397 : vector<8x128xf32>
    %399 = vector.extract_strided_slice %392 {offsets = [0, 128], sizes = [8, 128], strides = [1, 1]} : vector<8x512xf32> to vector<8x128xf32>
    %400 = arith.negf %399 : vector<8x128xf32>
    %401 = math.exp %400 : vector<8x128xf32>
    %cst_100 = arith.constant 1.000000e+00 : f32
    %402 = vector.broadcast %cst_100 : f32 to vector<8x128xf32>
    %403 = arith.addf %402, %401 : vector<8x128xf32>
    %404 = arith.divf %402, %403 : vector<8x128xf32>
    %405 = vector.extract_strided_slice %392 {offsets = [0, 256], sizes = [8, 128], strides = [1, 1]} : vector<8x512xf32> to vector<8x128xf32>
    %406 = math.tanh %405 : vector<8x128xf32>
    %407 = vector.extract_strided_slice %392 {offsets = [0, 384], sizes = [8, 128], strides = [1, 1]} : vector<8x512xf32> to vector<8x128xf32>
    %408 = arith.negf %407 : vector<8x128xf32>
    %409 = math.exp %408 : vector<8x128xf32>
    %cst_101 = arith.constant 1.000000e+00 : f32
    %410 = vector.broadcast %cst_101 : f32 to vector<8x128xf32>
    %411 = arith.addf %410, %409 : vector<8x128xf32>
    %412 = arith.divf %410, %411 : vector<8x128xf32>
    %413 = arith.mulf %404, %352 : vector<8x128xf32>
    %414 = arith.mulf %398, %406 : vector<8x128xf32>
    %415 = arith.addf %413, %414 : vector<8x128xf32>
    %416 = math.tanh %415 : vector<8x128xf32>
    %417 = arith.mulf %412, %416 : vector<8x128xf32>
    %418 = arith.truncf %417 : vector<8x128xf32> to vector<8x128xbf16>
    %c0_102 = arith.constant 0 : index
    %c0_103 = arith.constant 0 : index
    %419 = vector.load %arg3[%c0_102, %c0_103] : memref<128x1024xbf16, #tpu.memory_space<vmem>>, vector<128x1024xbf16>
    %cst_104 = arith.constant dense<0.000000e+00> : vector<8x1024xf32>
    %420 = tpu.matmul %418, %419, %cst_104 {dimension_numbers = #tpu.dot_dimension_numbers<[1], [0], [0], [1], [0, 0, 1, 1], [], []>} : vector<8x128xbf16>, vector<128x1024xbf16>, vector<8x1024xf32> -> vector<8x1024xf32>
    %421 = vector.extract_strided_slice %420 {offsets = [0, 0], sizes = [8, 512], strides = [1, 1]} : vector<8x1024xf32> to vector<8x512xf32>
    %422 = vector.extract_strided_slice %420 {offsets = [0, 512], sizes = [8, 512], strides = [1, 1]} : vector<8x1024xf32> to vector<8x512xf32>
    %423 = arith.addf %421, %390 : vector<8x512xf32>
    %424 = vector.extract_strided_slice %423 {offsets = [0, 0], sizes = [8, 128], strides = [1, 1]} : vector<8x512xf32> to vector<8x128xf32>
    %425 = arith.negf %424 : vector<8x128xf32>
    %426 = math.exp %425 : vector<8x128xf32>
    %cst_105 = arith.constant 1.000000e+00 : f32
    %427 = vector.broadcast %cst_105 : f32 to vector<8x128xf32>
    %428 = arith.addf %427, %426 : vector<8x128xf32>
    %429 = arith.divf %427, %428 : vector<8x128xf32>
    %430 = vector.extract_strided_slice %423 {offsets = [0, 128], sizes = [8, 128], strides = [1, 1]} : vector<8x512xf32> to vector<8x128xf32>
    %431 = arith.negf %430 : vector<8x128xf32>
    %432 = math.exp %431 : vector<8x128xf32>
    %cst_106 = arith.constant 1.000000e+00 : f32
    %433 = vector.broadcast %cst_106 : f32 to vector<8x128xf32>
    %434 = arith.addf %433, %432 : vector<8x128xf32>
    %435 = arith.divf %433, %434 : vector<8x128xf32>
    %436 = vector.extract_strided_slice %423 {offsets = [0, 256], sizes = [8, 128], strides = [1, 1]} : vector<8x512xf32> to vector<8x128xf32>
    %437 = math.tanh %436 : vector<8x128xf32>
    %438 = vector.extract_strided_slice %423 {offsets = [0, 384], sizes = [8, 128], strides = [1, 1]} : vector<8x512xf32> to vector<8x128xf32>
    %439 = arith.negf %438 : vector<8x128xf32>
    %440 = math.exp %439 : vector<8x128xf32>
    %cst_107 = arith.constant 1.000000e+00 : f32
    %441 = vector.broadcast %cst_107 : f32 to vector<8x128xf32>
    %442 = arith.addf %441, %440 : vector<8x128xf32>
    %443 = arith.divf %441, %442 : vector<8x128xf32>
    %444 = arith.mulf %435, %383 : vector<8x128xf32>
    %445 = arith.mulf %429, %437 : vector<8x128xf32>
    %446 = arith.addf %444, %445 : vector<8x128xf32>
    %447 = math.tanh %446 : vector<8x128xf32>
    %448 = arith.mulf %443, %447 : vector<8x128xf32>
    %449 = arith.truncf %448 : vector<8x128xf32> to vector<8x128xbf16>
    %c0_108 = arith.constant 0 : index
    %c768 = arith.constant 768 : index
    %450 = vector.load %arg10[%c0_108, %c768] : memref<8x1024xbf16, #tpu.memory_space<vmem>>, vector<8x128xbf16>
    tpu.vector_store %arg10[%c0_108, %c768], %449 {strides = array<i32>} : memref<8x1024xbf16, #tpu.memory_space<vmem>>, vector<8x128xbf16>,
    %c0_109 = arith.constant 0 : index
    %c0_110 = arith.constant 0 : index
    %451 = vector.load %arg4[%c0_109, %c0_110] : memref<128x512xbf16, #tpu.memory_space<vmem>>, vector<128x512xbf16>
    %cst_111 = arith.constant dense<0.000000e+00> : vector<8x512xf32>
    %452 = tpu.matmul %449, %451, %cst_111 {dimension_numbers = #tpu.dot_dimension_numbers<[1], [0], [0], [1], [0, 0, 1, 1], [], []>} : vector<8x128xbf16>, vector<128x512xbf16>, vector<8x512xf32> -> vector<8x512xf32>
    %453 = arith.addf %452, %9 : vector<8x512xf32>
    %c56 = arith.constant 56 : index
    %c0_112 = arith.constant 0 : index
    %454 = vector.load %arg9[%c56, %c0_112] : memref<64x512xf32, #tpu.memory_space<vmem>>, vector<8x512xf32>
    %455 = arith.addf %454, %422 : vector<8x512xf32>
    %456 = vector.extract_strided_slice %455 {offsets = [0, 0], sizes = [8, 128], strides = [1, 1]} : vector<8x512xf32> to vector<8x128xf32>
    %457 = arith.negf %456 : vector<8x128xf32>
    %458 = math.exp %457 : vector<8x128xf32>
    %cst_113 = arith.constant 1.000000e+00 : f32
    %459 = vector.broadcast %cst_113 : f32 to vector<8x128xf32>
    %460 = arith.addf %459, %458 : vector<8x128xf32>
    %461 = arith.divf %459, %460 : vector<8x128xf32>
    %462 = vector.extract_strided_slice %455 {offsets = [0, 128], sizes = [8, 128], strides = [1, 1]} : vector<8x512xf32> to vector<8x128xf32>
    %463 = arith.negf %462 : vector<8x128xf32>
    %464 = math.exp %463 : vector<8x128xf32>
    %cst_114 = arith.constant 1.000000e+00 : f32
    %465 = vector.broadcast %cst_114 : f32 to vector<8x128xf32>
    %466 = arith.addf %465, %464 : vector<8x128xf32>
    %467 = arith.divf %465, %466 : vector<8x128xf32>
    %468 = vector.extract_strided_slice %455 {offsets = [0, 256], sizes = [8, 128], strides = [1, 1]} : vector<8x512xf32> to vector<8x128xf32>
    %469 = math.tanh %468 : vector<8x128xf32>
    %470 = vector.extract_strided_slice %455 {offsets = [0, 384], sizes = [8, 128], strides = [1, 1]} : vector<8x512xf32> to vector<8x128xf32>
    %471 = arith.negf %470 : vector<8x128xf32>
    %472 = math.exp %471 : vector<8x128xf32>
    %cst_115 = arith.constant 1.000000e+00 : f32
    %473 = vector.broadcast %cst_115 : f32 to vector<8x128xf32>
    %474 = arith.addf %473, %472 : vector<8x128xf32>
    %475 = arith.divf %473, %474 : vector<8x128xf32>
    %476 = arith.mulf %467, %415 : vector<8x128xf32>
    %477 = arith.mulf %461, %469 : vector<8x128xf32>
    %478 = arith.addf %476, %477 : vector<8x128xf32>
    %479 = math.tanh %478 : vector<8x128xf32>
    %480 = arith.mulf %475, %479 : vector<8x128xf32>
    %481 = arith.truncf %480 : vector<8x128xf32> to vector<8x128xbf16>
    %c0_116 = arith.constant 0 : index
    %c0_117 = arith.constant 0 : index
    %482 = vector.load %arg3[%c0_116, %c0_117] : memref<128x1024xbf16, #tpu.memory_space<vmem>>, vector<128x512xbf16>
    %cst_118 = arith.constant dense<0.000000e+00> : vector<8x512xf32>
    %483 = tpu.matmul %481, %482, %cst_118 {dimension_numbers = #tpu.dot_dimension_numbers<[1], [0], [0], [1], [0, 0, 1, 1], [], []>} : vector<8x128xbf16>, vector<128x512xbf16>, vector<8x512xf32> -> vector<8x512xf32>
    %484 = arith.addf %483, %453 : vector<8x512xf32>
    %485 = vector.extract_strided_slice %484 {offsets = [0, 0], sizes = [8, 128], strides = [1, 1]} : vector<8x512xf32> to vector<8x128xf32>
    %486 = arith.negf %485 : vector<8x128xf32>
    %487 = math.exp %486 : vector<8x128xf32>
    %cst_119 = arith.constant 1.000000e+00 : f32
    %488 = vector.broadcast %cst_119 : f32 to vector<8x128xf32>
    %489 = arith.addf %488, %487 : vector<8x128xf32>
    %490 = arith.divf %488, %489 : vector<8x128xf32>
    %491 = vector.extract_strided_slice %484 {offsets = [0, 128], sizes = [8, 128], strides = [1, 1]} : vector<8x512xf32> to vector<8x128xf32>
    %492 = arith.negf %491 : vector<8x128xf32>
    %493 = math.exp %492 : vector<8x128xf32>
    %cst_120 = arith.constant 1.000000e+00 : f32
    %494 = vector.broadcast %cst_120 : f32 to vector<8x128xf32>
    %495 = arith.addf %494, %493 : vector<8x128xf32>
    %496 = arith.divf %494, %495 : vector<8x128xf32>
    %497 = vector.extract_strided_slice %484 {offsets = [0, 256], sizes = [8, 128], strides = [1, 1]} : vector<8x512xf32> to vector<8x128xf32>
    %498 = math.tanh %497 : vector<8x128xf32>
    %499 = vector.extract_strided_slice %484 {offsets = [0, 384], sizes = [8, 128], strides = [1, 1]} : vector<8x512xf32> to vector<8x128xf32>
    %500 = arith.negf %499 : vector<8x128xf32>
    %501 = math.exp %500 : vector<8x128xf32>
    %cst_121 = arith.constant 1.000000e+00 : f32
    %502 = vector.broadcast %cst_121 : f32 to vector<8x128xf32>
    %503 = arith.addf %502, %501 : vector<8x128xf32>
    %504 = arith.divf %502, %503 : vector<8x128xf32>
    %505 = arith.mulf %496, %446 : vector<8x128xf32>
    %506 = arith.mulf %490, %498 : vector<8x128xf32>
    %507 = arith.addf %505, %506 : vector<8x128xf32>
    %508 = math.tanh %507 : vector<8x128xf32>
    %509 = arith.mulf %504, %508 : vector<8x128xf32>
    %510 = arith.truncf %509 : vector<8x128xf32> to vector<8x128xbf16>
    %c0_122 = arith.constant 0 : index
    %c896 = arith.constant 896 : index
    %511 = vector.load %arg10[%c0_122, %c896] : memref<8x1024xbf16, #tpu.memory_space<vmem>>, vector<8x128xbf16>
    tpu.vector_store %arg10[%c0_122, %c896], %510 {strides = array<i32>} : memref<8x1024xbf16, #tpu.memory_space<vmem>>, vector<8x128xbf16>,
    %c0_123 = arith.constant 0 : index
    %c0_124 = arith.constant 0 : index
    %512 = vector.load %arg10[%c0_123, %c0_124] : memref<8x1024xbf16, #tpu.memory_space<vmem>>, vector<8x1024xbf16>
    %c0_125 = arith.constant 0 : index
    %c0_126 = arith.constant 0 : index
    %513 = vector.load %arg6[%c0_125, %c0_126] : memref<1024x128xbf16, #tpu.memory_space<vmem>>, vector<1024x128xbf16>
    %cst_127 = arith.constant dense<0.000000e+00> : vector<8x128xf32>
    %514 = tpu.matmul %512, %513, %cst_127 {dimension_numbers = #tpu.dot_dimension_numbers<[1], [0], [0], [1], [0, 0, 1, 1], [], []>} : vector<8x1024xbf16>, vector<1024x128xbf16>, vector<8x128xf32> -> vector<8x128xf32>
    %c0_128 = arith.constant 0 : index
    %c0_129 = arith.constant 0 : index
    %515 = vector.load %arg7[%c0_128, %c0_129] : memref<1x128xf32, #tpu.memory_space<vmem>>, vector<1x128xf32>
    %516 = vector.broadcast %515 : vector<1x128xf32> to vector<8x128xf32>
    %517 = arith.addf %514, %516 : vector<8x128xf32>
    %c0_130 = arith.constant 0 : index
    %c0_131 = arith.constant 0 : index
    %518 = vector.load %arg8[%c0_130, %c0_131] : memref<8x128xf32, #tpu.memory_space<vmem>>, vector<8x128xf32>
    tpu.vector_store %arg8[%c0_130, %c0_131], %517 {strides = array<i32>} : memref<8x128xf32, #tpu.memory_space<vmem>>, vector<8x128xf32>,
    return
  }
}

</mosaic_0001>

<bundles_post_ra>
// kernel: tpu_custom_call.1
= control target key start
LH: loop header
LB: loop body
LE: loop exit
PB: predicated region body
PF: predicated region fallthrough
CT: control target
= control target key end

     0   :  { %13 = vsyncpa [#allocation5], 0  ;;  %s11315_s0 = inlined_call_operand.hbm [shape: bf16[64,128], index: 0, kind: input, shape index: {}]   ;;  %s11316_s1 = inlined_call_operand.hbm [shape: bf16[128,512], index: 1, kind: input, shape index: {}]   ;;  %s11317_s2 = inlined_call_operand.vmem [shape: f32[1,512], index: 2, kind: input, shape index: {}]   ;;  %s11318_s3 = inlined_call_operand.hbm [shape: bf16[128,1024], index: 3, kind: input, shape index: {}]   ;;  %s11319_s4 = inlined_call_operand.hbm [shape: bf16[128,512], index: 4, kind: input, shape index: {}]   ;;  %s11320_s5 = inlined_call_operand.vmem [shape: f32[1,512], index: 5, kind: input, shape index: {}]   ;;  %s11321_s6 = inlined_call_operand.hbm [shape: bf16[1024,128], index: 6, kind: input, shape index: {}]   ;;  %s11322_s7 = inlined_call_operand.vmem [shape: f32[1,128], index: 7, kind: input, shape index: {}]   ;;  %s11323_s8 = inlined_call_operand.hbm [shape: f32[8,128], index: 8, kind: output, shape index: {}]  }
   0x1   :  { %14 = vsyncpa [#allocation8], 0 }
   0x2   :  { %15 = vsyncpa [#allocation11], 0 }
   0x3   :  { %16 = vsyncpa [#allocation6], 0  ;;  %s9560_s27 = smov [#allocation7]   ;;  %s9420_s9 = scalar_lea.hbm %s11316_s1, 4096 }
   0x4   :  { %s34_s28 = sshll.u32 %s9560_s27, 4  ;;  %p9421_p0 = scmp.ne.s32.totalorder %s11316_s1, %s9420_s9  ;;  %s35_s28 = int_to_ptr.vmem [resolvable:$true] %s34_s28 }
   0x5   :  { %p9424_p1 = scmp.lt.u32.totalorder %s9420_s9, %s11316_s1 }
   0x7   :  { %p9426_p2 = pnand %p9424_p1, %p9421_p0 }
   0x9   :  { %9429 = shalt.err (!%p9426_p2)
}
   0xa   :  { %s9430_s14 = scalar_lea.vmem %s35_s28, 4096  ;;  %p9435_p4 = scmp.lt.s32.totalorder %s35_s28, %s35_s28 }
   0xb   :  { %p9431_p3 = scmp.ne.s32.totalorder %s35_s28, %s9430_s14  ;;  %p9436_p5 = scmp.lt.s32.totalorder %s9430_s14, %s9430_s14 }
   0xd   :  { %p9437_p6 = por %p9436_p5, %p9435_p4 }
   0xf   :  { %p9438_p7 = pnand %p9437_p6, %p9431_p3 }
  0x11   :  { %9441 = shalt.err (!%p9438_p7)
}
  0x12   :  { %s9561_s15 = smov 256   ;;  %s9562_s16 = smov 16  }
  0x13   :  { %40 = dma.hbm_to_vmem [thread:$0]  %s11316_s1, 4096, %s35_s28, [#allocation8], %s9561_s15, %s9561_s15, %s9562_s16  }
  0x14   :  { %s9563_s19 = smov [#allocation10]   ;;  %s9564_s21 = smov [#allocation4]  }
  0x15   :  { %s60_s20 = sshll.u32 %s9563_s19, 4  ;;  %s22_s22 = sshll.u32 %s9564_s21, 4  ;;  %s61_s20 = int_to_ptr.vmem [resolvable:$true] %s60_s20  ;;  %s23_s22 = int_to_ptr.vmem [resolvable:$true] %s22_s22 }
  0x16   :  { %s9442_s25 = scalar_lea.hbm %s11319_s4, 4096 }
  0x17   :  { %p9443_p8 = scmp.ne.s32.totalorder %s11319_s4, %s9442_s25  ;;  %p9446_p9 = scmp.lt.u32.totalorder %s9442_s25, %s11319_s4 }
  0x19   :  { %p9448_p10 = pnand %p9446_p9, %p9443_p8 }
  0x1b   :  { %9451 = shalt.err (!%p9448_p10)
}
  0x1c   :  { %s9452_s1 = scalar_lea.vmem %s61_s20, 4096  ;;  %p9457_p12 = scmp.lt.s32.totalorder %s61_s20, %s61_s20 }
  0x1d   :  { %p9453_p11 = scmp.ne.s32.totalorder %s61_s20, %s9452_s1  ;;  %p9458_p13 = scmp.lt.s32.totalorder %s9452_s1, %s9452_s1 }
  0x1f   :  { %p9459_p0 = por %p9458_p13, %p9457_p12 }
  0x21   :  { %p9460_p1 = pnand %p9459_p0, %p9453_p11 }
  0x23   :  { %9463 = shalt.err (!%p9460_p1)
}
  0x24   :  { %66 = dma.hbm_to_vmem [thread:$0]  %s11319_s4, 4096, %s61_s20, [#allocation11], %s9561_s15, %s9561_s15, %s9562_s16  }
  0x25   :  { %s9464_s12 = scalar_lea.hbm %s11315_s0, 512 }
  0x26   :  { %p9465_p2 = scmp.ne.s32.totalorder %s11315_s0, %s9464_s12  ;;  %p9468_p3 = scmp.lt.u32.totalorder %s9464_s12, %s11315_s0 }
  0x28   :  { %p9470_p4 = pnand %p9468_p3, %p9465_p2 }
  0x2a   :  { %9473 = shalt.err (!%p9470_p4)
}
  0x2b   :  { %s9474_s19 = scalar_lea.vmem %s23_s22, 512  ;;  %p9479_p6 = scmp.lt.s32.totalorder %s23_s22, %s23_s22 }
  0x2c   :  { %p9475_p5 = scmp.ne.s32.totalorder %s23_s22, %s9474_s19  ;;  %p9480_p7 = scmp.lt.s32.totalorder %s9474_s19, %s9474_s19 }
  0x2e   :  { %p9481_p8 = por %p9480_p7, %p9479_p6 }
  0x30   :  { %p9482_p9 = pnand %p9481_p8, %p9475_p5 }
  0x32   :  { %9485 = shalt.err (!%p9482_p9)
}
  0x33   :  { %s9565_s4 = smov 64   ;;  %s9566_s15 = smov 4  }
  0x34   :  { %28 = dma.hbm_to_vmem [thread:$0]  %s11315_s0, 512, %s23_s22, [#allocation5], %s9565_s4, %s9565_s4, %s9566_s15  }
  0x35   :  { %s9567_s21 = smov [#allocation9]   ;;  %s9486_s26 = scalar_lea.hbm %s11318_s3, 8192 }
  0x36   :  { %s48_s23 = sshll.u32 %s9567_s21, 4  ;;  %p9487_p10 = scmp.ne.s32.totalorder %s11318_s3, %s9486_s26  ;;  %s49_s23 = int_to_ptr.vmem [resolvable:$true] %s48_s23 }
  0x37   :  { %p9490_p11 = scmp.lt.u32.totalorder %s9486_s26, %s11318_s3 }
  0x39   :  { %p9492_p12 = pnand %p9490_p11, %p9487_p10 }
  0x3b   :  { %9495 = shalt.err (!%p9492_p12)
}
  0x3c   :  { %s9496_s28 = scalar_lea.vmem %s49_s23, 8192  ;;  %p9501_p0 = scmp.lt.s32.totalorder %s49_s23, %s49_s23 }
  0x3d   :  { %p9497_p13 = scmp.ne.s32.totalorder %s49_s23, %s9496_s28  ;;  %p9502_p1 = scmp.lt.s32.totalorder %s9496_s28, %s9496_s28 }
  0x3f   :  { %p9503_p2 = por %p9502_p1, %p9501_p0 }
  0x41   :  { %p9504_p3 = pnand %p9503_p2, %p9497_p13 }
  0x43   :  { %9507 = shalt.err (!%p9504_p3)
}
  0x44   :  { %s9568_s0 = smov 512   ;;  %s9569_s22 = smov 32  }
  0x45   :  { %54 = dma.hbm_to_vmem [thread:$0]  %s11318_s3, 8192, %s49_s23, [#allocation8], %s9568_s0, %s9568_s0, %s9569_s22  }
  0x46   :  { %s9570_s11 = smov [#allocation12]   ;;  %s9508_s17 = scalar_lea.hbm %s11321_s6, 8192 }
  0x47   :  { %s74_s12 = sshll.u32 %s9570_s11, 4  ;;  %p9509_p4 = scmp.ne.s32.totalorder %s11321_s6, %s9508_s17  ;;  %s75_s12 = int_to_ptr.vmem [resolvable:$true] %s74_s12 }
  0x48   :  { %p9512_p5 = scmp.lt.u32.totalorder %s9508_s17, %s11321_s6 }
  0x4a   :  { %p9514_p6 = pnand %p9512_p5, %p9509_p4 }
  0x4c   :  { %9517 = shalt.err (!%p9514_p6)
}
  0x4d   :  { %s9518_s21 = scalar_lea.vmem %s75_s12, 8192  ;;  %p9523_p8 = scmp.lt.s32.totalorder %s75_s12, %s75_s12 }
  0x4e   :  { %p9519_p7 = scmp.ne.s32.totalorder %s75_s12, %s9518_s21  ;;  %p9524_p9 = scmp.lt.s32.totalorder %s9518_s21, %s9518_s21 }
  0x50   :  { %p9525_p10 = por %p9524_p9, %p9523_p8 }
  0x52   :  { %p9526_p11 = pnand %p9525_p10, %p9519_p7 }
  0x54   :  { %9529 = shalt.err (!%p9526_p11)
}
  0x55   :  { %80 = dma.hbm_to_vmem [thread:$0]  %s11321_s6, 8192, %s75_s12, [#allocation11], %s9565_s4, %s9565_s4, %s9566_s15  }
  0x56   :  { %9552 = dma.done.wait [#allocation5], 512  }
  0x57   :  { %9553 = vsyncadd [#allocation5], 4294966784 }
  0x58   :  { %9554 = dma.done.wait [#allocation8], 12288  }
  0x59   :  { %9555 = vsyncadd [#allocation8], 4294955008 }
  0x5a   :  { %9556 = dma.done.wait [#allocation11], 12288  }
  0x5b   :  { %9557 = vsyncadd [#allocation11], 4294955008  ;;  %v11328_v0 = vmov 0   ;;  %v8848_v1 = vld [vmem:[#allocation7 + $0x4] ss:$16 sps:$4 sm:$0xff]   ;;  %v579_v36 = vld [vmem:[#allocation9 + $0x8] sm:$0xff] }
  0x5c   :  { %377 = vmatprep.mubr.bf16.mxu0 %v11328_v0  ;;  %450 = vmatprep.mubr.bf16.mxu1 %v11328_v0  ;;  %v8850_v2 = vld [vmem:[#allocation7] ss:$16 sps:$4 sm:$0xff]   ;;  %v8851_v3 = vld [vmem:[#allocation7 + $0x24] ss:$16 sps:$4 sm:$0xff]   ;;  %v8859_v6 = vld [vmem:[#allocation7 + $0xc] ss:$16 sps:$4 sm:$0xff]  }
  0x5d   :  { %345 = vmatprep.subr.bf16.mxu0 %v8848_v1  ;;  %v8853_v4 = vld [vmem:[#allocation7 + $0x20] ss:$16 sps:$4 sm:$0xff]   ;;  %v8854_v5 = vld [vmem:[#allocation7 + $0x44] ss:$16 sps:$4 sm:$0xff]   ;;  %v8862_v7 = vld [vmem:[#allocation7 + $0x8] ss:$16 sps:$4 sm:$0xff]   ;;  %418 = vmatprep.subr.bf16.mxu1 %v8859_v6 }
  0x5e   :  { %346 = vmatpush1.bf16.msra.mxu0 %v8850_v2  ;;  %v8856_v8 = vld [vmem:[#allocation7 + $0x40] ss:$16 sps:$4 sm:$0xff]   ;;  %v8857_v9 = vld [vmem:[#allocation7 + $0x64] ss:$16 sps:$4 sm:$0xff]   ;;  %419 = vmatpush1.bf16.msra.mxu1 %v8862_v7  ;;  %v8865_v10 = vld [vmem:[#allocation7 + $0x2c] ss:$16 sps:$4 sm:$0xff]  }
  0x5f   :  { %347 = vmatprep.subr.bf16.mxu0 %v8851_v3  ;;  %v8868_v11 = vld [vmem:[#allocation7 + $0x28] ss:$16 sps:$4 sm:$0xff]   ;;  %420 = vmatprep.subr.bf16.mxu1 %v8865_v10  ;;  %v8861_v12 = vld [vmem:[#allocation7 + $0x60] ss:$16 sps:$4 sm:$0xff]   ;;  %v8863_v13 = vld [vmem:[#allocation7 + $0x84] ss:$16 sps:$4 sm:$0xff]  }
  0x60   :  { %v8871_v14 = vld [vmem:[#allocation7 + $0x4c] ss:$16 sps:$4 sm:$0xff]   ;;  %v8874_v15 = vld [vmem:[#allocation7 + $0x48] ss:$16 sps:$4 sm:$0xff]   ;;  %v8867_v17 = vld [vmem:[#allocation7 + $0x80] ss:$16 sps:$4 sm:$0xff]  }
  0x61   :  { %v8877_v16 = vld [vmem:[#allocation7 + $0x6c] ss:$16 sps:$4 sm:$0xff]   ;;  %v8869_v18 = vld [vmem:[#allocation7 + $0xa4] ss:$16 sps:$4 sm:$0xff]   ;;  %v8880_v19 = vld [vmem:[#allocation7 + $0x68] ss:$16 sps:$4 sm:$0xff]  }
  0x62   :  { %348 = vmatpush1.bf16.msra.mxu0 %v8853_v4  ;;  %421 = vmatpush1.bf16.msra.mxu1 %v8868_v11  ;;  %v8883_v20 = vld [vmem:[#allocation7 + $0x8c] ss:$16 sps:$4 sm:$0xff]   ;;  %v8873_v21 = vld [vmem:[#allocation7 + $0xa0] ss:$16 sps:$4 sm:$0xff]   ;;  %v8875_v22 = vld [vmem:[#allocation7 + $0xc4] ss:$16 sps:$4 sm:$0xff]  }
  0x63   :  { %349 = vmatprep.subr.bf16.mxu0 %v8854_v5  ;;  %422 = vmatprep.subr.bf16.mxu1 %v8871_v14  ;;  %v8886_v23 = vld [vmem:[#allocation7 + $0x88] ss:$16 sps:$4 sm:$0xff]   ;;  %v8879_v24 = vld [vmem:[#allocation7 + $0xc0] ss:$16 sps:$4 sm:$0xff]   ;;  %v8888_v25 = vld [vmem:[#allocation7 + $0xac] ss:$16 sps:$4 sm:$0xff]  }
  0x64   :  { %v8881_v26 = vld [vmem:[#allocation7 + $0xe4] ss:$16 sps:$4 sm:$0xff]   ;;  %v8890_v27 = vld [vmem:[#allocation7 + $0xa8] ss:$16 sps:$4 sm:$0xff]   ;;  %v8891_v28 = vld [vmem:[#allocation7 + $0xcc] ss:$16 sps:$4 sm:$0xff]  }
  0x65   :  { %v8885_v29 = vld [vmem:[#allocation7 + $0xe0] ss:$16 sps:$4 sm:$0xff]   ;;  %v8893_v30 = vld [vmem:[#allocation7 + $0xc8] ss:$16 sps:$4 sm:$0xff]   ;;  %v8894_v31 = vld [vmem:[#allocation7 + $0xec] ss:$16 sps:$4 sm:$0xff]  }
  0x66   :  { %350 = vmatpush1.bf16.msra.mxu0 %v8856_v8  ;;  %423 = vmatpush1.bf16.msra.mxu1 %v8874_v15  ;;  %v8887_v32 = vld [vmem:[#allocation4] sm:$0xff]   ;;  %v8896_v33 = vld [vmem:[#allocation7 + $0xe8] ss:$16 sps:$4 sm:$0xff]   ;;  %v8898_v4 = vld [vmem:[#allocation4 + $0x10] sm:$0xff]  }
  0x67   :  { %351 = vmatprep.subr.bf16.mxu0 %v8857_v9  ;;  %424 = vmatprep.subr.bf16.mxu1 %v8877_v16  ;;  %v578_v34 = vld [vmem:[#allocation9] sm:$0xff]  ;;  %v583_v38 = vld [vmem:[#allocation9 + $0x28] sm:$0xff] }
  0x68   :  { %v582_v35 = vld [vmem:[#allocation9 + $0x20] sm:$0xff]  ;;  %v9692_v40 = vcombine.low %v579_v36, %v583_v38  ;;  %v9694_v41 = vcombine.high %v579_v36, %v583_v38  ;;  %v587_v44 = vld [vmem:[#allocation9 + $0x48] sm:$0xff] }
  0x69   :  { %v9688_v37 = vcombine.high %v578_v34, %v582_v35  ;;  %v9690_v39 = vcombine.low %v578_v34, %v582_v35  ;;  %v586_v42 = vld [vmem:[#allocation9 + $0x40] sm:$0xff]  ;;  %v591_v46 = vld [vmem:[#allocation9 + $0x68] sm:$0xff]  ;;  %v584_v34 = vld [vmem:[#allocation9 + $0x30] sm:$0xff] }
  0x6a   :  { %352 = vmatpush1.bf16.msra.mxu0 %v8861_v12  ;;  %425 = vmatpush1.bf16.msra.mxu1 %v8880_v19  ;;  %v590_v43 = vld [vmem:[#allocation9 + $0x60] sm:$0xff]  ;;  %v9704_v48 = vcombine.low %v587_v44, %v591_v46  ;;  %v9706_v49 = vcombine.high %v587_v44, %v591_v46  ;;  %v8897_v50 = vld [vmem:[#allocation4 + $0x8] sm:$0xff]   ;;  %v8899_v19 = vld [vmem:[#allocation4 + $0x18] sm:$0xff]  }
  0x6b   :  { %353 = vmatprep.subr.bf16.mxu0 %v8863_v13  ;;  %426 = vmatprep.subr.bf16.mxu1 %v8883_v20  ;;  %v9700_v45 = vcombine.high %v586_v42, %v590_v43  ;;  %v9702_v47 = vcombine.low %v586_v42, %v590_v43  ;;  %v594_v51 = vld [vmem:[#allocation9 + $0x80] sm:$0xff]  ;;  %v595_v53 = vld [vmem:[#allocation9 + $0x88] sm:$0xff]  ;;  %v581_v42 = vld [vmem:[#allocation9 + $0x18] sm:$0xff] }
  0x6c   :  { %v598_v52 = vld [vmem:[#allocation9 + $0xa0] sm:$0xff]  ;;  %v599_v55 = vld [vmem:[#allocation9 + $0xa8] sm:$0xff]  ;;  %v585_v43 = vld [vmem:[#allocation9 + $0x38] sm:$0xff] }
  0x6d   :  { %v9712_v54 = vcombine.high %v594_v51, %v598_v52  ;;  %v9714_v56 = vcombine.low %v594_v51, %v598_v52  ;;  %v9716_v57 = vcombine.low %v595_v53, %v599_v55  ;;  %v9718_v58 = vcombine.high %v595_v53, %v599_v55  ;;  %v602_v59 = vld [vmem:[#allocation9 + $0xc0] sm:$0xff]  ;;  %v603_v61 = vld [vmem:[#allocation9 + $0xc8] sm:$0xff] }
  0x6e   :  { %354 = vmatpush1.bf16.msra.mxu0 %v8867_v17  ;;  %427 = vmatpush1.bf16.msra.mxu1 %v8886_v23  ;;  %v606_v60 = vld [vmem:[#allocation9 + $0xe0] sm:$0xff]  ;;  %v607_v63 = vld [vmem:[#allocation9 + $0xe8] sm:$0xff]  ;;  %v9780_v46 = vcombine.low %v581_v42, %v585_v43  ;;  %v9794_v53 = vcombine.high %v581_v42, %v585_v43  ;;  %v141_v55 = vlaneseq }
  0x6f   :  { %355 = vmatprep.subr.bf16.mxu0 %v8869_v18  ;;  %428 = vmatprep.subr.bf16.mxu1 %v8888_v25  ;;  %v9726_v62 = vcombine.high %v602_v59, %v606_v60  ;;  %v9728_v1 = vcombine.low %v602_v59, %v606_v60  ;;  %v9730_v2 = vcombine.low %v603_v61, %v607_v63  ;;  %v610_v5 = vld [vmem:[#allocation9 + $0x100] sm:$0xff]  ;;  %v611_v7 = vld [vmem:[#allocation9 + $0x108] sm:$0xff] }
  0x70   :  { %v9732_v3 = vcombine.high %v603_v61, %v607_v63  ;;  %v614_v6 = vld [vmem:[#allocation9 + $0x120] sm:$0xff]  ;;  %v615_v9 = vld [vmem:[#allocation9 + $0x128] sm:$0xff]  ;;  %11529 = vst [vmem:[#allocation19_spill] sm:$0xff] %v9780_v46  ;;  %11531 = vst [vmem:[#allocation21_spill] sm:$0xff] %v9794_v53  ;;  %v9800_v59 = vshrl.u32 %v141_v55, 7 }
  0x71   :  { %v9738_v8 = vcombine.high %v610_v5, %v614_v6  ;;  %v9740_v10 = vcombine.low %v610_v5, %v614_v6  ;;  %v9742_v11 = vcombine.low %v611_v7, %v615_v9  ;;  %v9744_v12 = vcombine.high %v611_v7, %v615_v9  ;;  %v618_v13 = vld [vmem:[#allocation9 + $0x140] sm:$0xff]  ;;  %v619_v15 = vld [vmem:[#allocation9 + $0x148] sm:$0xff] }
  0x72   :  { %356 = vmatpush1.bf16.msra.mxu0 %v8873_v21  ;;  %429 = vmatpush1.bf16.msra.mxu1 %v8890_v27  ;;  %v622_v14 = vld [vmem:[#allocation9 + $0x160] sm:$0xff]  ;;  %v623_v18 = vld [vmem:[#allocation9 + $0x168] sm:$0xff]  ;;  %v11327_v60 = vsub.s32 0, %v9800_v59  ;;  %v11326_v63 = vsub.s32 1, %v9800_v59  ;;  %v11325_v6 = vsub.s32 3, %v9800_v59 }
  0x73   :  { %357 = vmatprep.subr.bf16.mxu0 %v8875_v22  ;;  %430 = vmatprep.subr.bf16.mxu1 %v8891_v28  ;;  %v9752_v16 = vcombine.low %v618_v13, %v622_v14  ;;  %v9754_v17 = vcombine.high %v618_v13, %v622_v14  ;;  %v626_v20 = vld [vmem:[#allocation9 + $0x180] sm:$0xff]  ;;  %v9756_v21 = vcombine.low %v619_v15, %v623_v18  ;;  %v631_v25 = vld [vmem:[#allocation9 + $0x1a8] sm:$0xff] }
  0x74   :  { %v9758_v22 = vcombine.high %v619_v15, %v623_v18  ;;  %v630_v23 = vld [vmem:[#allocation9 + $0x1a0] sm:$0xff] }
  0x75   :  { %v634_v28 = vld [vmem:[#allocation9 + $0x1c0] sm:$0xff] }
  0x76   :  { %358 = vmatpush1.bf16.msra.mxu0 %v8879_v24  ;;  %431 = vmatpush1.bf16.msra.mxu1 %v8893_v30  ;;  %v627_v24 = vld [vmem:[#allocation9 + $0x188] sm:$0xff]  ;;  %v139_v61 = vld [vmem:[%s11317_s2] sm:$0xf] }
  0x77   :  { %359 = vmatprep.subr.bf16.mxu0 %v8881_v26  ;;  %432 = vmatprep.subr.bf16.mxu1 %v8894_v31  ;;  %v9761_v26 = vcombine.high %v626_v20, %v630_v23  ;;  %v9763_v27 = vcombine.high %v627_v24, %v631_v25  ;;  %v635_v30 = vld [vmem:[#allocation9 + $0x1c8] sm:$0xff]  ;;  %v9767_v31 = vcombine.low %v626_v20, %v630_v23 }
  0x78   :  { %v9770_v35 = vcombine.low %v627_v24, %v631_v25  ;;  %v9813_v5 = vrot.slane %v139_v61, %v11326_v63  ;;  %v9824_v20 = vrot.slane %v139_v61, %v11325_v6  ;;  %v11324_v24 = vsub.s32 2, %v9800_v59 }
  0x7a   :  { %360 = vmatpush1.bf16.msra.mxu0 %v8885_v29  ;;  %433 = vmatpush1.bf16.msra.mxu1 %v8896_v33  ;;  %v638_v29 = vld [vmem:[#allocation9 + $0x1e0] sm:$0xff]  ;;  %v580_v33 = vld [vmem:[#allocation9 + $0x10] sm:$0xff]  ;;  %11533 = vst [vmem:[#allocation23_spill] sm:$0xff] %v9813_v5 }
  0x7b   :  { %962 = vmatprep.subr.bf16.mxu0 %v9688_v37  ;;  %1003 = vmatprep.subr.bf16.mxu1 %v9694_v41  ;;  %v9772_v36 = vcombine.high %v634_v28, %v638_v29  ;;  %v9774_v38 = vcombine.low %v580_v33, %v584_v34  ;;  %v9791_v52 = vcombine.high %v580_v33, %v584_v34 }
  0x7d   :  { %378 = vmatmul.mubr.bf16.vlgmr.msra.gmra.mrb[0].mxu0 %v8887_v32  ;;  %451 = vmatmul.mubr.bf16.vlgmr.msra.gmra.mrb[0].mxu1 %v8887_v32  ;;  %v639_v32 = vld [vmem:[#allocation9 + $0x1e8] sm:$0xff]  ;;  %11528 = vst [vmem:[#allocation18_spill] sm:$0xff] %v9774_v38  ;;  %11530 = vst [vmem:[#allocation20_spill] sm:$0xff] %v9791_v52 }
  0x7e   :  { %387 = vmatprep.mubr.bf16.mxu0 %v11328_v0  ;;  %460 = vmatprep.mubr.bf16.mxu1 %v11328_v0  ;;  %v9778_v44 = vcombine.high %v635_v30, %v639_v32  ;;  %v9789_v51 = vcombine.low %v635_v30, %v639_v32  ;;  %v9832_v32 = vrot.slane %v139_v61, %v11324_v24 }
  0x7f   :  { %963 = vmatpush1.bf16.msra.mxu0 %v9690_v39  ;;  %1004 = vmatpush1.bf16.msra.mxu1 %v9692_v40 }
  0x80   :  { %964 = vmatprep.subr.bf16.mxu0 %v9700_v45  ;;  %1005 = vmatprep.subr.bf16.mxu1 %v9706_v49  ;;  %11534 = vst [vmem:[#allocation24_spill] sm:$0xff] %v9832_v32 }
  0x83   :  { %965 = vmatpush1.bf16.msra.mxu0 %v9702_v47  ;;  %1006 = vmatpush1.bf16.msra.mxu1 %v9704_v48 }
  0x84   :  { %966 = vmatprep.subr.bf16.mxu0 %v9712_v54  ;;  %1007 = vmatprep.subr.bf16.mxu1 %v9718_v58 }
  0x85   :  { %388 = vmatmul.mubr.bf16.gmra.mrb[4].mxu0 %v8897_v50  ;;  %461 = vmatmul.mubr.bf16.gmra.mrb[4].mxu1 %v8897_v50  ;;  %v9784_v50 = vcombine.low %v634_v28, %v638_v29 }
  0x86   :  { %397 = vmatprep.mubr.bf16.mxu0 %v11328_v0  ;;  %470 = vmatprep.mubr.bf16.mxu1 %v11328_v0 }
  0x87   :  { %967 = vmatpush1.bf16.msra.mxu0 %v9714_v56  ;;  %1008 = vmatpush1.bf16.msra.mxu1 %v9716_v57 }
  0x88   :  { %968 = vmatprep.subr.bf16.mxu0 %v9726_v62  ;;  %1009 = vmatprep.subr.bf16.mxu1 %v9732_v3 }
  0x8b   :  { %969 = vmatpush1.bf16.msra.mxu0 %v9728_v1  ;;  %1010 = vmatpush1.bf16.msra.mxu1 %v9730_v2 }
  0x8c   :  { %970 = vmatprep.subr.bf16.mxu0 %v9738_v8  ;;  %1011 = vmatprep.subr.bf16.mxu1 %v9744_v12 }
  0x8d   :  { %398 = vmatmul.mubr.bf16.gmra.mrb[8].mxu0 %v8898_v4  ;;  %471 = vmatmul.mubr.bf16.gmra.mrb[8].mxu1 %v8898_v4  ;;  %v9809_v4 = vrot.slane %v139_v61, %v11327_v60  ;;  %v608_v60 = vld [vmem:[#allocation9 + $0xf0] sm:$0xff] }
  0x8e   :  { %407 = vmatprep.mubr.bf16.mxu0 %v11328_v0  ;;  %480 = vmatprep.mubr.bf16.mxu1 %v11328_v0 }
  0x8f   :  { %971 = vmatpush1.bf16.msra.mxu0 %v9740_v10  ;;  %1012 = vmatpush1.bf16.msra.mxu1 %v9742_v11  ;;  %11532 = vst [vmem:[#allocation22_spill] sm:$0xff] %v9809_v4 }
  0x90   :  { %972 = vmatprep.subr.bf16.mxu0 %v9754_v17  ;;  %1013 = vmatprep.subr.bf16.mxu1 %v9758_v22 }
  0x93   :  { %973 = vmatpush1.bf16.msra.mxu0 %v9752_v16  ;;  %1014 = vmatpush1.bf16.msra.mxu1 %v9756_v21 }
  0x94   :  { %974 = vmatprep.subr.bf16.mxu0 %v9761_v26  ;;  %1015 = vmatprep.subr.bf16.mxu1 %v9763_v27 }
  0x95   :  { %408 = vmatmul.mubr.bf16.gmra.mrb[12].mxu0 %v8899_v19  ;;  %481 = vmatmul.mubr.bf16.gmra.mrb[12].mxu1 %v8899_v19 }
  0x96   :  { %994 = vmatprep.mubr.bf16.mxu0 %v11328_v0  ;;  %1035 = vmatprep.mubr.bf16.mxu1 %v11328_v0  ;;  %v605_v0 = vld [vmem:[#allocation9 + $0xd8] sm:$0xff] }
  0x97   :  { %975 = vmatpush1.bf16.msra.mxu0 %v9767_v31  ;;  %1016 = vmatpush1.bf16.msra.mxu1 %v9770_v35 }
  0x98   :  { %976 = vmatprep.subr.bf16.mxu0 %v9772_v36  ;;  %1017 = vmatprep.subr.bf16.mxu1 %v9778_v44 }
  0x9b   :  { %977 = vmatpush1.bf16.msra.mxu0 %v9784_v50  ;;  %1018 = vmatpush1.bf16.msra.mxu1 %v9789_v51 }
  0x9c   :  { %1044 = vmatprep.subr.bf16.mxu0 %v9791_v52  ;;  %1085 = vmatprep.subr.bf16.mxu1 %v9794_v53  ;;  %v609_v53 = vld [vmem:[#allocation9 + $0xf8] sm:$0xff]  ;;  %v11541_v52 = vmov 0  }
 0x150   :  { %v379_v7 = vpop.f32.mrb[0].mxu0  ;;  %v452_v25 = vpop.f32.mrb[0].mxu1 }
 0x151   :  { %v380_v9 = vadd.f32 %v379_v7, %v9809_v4  ;;  %v381_v13 = vpop.f32.mrb[1].mxu0  ;;  %v454_v28 = vpop.f32.mrb[1].mxu1  ;;  %v453_v42 = vadd.f32 %v452_v25, %v9832_v32 }
 0x152   :  { %v382_v14 = vadd.f32 %v381_v13, %v9813_v5  ;;  %v9818_v15 = vpop.f32.mrb[2].mxu0  ;;  %v455_v29 = vadd.f32 %v454_v28, %v9824_v20  ;;  %v9828_v30 = vpop.f32.mrb[2].mxu1 }
 0x153   :  { %v7838_v18 = vmul.f32 -1.442695, %v380_v9  ;;  %v9820_v19 = vpop.f32.mrb[3].mxu0  ;;  %v9834_v33 = vpop.f32.mrb[3].mxu1 }
 0x154   :  { %v7839_v23 = vmul.f32 -1.442695, %v382_v14  ;;  %v7840_v34 = vmul.f32 -1.442695, %v455_v29  ;;  %v588_v29 = vld [vmem:[#allocation9 + $0x50] sm:$0xff] }
 0x155   :  { %9164 = vpow2.f32 %v7838_v18 }
 0x156   :  { %9166 = vpow2.f32 %v7839_v23 }
 0x157   :  { %9168 = vpow2.f32 %v7840_v34 }
 0x158   :  { %9170 = vtanh.f32 %v453_v42  ;;  %v589_v42 = vld [vmem:[#allocation9 + $0x58] sm:$0xff] }
 0x15f   :  { %v9165_v43 = vpop.eup %9164 }
 0x160   :  { %v9167_v55 = vpop.eup %9166  ;;  %v556_v7 = vadd.f32 1.0, %v9165_v43  ;;  %v592_v43 = vld [vmem:[#allocation9 + $0x70] sm:$0xff] }
 0x161   :  { %v562_v9 = vadd.f32 1.0, %v9167_v55  ;;  %v9169_v13 = vpop.eup %9168  ;;  %v593_v55 = vld [vmem:[#allocation9 + $0x78] sm:$0xff]  ;;  %v9842_v63 = vcombine.high %v588_v29, %v592_v43 }
 0x162   :  { %9172 = vrcp.f32 %v556_v7  ;;  %v9171_v14 = vpop.eup %9170  ;;  %v569_v23 = vadd.f32 1.0, %v9169_v13  ;;  %v9844_v13 = vcombine.high %v589_v42, %v593_v55 }
 0x163   :  { %9174 = vrcp.f32 %v562_v9  ;;  %11535 = vst [vmem:[#allocation25_spill] sm:$0xff] %v9842_v63 }
 0x164   :  { %9176 = vrcp.f32 %v569_v23  ;;  %11536 = vst [vmem:[#allocation26_spill] sm:$0xff] %v9844_v13  ;;  %v9850_v23 = vcombine.low %v588_v29, %v592_v43 }
 0x166   :  { %11537 = vst [vmem:[#allocation27_spill] sm:$0xff] %v9850_v23 }
 0x16c   :  { %v9173_v18 = vpop.eup %9172 }
 0x16d   :  { %v9175_v28 = vpop.eup %9174  ;;  %v573_v61 = vmul.f32 %v9173_v18, %v9171_v14  ;;  %v596_v14 = vld [vmem:[#allocation9 + $0x90] sm:$0xff] }
 0x16e   :  { %v572_v24 = vmul.f32 0.0, %v9175_v28  ;;  %v9177_v25 = vpop.eup %9176  ;;  %v600_v18 = vld [vmem:[#allocation9 + $0xb0] sm:$0xff]  ;;  %v601_v28 = vld [vmem:[#allocation9 + $0xb8] sm:$0xff] }
 0x16f   :  { %v9864_v29 = vcombine.low %v596_v14, %v600_v18 }
 0x170   :  { %v9837_v6 = vadd.f32 %v573_v61, %v572_v24  ;;  %v597_v24 = vld [vmem:[#allocation9 + $0x98] sm:$0xff]  ;;  %v9852_v61 = vcombine.low %v589_v42, %v593_v55  ;;  %v9872_v55 = vcombine.high %v605_v0, %v609_v53 }
 0x171   :  { %11542 = vst [vmem:[#allocation31_spill] sm:$0xff] %v9864_v29  ;;  %v9866_v43 = vcombine.low %v597_v24, %v601_v28 }
 0x172   :  { %9178 = vtanh.f32 %v9837_v6  ;;  %11538 = vst [vmem:[#allocation28_spill] sm:$0xff] %v9852_v61  ;;  %11545 = vst [vmem:[#allocation34_spill] sm:$0xff] %v9872_v55 }
 0x173   :  { %11543 = vst [vmem:[#allocation32_spill] sm:$0xff] %v9866_v43 }
 0x17c   :  { %v9179_v34 = vpop.eup %9178 }
 0x17d   :  { %v576_v7 = vmul.f32 %v9179_v34, %v9177_v25  ;;  %v9856_v25 = vcombine.high %v596_v14, %v600_v18  ;;  %v9858_v34 = vcombine.high %v597_v24, %v601_v28  ;;  %v9878_v18 = vcombine.low %v605_v0, %v609_v53 }
 0x17f   :  { %v9840_v9 = vpack.c.bf16 %v576_v7, %v576_v7  ;;  %11539 = vst [vmem:[#allocation29_spill] sm:$0xff] %v9856_v25  ;;  %11540 = vst [vmem:[#allocation30_spill] sm:$0xff] %v9858_v34  ;;  %v604_v7 = vld [vmem:[#allocation9 + $0xd0] sm:$0xff] }
 0x180   :  { %v9870_v42 = vcombine.high %v604_v7, %v608_v60  ;;  %v9876_v14 = vcombine.low %v604_v7, %v608_v60  ;;  %11547 = vst [vmem:[#allocation36_spill] sm:$0xff] %v9878_v18 }
 0x181   :  { %995 = vmatmul.mubr.bf16.vlgmr.msra.gmra.mrb[16].mxu0 %v9840_v9  ;;  %1036 = vmatmul.mubr.bf16.vlgmr.msra.gmra.mrb[16].mxu1 %v9840_v9 }
 0x182   :  { %1045 = vmatpush1.bf16.msra.mxu0 %v9774_v38  ;;  %1086 = vmatpush1.bf16.msra.mxu1 %v9780_v46  ;;  %11544 = vst [vmem:[#allocation33_spill] sm:$0xff] %v9870_v42  ;;  %v613_v46 = vld [vmem:[#allocation9 + $0x118] sm:$0xff]  ;;  %11546 = vst [vmem:[#allocation35_spill] sm:$0xff] %v9876_v14 }
 0x183   :  { %1046 = vmatprep.subr.bf16.mxu0 %v9842_v63  ;;  %1087 = vmatprep.subr.bf16.mxu1 %v9844_v13  ;;  %v612_v13 = vld [vmem:[#allocation9 + $0x110] sm:$0xff]  ;;  %v617_v38 = vld [vmem:[#allocation9 + $0x138] sm:$0xff] }
 0x184   :  { %1076 = vmatprep.mubr.bf16.mxu0 %v11541_v52  ;;  %1117 = vmatprep.mubr.bf16.mxu1 %v11541_v52  ;;  %v616_v63 = vld [vmem:[#allocation9 + $0x130] sm:$0xff]  ;;  %v9884_v28 = vcombine.high %v613_v46, %v617_v38  ;;  %v9890_v0 = vcombine.low %v613_v46, %v617_v38 }
 0x185   :  { %v9882_v24 = vcombine.high %v612_v13, %v616_v63  ;;  %v9888_v60 = vcombine.low %v612_v13, %v616_v63 }
 0x186   :  { %1047 = vmatpush1.bf16.msra.mxu0 %v9850_v23  ;;  %1088 = vmatpush1.bf16.msra.mxu1 %v9852_v61  ;;  %11549 = vst [vmem:[#allocation38_spill] sm:$0xff] %v9884_v28  ;;  %v621_v61 = vld [vmem:[#allocation9 + $0x158] sm:$0xff] }
 0x187   :  { %1048 = vmatprep.subr.bf16.mxu0 %v9856_v25  ;;  %1089 = vmatprep.subr.bf16.mxu1 %v9858_v34  ;;  %11548 = vst [vmem:[#allocation37_spill] sm:$0xff] %v9882_v24  ;;  %v620_v34 = vld [vmem:[#allocation9 + $0x150] sm:$0xff]  ;;  %v625_v23 = vld [vmem:[#allocation9 + $0x178] sm:$0xff] }
 0x188   :  { %v624_v25 = vld [vmem:[#allocation9 + $0x170] sm:$0xff]  ;;  %v9896_v7 = vcombine.high %v621_v61, %v625_v23  ;;  %v9902_v38 = vcombine.low %v621_v61, %v625_v23 }
 0x189   :  { %v9894_v53 = vcombine.high %v620_v34, %v624_v25  ;;  %v9900_v63 = vcombine.low %v620_v34, %v624_v25 }
 0x18a   :  { %1049 = vmatpush1.bf16.msra.mxu0 %v9864_v29  ;;  %1090 = vmatpush1.bf16.msra.mxu1 %v9866_v43  ;;  %11550 = vst [vmem:[#allocation39_spill] sm:$0xff] %v9896_v7  ;;  %v629_v43 = vld [vmem:[#allocation9 + $0x198] sm:$0xff] }
 0x18b   :  { %1050 = vmatprep.subr.bf16.mxu0 %v9870_v42  ;;  %1091 = vmatprep.subr.bf16.mxu1 %v9872_v55  ;;  %v628_v55 = vld [vmem:[#allocation9 + $0x190] sm:$0xff]  ;;  %v633_v29 = vld [vmem:[#allocation9 + $0x1b8] sm:$0xff]  ;;  %11551 = vst [vmem:[#allocation40_spill] sm:$0xff] %v9900_v63 }
 0x18c   :  { %v632_v42 = vld [vmem:[#allocation9 + $0x1b0] sm:$0xff]  ;;  %v9908_v13 = vcombine.high %v629_v43, %v633_v29  ;;  %v9914_v23 = vcombine.low %v629_v43, %v633_v29  ;;  %v9936_v29 = vpop.f32.mrb[4].mxu0 }
 0x18d   :  { %v9906_v46 = vcombine.high %v628_v55, %v632_v42  ;;  %v9912_v25 = vcombine.low %v628_v55, %v632_v42  ;;  %11560 = vst [vmem:[#allocation49_spill] sm:$0xff] %v9936_v29  ;;  %v9938_v43 = vpop.f32.mrb[5].mxu0  ;;  %v9940_v42 = vpop.f32.mrb[4].mxu1 }
 0x18e   :  { %1051 = vmatpush1.bf16.msra.mxu0 %v9876_v14  ;;  %1092 = vmatpush1.bf16.msra.mxu1 %v9878_v18  ;;  %11553 = vst [vmem:[#allocation42_spill] sm:$0xff] %v9908_v13  ;;  %v637_v18 = vld [vmem:[#allocation9 + $0x1d8] sm:$0xff]  ;;  %11555 = vst [vmem:[#allocation44_spill] sm:$0xff] %v9914_v23  ;;  %v9942_v55 = vpop.f32.mrb[6].mxu0 }
 0x18f   :  { %1052 = vmatprep.subr.bf16.mxu0 %v9882_v24  ;;  %1093 = vmatprep.subr.bf16.mxu1 %v9884_v28  ;;  %11552 = vst [vmem:[#allocation41_spill] sm:$0xff] %v9906_v46  ;;  %v636_v28 = vld [vmem:[#allocation9 + $0x1d0] sm:$0xff]  ;;  %v641_v14 = vld [vmem:[#allocation9 + $0x1f8] sm:$0xff]  ;;  %11554 = vst [vmem:[#allocation43_spill] sm:$0xff] %v9912_v25 }
 0x190   :  { %v640_v24 = vld [vmem:[#allocation9 + $0x1f0] sm:$0xff]  ;;  %v9920_v34 = vcombine.high %v637_v18, %v641_v14  ;;  %11561 = vst [vmem:[#allocation50_spill] sm:$0xff] %v9938_v43  ;;  %11562 = vst [vmem:[#allocation51_spill] sm:$0xff] %v9940_v42 }
 0x191   :  { %v9918_v61 = vcombine.high %v636_v28, %v640_v24  ;;  %11563 = vst [vmem:[#allocation52_spill] sm:$0xff] %v9942_v55 }
 0x192   :  { %1053 = vmatpush1.bf16.msra.mxu0 %v9888_v60  ;;  %1094 = vmatpush1.bf16.msra.mxu1 %v9890_v0  ;;  %11557 = vst [vmem:[#allocation46_spill] sm:$0xff] %v9920_v34 }
 0x193   :  { %1054 = vmatprep.subr.bf16.mxu0 %v9894_v53  ;;  %1095 = vmatprep.subr.bf16.mxu1 %v9896_v7  ;;  %11556 = vst [vmem:[#allocation45_spill] sm:$0xff] %v9918_v61  ;;  %v9924_v7 = vcombine.low %v636_v28, %v640_v24 }
 0x195   :  { %11558 = vst [vmem:[#allocation47_spill] sm:$0xff] %v9924_v7 }
 0x196   :  { %1055 = vmatpush1.bf16.msra.mxu0 %v9900_v63  ;;  %1096 = vmatpush1.bf16.msra.mxu1 %v9902_v38  ;;  %v9926_v63 = vcombine.low %v637_v18, %v641_v14  ;;  %v9944_v14 = vpop.f32.mrb[5].mxu1  ;;  %v9946_v18 = vpop.f32.mrb[7].mxu0 }
 0x197   :  { %1056 = vmatprep.subr.bf16.mxu0 %v9906_v46  ;;  %1097 = vmatprep.subr.bf16.mxu1 %v9908_v13  ;;  %11564 = vst [vmem:[#allocation53_spill] sm:$0xff] %v9944_v14  ;;  %11565 = vst [vmem:[#allocation54_spill] sm:$0xff] %v9946_v18  ;;  %v9948_v24 = vpop.f32.mrb[6].mxu1 }
 0x198   :  { %11559 = vst [vmem:[#allocation48_spill] sm:$0xff] %v9926_v63  ;;  %11566 = vst [vmem:[#allocation55_spill] sm:$0xff] %v9948_v24  ;;  %v9950_v28 = vpop.f32.mrb[7].mxu1 }
 0x199   :  { %11567 = vst [vmem:[#allocation56_spill] sm:$0xff] %v9950_v28 }
 0x19a   :  { %1057 = vmatpush1.bf16.msra.mxu0 %v9912_v25  ;;  %1098 = vmatpush1.bf16.msra.mxu1 %v9914_v23 }
 0x19b   :  { %1058 = vmatprep.subr.bf16.mxu0 %v9918_v61  ;;  %1099 = vmatprep.subr.bf16.mxu1 %v9920_v34 }
 0x19e   :  { %1059 = vmatpush1.bf16.msra.mxu0 %v9924_v7  ;;  %1100 = vmatpush1.bf16.msra.mxu1 %v9926_v63  ;;  %v9956_v7 = vpop.f32.mrb[8].mxu1 }
 0x19f   :  { %11570 = vst [vmem:[#allocation59_spill] sm:$0xff] %v9956_v7  ;;  %v9960_v43 = vpop.f32.mrb[9].mxu1 }
 0x1a0   :  { %11572 = vst [vmem:[#allocation61_spill] sm:$0xff] %v9960_v43  ;;  %v9964_v55 = vpop.f32.mrb[10].mxu1 }
 0x1a1   :  { %1077 = vmatmul.mubr.bf16.vlgmr.msra.gmra.mrb[20].mxu0 %v9840_v9  ;;  %1118 = vmatmul.mubr.bf16.vlgmr.msra.gmra.mrb[20].mxu1 %v9840_v9  ;;  %v9952_v9 = vpop.f32.mrb[8].mxu0  ;;  %11574 = vst [vmem:[#allocation63_spill] sm:$0xff] %v9964_v55  ;;  %v9966_v14 = vpop.f32.mrb[11].mxu1  ;;  %v9986_v55 = vld [vmem:[#allocation10 + $0xc] ss:$16 sps:$4 sm:$0xff]  }
 0x1a2   :  { %1380 = vmatprep.mubr.bf16.mxu0 %v11541_v52  ;;  %1421 = vmatprep.mubr.bf16.mxu1 %v11541_v52  ;;  %11568 = vst [vmem:[#allocation57_spill] sm:$0xff] %v9952_v9  ;;  %v9954_v63 = vpop.f32.mrb[9].mxu0  ;;  %11575 = vst [vmem:[#allocation64_spill] sm:$0xff] %v9966_v14  ;;  %v9974_v9 = vpop.f32.mrb[12].mxu1  ;;  %v9988_v14 = vld [vmem:[#allocation10] ss:$16 sps:$4 sm:$0xff]  }
 0x1a3   :  { %11569 = vst [vmem:[#allocation58_spill] sm:$0xff] %v9954_v63  ;;  %v9958_v29 = vpop.f32.mrb[10].mxu0  ;;  %11579 = vst [vmem:[#allocation68_spill] sm:$0xff] %v9974_v9  ;;  %v9978_v7 = vpop.f32.mrb[13].mxu1  ;;  %1389 = vmatprep.subr.bf16.mxu1 %v9986_v55  ;;  %v10012_v9 = vld [vmem:[#allocation10 + $0x40] ss:$16 sps:$4 sm:$0xff]  }
 0x1a4   :  { %11571 = vst [vmem:[#allocation60_spill] sm:$0xff] %v9958_v29  ;;  %v9962_v42 = vpop.f32.mrb[11].mxu0  ;;  %11581 = vst [vmem:[#allocation70_spill] sm:$0xff] %v9978_v7  ;;  %v9980_v29 = vpop.f32.mrb[14].mxu1  ;;  %v10008_v7 = vld [vmem:[#allocation10 + $0x44] ss:$16 sps:$4 sm:$0xff]  }
 0x1a5   :  { %11573 = vst [vmem:[#allocation62_spill] sm:$0xff] %v9962_v42  ;;  %v9968_v18 = vpop.f32.mrb[12].mxu0  ;;  %11582 = vst [vmem:[#allocation71_spill] sm:$0xff] %v9980_v29  ;;  %v9982_v43 = vpop.f32.mrb[15].mxu1  ;;  %v9984_v42 = vld [vmem:[#allocation10 + $0x4] ss:$16 sps:$4 sm:$0xff]  }
 0x1a6   :  { %11576 = vst [vmem:[#allocation65_spill] sm:$0xff] %v9968_v18  ;;  %v9970_v24 = vpop.f32.mrb[13].mxu0  ;;  %11583 = vst [vmem:[#allocation72_spill] sm:$0xff] %v9982_v43  ;;  %v9990_v18 = vld [vmem:[#allocation10 + $0x8] ss:$16 sps:$4 sm:$0xff]   ;;  %1348 = vmatprep.subr.bf16.mxu0 %v9984_v42 }
 0x1a7   :  { %11577 = vst [vmem:[#allocation66_spill] sm:$0xff] %v9970_v24  ;;  %v9972_v28 = vpop.f32.mrb[14].mxu0  ;;  %11584 = vst [vmem:[#allocation73_spill] sm:$0xff] %v9984_v42  ;;  %1349 = vmatpush1.bf16.msra.mxu0 %v9988_v14  ;;  %1390 = vmatpush1.bf16.msra.mxu1 %v9990_v18  ;;  %v9998_v29 = vld [vmem:[#allocation10 + $0x2c] ss:$16 sps:$4 sm:$0xff]  }
 0x1a8   :  { %11578 = vst [vmem:[#allocation67_spill] sm:$0xff] %v9972_v28  ;;  %v9976_v63 = vpop.f32.mrb[15].mxu0  ;;  %11585 = vst [vmem:[#allocation74_spill] sm:$0xff] %v9986_v55  ;;  %v10000_v43 = vld [vmem:[#allocation10 + $0x20] ss:$16 sps:$4 sm:$0xff]   ;;  %1391 = vmatprep.subr.bf16.mxu1 %v9998_v29 }
 0x1a9   :  { %11580 = vst [vmem:[#allocation69_spill] sm:$0xff] %v9976_v63  ;;  %11586 = vst [vmem:[#allocation75_spill] sm:$0xff] %v9988_v14  ;;  %v9996_v63 = vld [vmem:[#allocation10 + $0x24] ss:$16 sps:$4 sm:$0xff]   ;;  %v10002_v28 = vld [vmem:[#allocation10 + $0x28] ss:$16 sps:$4 sm:$0xff]  }
 0x1aa   :  { %11587 = vst [vmem:[#allocation76_spill] sm:$0xff] %v9990_v18  ;;  %11588 = vst [vmem:[#allocation77_spill] sm:$0xff] %v9996_v63  ;;  %1350 = vmatprep.subr.bf16.mxu0 %v9996_v63  ;;  %v10010_v24 = vld [vmem:[#allocation10 + $0x4c] ss:$16 sps:$4 sm:$0xff]   ;;  %v10014_v18 = vld [vmem:[#allocation10 + $0x48] ss:$16 sps:$4 sm:$0xff]  }
 0x1ab   :  { %11589 = vst [vmem:[#allocation78_spill] sm:$0xff] %v9998_v29  ;;  %11590 = vst [vmem:[#allocation79_spill] sm:$0xff] %v10000_v43  ;;  %1351 = vmatpush1.bf16.msra.mxu0 %v10000_v43  ;;  %1392 = vmatpush1.bf16.msra.mxu1 %v10002_v28  ;;  %v10020_v29 = vld [vmem:[#allocation10 + $0x64] ss:$16 sps:$4 sm:$0xff]   ;;  %v10022_v43 = vld [vmem:[#allocation10 + $0x6c] ss:$16 sps:$4 sm:$0xff]  }
 0x1ac   :  { %11591 = vst [vmem:[#allocation80_spill] sm:$0xff] %v10002_v28  ;;  %11592 = vst [vmem:[#allocation81_spill] sm:$0xff] %v10008_v7  ;;  %1352 = vmatprep.subr.bf16.mxu0 %v10008_v7  ;;  %1393 = vmatprep.subr.bf16.mxu1 %v10010_v24  ;;  %v10024_v28 = vld [vmem:[#allocation10 + $0x60] ss:$16 sps:$4 sm:$0xff]   ;;  %v10026_v63 = vld [vmem:[#allocation10 + $0x68] ss:$16 sps:$4 sm:$0xff]  }
 0x1ad   :  { %11593 = vst [vmem:[#allocation82_spill] sm:$0xff] %v10010_v24  ;;  %11594 = vst [vmem:[#allocation83_spill] sm:$0xff] %v10012_v9  ;;  %v10032_v24 = vld [vmem:[#allocation10 + $0x84] ss:$16 sps:$4 sm:$0xff]   ;;  %v10038_v7 = vld [vmem:[#allocation10 + $0x88] ss:$16 sps:$4 sm:$0xff]  }
 0x1ae   :  { %11595 = vst [vmem:[#allocation84_spill] sm:$0xff] %v10014_v18  ;;  %11596 = vst [vmem:[#allocation85_spill] sm:$0xff] %v10020_v29 }
 0x1af   :  { %1353 = vmatpush1.bf16.msra.mxu0 %v10012_v9  ;;  %1394 = vmatpush1.bf16.msra.mxu1 %v10014_v18  ;;  %11597 = vst [vmem:[#allocation86_spill] sm:$0xff] %v10022_v43  ;;  %11598 = vst [vmem:[#allocation87_spill] sm:$0xff] %v10024_v28  ;;  %v10034_v9 = vld [vmem:[#allocation10 + $0x8c] ss:$16 sps:$4 sm:$0xff]   ;;  %v10036_v18 = vld [vmem:[#allocation10 + $0x80] ss:$16 sps:$4 sm:$0xff]  }
 0x1b0   :  { %11599 = vst [vmem:[#allocation88_spill] sm:$0xff] %v10026_v63  ;;  %1354 = vmatprep.subr.bf16.mxu0 %v10020_v29  ;;  %1395 = vmatprep.subr.bf16.mxu1 %v10022_v43  ;;  %11600 = vst [vmem:[#allocation89_spill] sm:$0xff] %v10032_v24  ;;  %v10044_v43 = vld [vmem:[#allocation10 + $0xa4] ss:$16 sps:$4 sm:$0xff]   ;;  %v10050_v29 = vld [vmem:[#allocation10 + $0xa8] ss:$16 sps:$4 sm:$0xff]  }
 0x1b1   :  { %11601 = vst [vmem:[#allocation90_spill] sm:$0xff] %v10034_v9  ;;  %11602 = vst [vmem:[#allocation91_spill] sm:$0xff] %v10036_v18 }
 0x1b2   :  { %11603 = vst [vmem:[#allocation92_spill] sm:$0xff] %v10038_v7  ;;  %11604 = vst [vmem:[#allocation93_spill] sm:$0xff] %v10044_v43 }
 0x1b3   :  { %1355 = vmatpush1.bf16.msra.mxu0 %v10024_v28  ;;  %1396 = vmatpush1.bf16.msra.mxu1 %v10026_v63  ;;  %v10046_v28 = vld [vmem:[#allocation10 + $0xac] ss:$16 sps:$4 sm:$0xff]   ;;  %v10048_v63 = vld [vmem:[#allocation10 + $0xa0] ss:$16 sps:$4 sm:$0xff]   ;;  %11607 = vst [vmem:[#allocation96_spill] sm:$0xff] %v10050_v29 }
 0x1b4   :  { %1356 = vmatprep.subr.bf16.mxu0 %v10032_v24  ;;  %1397 = vmatprep.subr.bf16.mxu1 %v10034_v9  ;;  %11605 = vst [vmem:[#allocation94_spill] sm:$0xff] %v10046_v28  ;;  %11606 = vst [vmem:[#allocation95_spill] sm:$0xff] %v10048_v63  ;;  %v10056_v9 = vld [vmem:[#allocation10 + $0xc4] ss:$16 sps:$4 sm:$0xff]   ;;  %v10062_v24 = vld [vmem:[#allocation10 + $0xc8] ss:$16 sps:$4 sm:$0xff]  }
 0x1b5   :  { %11608 = vst [vmem:[#allocation97_spill] sm:$0xff] %v10056_v9  ;;  %11611 = vst [vmem:[#allocation100_spill] sm:$0xff] %v10062_v24 }
 0x1b7   :  { %1357 = vmatpush1.bf16.msra.mxu0 %v10036_v18  ;;  %1398 = vmatpush1.bf16.msra.mxu1 %v10038_v7  ;;  %v10058_v18 = vld [vmem:[#allocation10 + $0xcc] ss:$16 sps:$4 sm:$0xff]   ;;  %v10060_v7 = vld [vmem:[#allocation10 + $0xc0] ss:$16 sps:$4 sm:$0xff]  }
 0x1b8   :  { %1358 = vmatprep.subr.bf16.mxu0 %v10044_v43  ;;  %1399 = vmatprep.subr.bf16.mxu1 %v10046_v28  ;;  %11609 = vst [vmem:[#allocation98_spill] sm:$0xff] %v10058_v18  ;;  %11610 = vst [vmem:[#allocation99_spill] sm:$0xff] %v10060_v7  ;;  %v10068_v28 = vld [vmem:[#allocation10 + $0xe4] ss:$16 sps:$4 sm:$0xff]   ;;  %v10074_v43 = vld [vmem:[#allocation10 + $0xe8] ss:$16 sps:$4 sm:$0xff]  }
 0x1b9   :  { %11612 = vst [vmem:[#allocation101_spill] sm:$0xff] %v10068_v28  ;;  %11615 = vst [vmem:[#allocation104_spill] sm:$0xff] %v10074_v43 }
 0x1bb   :  { %1359 = vmatpush1.bf16.msra.mxu0 %v10048_v63  ;;  %1400 = vmatpush1.bf16.msra.mxu1 %v10050_v29  ;;  %v10070_v63 = vld [vmem:[#allocation10 + $0xec] ss:$16 sps:$4 sm:$0xff]   ;;  %v10072_v29 = vld [vmem:[#allocation10 + $0xe0] ss:$16 sps:$4 sm:$0xff]  }
 0x1bc   :  { %1360 = vmatprep.subr.bf16.mxu0 %v10056_v9  ;;  %1401 = vmatprep.subr.bf16.mxu1 %v10058_v18  ;;  %11613 = vst [vmem:[#allocation102_spill] sm:$0xff] %v10070_v63  ;;  %11614 = vst [vmem:[#allocation103_spill] sm:$0xff] %v10072_v29 }
 0x1bf   :  { %1361 = vmatpush1.bf16.msra.mxu0 %v10060_v7  ;;  %1402 = vmatpush1.bf16.msra.mxu1 %v10062_v24  ;;  %v523_v24 = vld [vmem:[%s11320_s5] sm:$0xf]  ;;  %v11616_v7 = vsub.s32 0, %v9800_v59 }
 0x1c0   :  { %1362 = vmatprep.subr.bf16.mxu0 %v10068_v28  ;;  %1403 = vmatprep.subr.bf16.mxu1 %v10070_v63  ;;  %v11618_v28 = vsub.s32 1, %v9800_v59 }
 0x1c1   :  { %v10087_v18 = vrot.slane %v523_v24, %v11616_v7  ;;  %v11619_v7 = vsub.s32 3, %v9800_v59 }
 0x1c2   :  { %v10091_v9 = vrot.slane %v523_v24, %v11618_v28 }
 0x1c3   :  { %1363 = vmatpush1.bf16.msra.mxu0 %v10072_v29  ;;  %1404 = vmatpush1.bf16.msra.mxu1 %v10074_v43  ;;  %11617 = vst [vmem:[#allocation105_spill] sm:$0xff] %v10087_v18  ;;  %v10097_v13 = vrot.slane %v523_v24, %v11619_v7 }
 0x1c4   :  { %1847 = vmatprep.subr.bf16.mxu0 %v9688_v37  ;;  %1888 = vmatprep.subr.bf16.mxu1 %v9694_v41 }
 0x254   :  { %v996_v63 = vpop.f32.mrb[16].mxu0  ;;  %v1037_v29 = vpop.f32.mrb[16].mxu1 }
 0x255   :  { %v1126_v43 = vadd.f32 %v996_v63, %v10087_v18  ;;  %v998_v14 = vpop.f32.mrb[17].mxu0  ;;  %v1039_v37 = vpop.f32.mrb[17].mxu1  ;;  %v11620_v63 = vsub.s32 2, %v9800_v59 }
 0x256   :  { %v1127_v41 = vadd.f32 %v998_v14, %v10091_v9  ;;  %v1000_v55 = vpop.f32.mrb[18].mxu0  ;;  %v1041_v42 = vpop.f32.mrb[18].mxu1  ;;  %v1129_v28 = vadd.f32 %v1039_v37, %v10097_v13 }
 0x257   :  { %v7905_v34 = vmul.f32 -1.442695, %v1126_v43  ;;  %v1001_v61 = vpop.f32.mrb[19].mxu0  ;;  %v1042_v23 = vpop.f32.mrb[19].mxu1  ;;  %v10102_v18 = vrot.slane %v523_v24, %v11620_v63  ;;  %v384_v24 = vadd.f32 %v9818_v15, %v9809_v4 }
 0x258   :  { %v7906_v25 = vmul.f32 -1.442695, %v1127_v41  ;;  %v7907_v46 = vmul.f32 -1.442695, %v1129_v28  ;;  %v459_v28 = vadd.f32 %v9834_v33, %v9824_v20 }
 0x259   :  { %9180 = vpow2.f32 %v7905_v34  ;;  %11621 = vst [vmem:[#allocation106_spill] sm:$0xff] %v10102_v18  ;;  %v1128_v55 = vadd.f32 %v1037_v29, %v10102_v18  ;;  %v457_v29 = vadd.f32 %v9828_v30, %v9832_v32 }
 0x25a   :  { %9182 = vpow2.f32 %v7906_v25 }
 0x25b   :  { %9184 = vpow2.f32 %v7907_v46  ;;  %v386_v46 = vadd.f32 %v9820_v19, %v9813_v5 }
 0x25c   :  { %9186 = vtanh.f32 %v1128_v55 }
 0x263   :  { %v9181_v42 = vpop.eup %9180 }
 0x264   :  { %v9183_v43 = vpop.eup %9182  ;;  %v1133_v61 = vadd.f32 1.0, %v9181_v42 }
 0x265   :  { %v1139_v23 = vadd.f32 1.0, %v9183_v43  ;;  %v9185_v14 = vpop.eup %9184 }
 0x266   :  { %9188 = vrcp.f32 %v1133_v61  ;;  %v9187_v34 = vpop.eup %9186  ;;  %v1146_v7 = vadd.f32 1.0, %v9185_v14 }
 0x267   :  { %9190 = vrcp.f32 %v1139_v23 }
 0x268   :  { %9192 = vrcp.f32 %v1146_v7 }
 0x270   :  { %v9189_v25 = vpop.eup %9188 }
 0x271   :  { %v9191_v41 = vpop.eup %9190  ;;  %v1150_v37 = vmul.f32 %v9189_v25, %v9187_v34 }
 0x272   :  { %v1149_v59 = vmul.f32 0.0, %v9191_v41  ;;  %v9193_v33 = vpop.eup %9192 }
 0x274   :  { %v10113_v63 = vadd.f32 %v1150_v37, %v1149_v59  ;;  %v1078_v55 = vpop.f32.mrb[20].mxu0  ;;  %v1119_v42 = vpop.f32.mrb[20].mxu1 }
 0x275   :  { %v1434_v43 = vadd.f32 %v1078_v55, %v384_v24  ;;  %v1436_v61 = vadd.f32 %v1119_v42, %v457_v29  ;;  %v1080_v23 = vpop.f32.mrb[21].mxu0  ;;  %v1121_v14 = vpop.f32.mrb[21].mxu1 }
 0x276   :  { %9194 = vtanh.f32 %v10113_v63  ;;  %v1435_v15 = vadd.f32 %v1080_v23, %v386_v46  ;;  %v1437_v34 = vadd.f32 %v1121_v14, %v459_v28  ;;  %v1082_v30 = vpop.f32.mrb[22].mxu0  ;;  %v1123_v25 = vpop.f32.mrb[22].mxu1  ;;  %v11643_v28 = vld [vmem:[#allocation42_spill] sm:$0xff]  ;;  %v11646_v23 = vld [vmem:[#allocation45_spill] sm:$0xff] }
 0x277   :  { %v7940_v41 = vmul.f32 -1.442695, %v1434_v43  ;;  %v1083_v19 = vpop.f32.mrb[23].mxu0  ;;  %v1124_v5 = vpop.f32.mrb[23].mxu1  ;;  %v11644_v43 = vld [vmem:[#allocation43_spill] sm:$0xff]  ;;  %v11650_v14 = vld [vmem:[#allocation73_spill] sm:$0xff] }
 0x278   :  { %v7941_v32 = vmul.f32 -1.442695, %v1435_v15  ;;  %v7942_v59 = vmul.f32 -1.442695, %v1437_v34  ;;  %v11651_v15 = vld [vmem:[#allocation74_spill] sm:$0xff]  ;;  %v11653_v34 = vld [vmem:[#allocation76_spill] sm:$0xff] }
 0x279   :  { %9196 = vpow2.f32 %v7940_v41  ;;  %v11654_v30 = vld [vmem:[#allocation77_spill] sm:$0xff]  ;;  %v11655_v25 = vld [vmem:[#allocation78_spill] sm:$0xff]  ;;  %v11656_v41 = vld [vmem:[#allocation79_spill] sm:$0xff] }
 0x27a   :  { %9198 = vpow2.f32 %v7941_v32  ;;  %v11642_v32 = vld [vmem:[#allocation41_spill] sm:$0xff]  ;;  %v11657_v19 = vld [vmem:[#allocation80_spill] sm:$0xff] }
 0x27b   :  { %9200 = vpow2.f32 %v7942_v59  ;;  %v11660_v59 = vld [vmem:[#allocation83_spill] sm:$0xff] }
 0x27c   :  { %9202 = vtanh.f32 %v1436_v61  ;;  %v11645_v61 = vld [vmem:[#allocation44_spill] sm:$0xff] }
 0x280   :  { %v9195_v37 = vpop.eup %9194 }
 0x281   :  { %v1153_v7 = vmul.f32 %v9195_v37, %v9193_v33  ;;  %v11658_v33 = vld [vmem:[#allocation81_spill] sm:$0xff]  ;;  %v11659_v37 = vld [vmem:[#allocation82_spill] sm:$0xff] }
 0x283   :  { %v9197_v24 = vpop.eup %9196  ;;  %v1154_v29 = vpack.c.bf16 %v1153_v7, %v1153_v7  ;;  %v11661_v7 = vld [vmem:[#allocation84_spill] sm:$0xff] }
 0x284   :  { %v9199_v55 = vpop.eup %9198  ;;  %v1441_v42 = vadd.f32 1.0, %v9197_v24  ;;  %v11662_v24 = vld [vmem:[#allocation85_spill] sm:$0xff] }
 0x285   :  { %v1447_v46 = vadd.f32 1.0, %v9199_v55  ;;  %1155 = vst [vmem:[#allocation3] sm:$0xf] %v1154_v29  ;;  %1381 = vmatmul.mubr.bf16.vlgmr.msra.gmra.mrb[24].mxu0 %v1154_v29  ;;  %1422 = vmatmul.mubr.bf16.vlgmr.msra.gmra.mrb[24].mxu1 %v1154_v29  ;;  %v11663_v29 = vld [vmem:[#allocation86_spill] sm:$0xff]  ;;  %v11664_v55 = vld [vmem:[#allocation87_spill] sm:$0xff] }
 0x286   :  { %9204 = vrcp.f32 %v1441_v42  ;;  %1848 = vmatpush1.bf16.msra.mxu0 %v9690_v39  ;;  %1889 = vmatpush1.bf16.msra.mxu1 %v9692_v40  ;;  %v9201_v39 = vpop.eup %9200  ;;  %v11665_v42 = vld [vmem:[#allocation88_spill] sm:$0xff] }
 0x287   :  { %9206 = vrcp.f32 %v1447_v46  ;;  %1849 = vmatprep.subr.bf16.mxu0 %v9700_v45  ;;  %1890 = vmatprep.subr.bf16.mxu1 %v9706_v49  ;;  %v9203_v40 = vpop.eup %9202  ;;  %v11666_v46 = vld [vmem:[#allocation89_spill] sm:$0xff] }
 0x288   :  { %1879 = vmatprep.mubr.bf16.mxu0 %v11541_v52  ;;  %1920 = vmatprep.mubr.bf16.mxu1 %v11541_v52 }
 0x28a   :  { %1850 = vmatpush1.bf16.msra.mxu0 %v9702_v47  ;;  %1891 = vmatpush1.bf16.msra.mxu1 %v9704_v48  ;;  %v1454_v47 = vadd.f32 1.0, %v9201_v39  ;;  %v11667_v39 = vld [vmem:[#allocation90_spill] sm:$0xff] }
 0x28b   :  { %1851 = vmatprep.subr.bf16.mxu0 %v9712_v54  ;;  %1892 = vmatprep.subr.bf16.mxu1 %v9718_v58 }
 0x28c   :  { %9208 = vrcp.f32 %v1454_v47  ;;  %v11672_v47 = vld [vmem:[#allocation95_spill] sm:$0xff] }
 0x28e   :  { %1852 = vmatpush1.bf16.msra.mxu0 %v9714_v56  ;;  %1893 = vmatpush1.bf16.msra.mxu1 %v9716_v57 }
 0x28f   :  { %1853 = vmatprep.subr.bf16.mxu0 %v9726_v62  ;;  %1894 = vmatprep.subr.bf16.mxu1 %v9732_v3  ;;  %v11624_v3 = vld [vmem:[#allocation18_spill] sm:$0xff] }
 0x290   :  { %v9205_v45 = vpop.eup %9204 }
 0x291   :  { %v9207_v49 = vpop.eup %9206  ;;  %v1458_v5 = vmul.f32 %v9205_v45, %v9203_v40  ;;  %v11668_v40 = vld [vmem:[#allocation91_spill] sm:$0xff]  ;;  %v11669_v45 = vld [vmem:[#allocation92_spill] sm:$0xff] }
 0x292   :  { %v1457_v48 = vmul.f32 %v9207_v49, %v9837_v6  ;;  %1854 = vmatpush1.bf16.msra.mxu0 %v9728_v1  ;;  %1895 = vmatpush1.bf16.msra.mxu1 %v9730_v2  ;;  %v11622_v1 = vld [vmem:[#allocation20_spill] sm:$0xff]  ;;  %v11623_v2 = vld [vmem:[#allocation21_spill] sm:$0xff] }
 0x293   :  { %1855 = vmatprep.subr.bf16.mxu0 %v9738_v8  ;;  %1896 = vmatprep.subr.bf16.mxu1 %v9744_v12  ;;  %v11625_v8 = vld [vmem:[#allocation19_spill] sm:$0xff]  ;;  %v11641_v6 = vld [vmem:[#allocation40_spill] sm:$0xff]  ;;  %v11670_v49 = vld [vmem:[#allocation93_spill] sm:$0xff] }
 0x294   :  { %v10135_v54 = vadd.f32 %v1458_v5, %v1457_v48  ;;  %v11628_v12 = vld [vmem:[#allocation27_spill] sm:$0xff]  ;;  %v11671_v5 = vld [vmem:[#allocation94_spill] sm:$0xff]  ;;  %v11673_v48 = vld [vmem:[#allocation96_spill] sm:$0xff] }
 0x296   :  { %1856 = vmatpush1.bf16.msra.mxu0 %v9740_v10  ;;  %1897 = vmatpush1.bf16.msra.mxu1 %v9742_v11  ;;  %9210 = vtanh.f32 %v10135_v54  ;;  %v9209_v56 = vpop.eup %9208  ;;  %v11626_v10 = vld [vmem:[#allocation25_spill] sm:$0xff]  ;;  %v11627_v11 = vld [vmem:[#allocation26_spill] sm:$0xff] }
 0x297   :  { %1857 = vmatprep.subr.bf16.mxu0 %v9754_v17  ;;  %1898 = vmatprep.subr.bf16.mxu1 %v9758_v22  ;;  %v11630_v17 = vld [vmem:[#allocation29_spill] sm:$0xff]  ;;  %v11632_v22 = vld [vmem:[#allocation31_spill] sm:$0xff] }
 0x29a   :  { %1858 = vmatpush1.bf16.msra.mxu0 %v9752_v16  ;;  %1899 = vmatpush1.bf16.msra.mxu1 %v9756_v21  ;;  %v11629_v16 = vld [vmem:[#allocation28_spill] sm:$0xff]  ;;  %v11631_v21 = vld [vmem:[#allocation30_spill] sm:$0xff] }
 0x29b   :  { %1859 = vmatprep.subr.bf16.mxu0 %v9761_v26  ;;  %1900 = vmatprep.subr.bf16.mxu1 %v9763_v27  ;;  %v11633_v26 = vld [vmem:[#allocation32_spill] sm:$0xff]  ;;  %v11634_v27 = vld [vmem:[#allocation33_spill] sm:$0xff] }
 0x29e   :  { %1860 = vmatpush1.bf16.msra.mxu0 %v9767_v31  ;;  %1901 = vmatpush1.bf16.msra.mxu1 %v9770_v35  ;;  %v11635_v31 = vld [vmem:[#allocation34_spill] sm:$0xff]  ;;  %v11636_v35 = vld [vmem:[#allocation35_spill] sm:$0xff] }
 0x29f   :  { %1861 = vmatprep.subr.bf16.mxu0 %v9772_v36  ;;  %1902 = vmatprep.subr.bf16.mxu1 %v9778_v44  ;;  %v11637_v36 = vld [vmem:[#allocation36_spill] sm:$0xff]  ;;  %v11638_v44 = vld [vmem:[#allocation37_spill] sm:$0xff] }
 0x2a0   :  { %v9211_v57 = vpop.eup %9210 }
 0x2a1   :  { %v1461_v58 = vmul.f32 %v9211_v57, %v9209_v56  ;;  %v11674_v56 = vld [vmem:[#allocation97_spill] sm:$0xff]  ;;  %v11675_v57 = vld [vmem:[#allocation98_spill] sm:$0xff] }
 0x2a2   :  { %1862 = vmatpush1.bf16.msra.mxu0 %v9784_v50  ;;  %1903 = vmatpush1.bf16.msra.mxu1 %v9789_v51  ;;  %v11639_v50 = vld [vmem:[#allocation38_spill] sm:$0xff]  ;;  %v11640_v51 = vld [vmem:[#allocation39_spill] sm:$0xff] }
 0x2a3   :  { %v1462_v62 = vpack.c.bf16 %v1461_v58, %v1461_v58  ;;  %1929 = vmatprep.subr.bf16.mxu0 %v11622_v1  ;;  %1970 = vmatprep.subr.bf16.mxu1 %v11623_v2  ;;  %v11676_v58 = vld [vmem:[#allocation99_spill] sm:$0xff]  ;;  %v11678_v1 = vld [vmem:[#allocation101_spill] sm:$0xff]  ;;  %v11679_v2 = vld [vmem:[#allocation102_spill] sm:$0xff] }
 0x2a5   :  { %1880 = vmatmul.mubr.bf16.vlgmr.msra.gmra.mrb[24].mxu0 %v1462_v62  ;;  %1921 = vmatmul.mubr.bf16.vlgmr.msra.gmra.mrb[24].mxu1 %v1462_v62 }
 0x2a6   :  { %1930 = vmatpush1.bf16.msra.mxu0 %v11624_v3  ;;  %1971 = vmatpush1.bf16.msra.mxu1 %v11625_v8  ;;  %v11680_v3 = vld [vmem:[#allocation103_spill] sm:$0xff]  ;;  %v11681_v8 = vld [vmem:[#allocation104_spill] sm:$0xff] }
 0x2a7   :  { %1931 = vmatprep.subr.bf16.mxu0 %v11626_v10  ;;  %1972 = vmatprep.subr.bf16.mxu1 %v11627_v11  ;;  %v2348_v10 = vld [vmem:[#allocation9] sm:$0xff] }
 0x2a8   :  { %1961 = vmatprep.mubr.bf16.mxu0 %v11541_v52  ;;  %2002 = vmatprep.mubr.bf16.mxu1 %v11541_v52  ;;  %v2352_v11 = vld [vmem:[#allocation9 + $0x20] sm:$0xff] }
 0x2aa   :  { %1932 = vmatpush1.bf16.msra.mxu0 %v11628_v12  ;;  %1973 = vmatpush1.bf16.msra.mxu1 %v11629_v16  ;;  %v2349_v12 = vld [vmem:[#allocation9 + $0x8] sm:$0xff]  ;;  %v10220_v16 = vcombine.high %v2348_v10, %v2352_v11 }
 0x2ab   :  { %1933 = vmatprep.subr.bf16.mxu0 %v11630_v17  ;;  %1974 = vmatprep.subr.bf16.mxu1 %v11631_v21  ;;  %v2353_v17 = vld [vmem:[#allocation9 + $0x28] sm:$0xff]  ;;  %v10222_v21 = vcombine.low %v2348_v10, %v2352_v11 }
 0x2ae   :  { %1934 = vmatpush1.bf16.msra.mxu0 %v11632_v22  ;;  %1975 = vmatpush1.bf16.msra.mxu1 %v11633_v26  ;;  %v10224_v22 = vcombine.low %v2349_v12, %v2353_v17  ;;  %v10226_v26 = vcombine.high %v2349_v12, %v2353_v17 }
 0x2af   :  { %1935 = vmatprep.subr.bf16.mxu0 %v11634_v27  ;;  %1976 = vmatprep.subr.bf16.mxu1 %v11635_v31 }
 0x2b2   :  { %1936 = vmatpush1.bf16.msra.mxu0 %v11636_v35  ;;  %1977 = vmatpush1.bf16.msra.mxu1 %v11637_v36  ;;  %v11682_v35 = vld [vmem:[#allocation105_spill] sm:$0xff] }
 0x2b3   :  { %1937 = vmatprep.subr.bf16.mxu0 %v11638_v44  ;;  %1978 = vmatprep.subr.bf16.mxu1 %v11639_v50 }
 0x2b6   :  { %1938 = vmatpush1.bf16.msra.mxu0 %v9888_v60  ;;  %1979 = vmatpush1.bf16.msra.mxu1 %v9890_v0  ;;  %v11647_v60 = vld [vmem:[#allocation46_spill] sm:$0xff]  ;;  %v11648_v0 = vld [vmem:[#allocation47_spill] sm:$0xff] }
 0x2b7   :  { %1939 = vmatprep.subr.bf16.mxu0 %v9894_v53  ;;  %1980 = vmatprep.subr.bf16.mxu1 %v11640_v51  ;;  %v11649_v53 = vld [vmem:[#allocation48_spill] sm:$0xff] }
 0x2ba   :  { %1940 = vmatpush1.bf16.msra.mxu0 %v11641_v6  ;;  %1981 = vmatpush1.bf16.msra.mxu1 %v9902_v38  ;;  %v11652_v38 = vld [vmem:[#allocation75_spill] sm:$0xff] }
 0x2bb   :  { %1941 = vmatprep.subr.bf16.mxu0 %v11642_v32  ;;  %1982 = vmatprep.subr.bf16.mxu1 %v11643_v28 }
 0x2be   :  { %1942 = vmatpush1.bf16.msra.mxu0 %v11644_v43  ;;  %1983 = vmatpush1.bf16.msra.mxu1 %v11645_v61 }
 0x2bf   :  { %1943 = vmatprep.subr.bf16.mxu0 %v11646_v23  ;;  %1984 = vmatprep.subr.bf16.mxu1 %v11647_v60 }
 0x2c2   :  { %1944 = vmatpush1.bf16.msra.mxu0 %v11648_v0  ;;  %1985 = vmatpush1.bf16.msra.mxu1 %v11649_v53 }
 0x2c3   :  { %2233 = vmatprep.subr.bf16.mxu0 %v11650_v14  ;;  %2274 = vmatprep.subr.bf16.mxu1 %v11651_v15 }
 0x2c5   :  { %1962 = vmatmul.mubr.bf16.vlgmr.msra.gmra.mrb[28].mxu0 %v1462_v62  ;;  %2003 = vmatmul.mubr.bf16.vlgmr.msra.gmra.mrb[28].mxu1 %v1462_v62  ;;  %v11677_v62 = vld [vmem:[#allocation100_spill] sm:$0xff] }
 0x2c6   :  { %2234 = vmatpush1.bf16.msra.mxu0 %v11652_v38  ;;  %2275 = vmatpush1.bf16.msra.mxu1 %v11653_v34 }
 0x2c7   :  { %2235 = vmatprep.subr.bf16.mxu0 %v11654_v30  ;;  %2276 = vmatprep.subr.bf16.mxu1 %v11655_v25 }
 0x2c8   :  { %2265 = vmatprep.mubr.bf16.mxu0 %v11541_v52  ;;  %2306 = vmatprep.mubr.bf16.mxu1 %v11541_v52 }
 0x2ca   :  { %2236 = vmatpush1.bf16.msra.mxu0 %v11656_v41  ;;  %2277 = vmatpush1.bf16.msra.mxu1 %v11657_v19 }
 0x2cb   :  { %2237 = vmatprep.subr.bf16.mxu0 %v11658_v33  ;;  %2278 = vmatprep.subr.bf16.mxu1 %v11659_v37 }
 0x2ce   :  { %2238 = vmatpush1.bf16.msra.mxu0 %v11660_v59  ;;  %2279 = vmatpush1.bf16.msra.mxu1 %v11661_v7  ;;  %v11683_v7 = vld [vmem:[#allocation49_spill] sm:$0xff] }
 0x2cf   :  { %2239 = vmatprep.subr.bf16.mxu0 %v11662_v24  ;;  %2280 = vmatprep.subr.bf16.mxu1 %v11663_v29  ;;  %v390_v24 = vadd.f32 %v11683_v7, %v9809_v4  ;;  %v11684_v29 = vld [vmem:[#allocation24_spill] sm:$0xff] }
 0x2d2   :  { %2240 = vmatpush1.bf16.msra.mxu0 %v11664_v55  ;;  %2281 = vmatpush1.bf16.msra.mxu1 %v11665_v42  ;;  %v11685_v55 = vld [vmem:[#allocation51_spill] sm:$0xff] }
 0x2d3   :  { %2241 = vmatprep.subr.bf16.mxu0 %v11666_v46  ;;  %2282 = vmatprep.subr.bf16.mxu1 %v11667_v39  ;;  %v463_v42 = vadd.f32 %v11685_v55, %v11684_v29  ;;  %v11686_v46 = vld [vmem:[#allocation23_spill] sm:$0xff]  ;;  %v11687_v39 = vld [vmem:[#allocation50_spill] sm:$0xff] }
 0x2d6   :  { %2242 = vmatpush1.bf16.msra.mxu0 %v11668_v40  ;;  %2283 = vmatpush1.bf16.msra.mxu1 %v11669_v45  ;;  %v392_v40 = vadd.f32 %v11687_v39, %v11686_v46  ;;  %v11688_v45 = vld [vmem:[#allocation53_spill] sm:$0xff] }
 0x2d7   :  { %2243 = vmatprep.subr.bf16.mxu0 %v11670_v49  ;;  %2284 = vmatprep.subr.bf16.mxu1 %v11671_v5  ;;  %v465_v49 = vadd.f32 %v11688_v45, %v9824_v20  ;;  %v2380_v39 = vld [vmem:[#allocation9 + $0x100] sm:$0xff]  ;;  %v2381_v45 = vld [vmem:[#allocation9 + $0x108] sm:$0xff] }
 0x2da   :  { %2244 = vmatpush1.bf16.msra.mxu0 %v11672_v47  ;;  %2285 = vmatpush1.bf16.msra.mxu1 %v11673_v48 }
 0x2db   :  { %2245 = vmatprep.subr.bf16.mxu0 %v11674_v56  ;;  %2286 = vmatprep.subr.bf16.mxu1 %v11675_v57 }
 0x2de   :  { %2246 = vmatpush1.bf16.msra.mxu0 %v11676_v58  ;;  %2287 = vmatpush1.bf16.msra.mxu1 %v11677_v62 }
 0x2df   :  { %2247 = vmatprep.subr.bf16.mxu0 %v11678_v1  ;;  %2288 = vmatprep.subr.bf16.mxu1 %v11679_v2 }
 0x2e2   :  { %2248 = vmatpush1.bf16.msra.mxu0 %v11680_v3  ;;  %2289 = vmatpush1.bf16.msra.mxu1 %v11681_v8 }
 0x2e3   :  { %2732 = vmatprep.subr.bf16.mxu0 %v10220_v16  ;;  %2773 = vmatprep.subr.bf16.mxu1 %v10226_v26 }
 0x378   :  { %v1881_v27 = vpop.f32.mrb[24].mxu0  ;;  %v1922_v31 = vpop.f32.mrb[24].mxu1 }
 0x379   :  { %v8751_v36 = vadd.f32 %v1881_v27, %v11682_v35  ;;  %v1883_v44 = vpop.f32.mrb[25].mxu0  ;;  %v1924_v50 = vpop.f32.mrb[25].mxu1  ;;  %v8753_v53 = vadd.f32 %v1922_v31, %v10102_v18  ;;  %v2356_v27 = vld [vmem:[#allocation9 + $0x40] sm:$0xff] }
 0x37a   :  { %v8752_v51 = vadd.f32 %v1883_v44, %v10091_v9  ;;  %v1885_v6 = vpop.f32.mrb[26].mxu0  ;;  %v1926_v32 = vpop.f32.mrb[26].mxu1  ;;  %v8754_v60 = vadd.f32 %v1924_v50, %v10097_v13  ;;  %v2360_v44 = vld [vmem:[#allocation9 + $0x60] sm:$0xff]  ;;  %v2357_v50 = vld [vmem:[#allocation9 + $0x48] sm:$0xff] }
 0x37b   :  { %v8007_v28 = vmul.f32 -1.442695, %v8751_v36  ;;  %v1886_v43 = vpop.f32.mrb[27].mxu0  ;;  %v1927_v61 = vpop.f32.mrb[27].mxu1 }
 0x37c   :  { %v8008_v23 = vmul.f32 -1.442695, %v8752_v51  ;;  %v8009_v0 = vmul.f32 -1.442695, %v8754_v60  ;;  %v2361_v51 = vld [vmem:[#allocation9 + $0x68] sm:$0xff]  ;;  %v10246_v43 = vcombine.high %v2356_v27, %v2360_v44 }
 0x37d   :  { %9212 = vpow2.f32 %v8007_v28  ;;  %v10248_v61 = vcombine.high %v2357_v50, %v2361_v51 }
 0x37e   :  { %9214 = vpow2.f32 %v8008_v23  ;;  %v2364_v23 = vld [vmem:[#allocation9 + $0x80] sm:$0xff] }
 0x37f   :  { %9216 = vpow2.f32 %v8009_v0 }
 0x380   :  { %9218 = vtanh.f32 %v8753_v53  ;;  %v2368_v53 = vld [vmem:[#allocation9 + $0xa0] sm:$0xff] }
 0x381   :  { %v10266_v7 = vcombine.low %v2364_v23, %v2368_v53 }
 0x387   :  { %v9213_v14 = vpop.eup %9212 }
 0x388   :  { %v9215_v15 = vpop.eup %9214  ;;  %v2018_v38 = vadd.f32 1.0, %v9213_v14  ;;  %v2365_v14 = vld [vmem:[#allocation9 + $0x88] sm:$0xff] }
 0x389   :  { %v2024_v34 = vadd.f32 1.0, %v9215_v15  ;;  %v9217_v30 = vpop.eup %9216  ;;  %v2369_v15 = vld [vmem:[#allocation9 + $0xa8] sm:$0xff] }
 0x38a   :  { %9220 = vrcp.f32 %v2018_v38  ;;  %v9219_v25 = vpop.eup %9218  ;;  %v2031_v37 = vadd.f32 1.0, %v9217_v30  ;;  %v10254_v30 = vcombine.low %v2357_v50, %v2361_v51  ;;  %v2396_v50 = vld [vmem:[#allocation9 + $0x180] sm:$0xff] }
 0x38b   :  { %9222 = vrcp.f32 %v2024_v34  ;;  %v10252_v34 = vcombine.low %v2356_v27, %v2360_v44 }
 0x38c   :  { %9224 = vrcp.f32 %v2031_v37  ;;  %v2373_v37 = vld [vmem:[#allocation9 + $0xc8] sm:$0xff] }
 0x394   :  { %v9221_v41 = vpop.eup %9220 }
 0x395   :  { %v9223_v19 = vpop.eup %9222  ;;  %v2035_v33 = vmul.f32 %v9221_v41, %v9219_v25  ;;  %v10258_v25 = vcombine.high %v2364_v23, %v2368_v53  ;;  %v10260_v41 = vcombine.high %v2365_v14, %v2369_v15  ;;  %v2404_v53 = vld [vmem:[#allocation9 + $0x1c0] sm:$0xff] }
 0x396   :  { %v2034_v59 = vmul.f32 %v9223_v19, %v10113_v63  ;;  %v9225_v17 = vpop.eup %9224  ;;  %v2372_v19 = vld [vmem:[#allocation9 + $0xc0] sm:$0xff] }
 0x398   :  { %v10243_v5 = vadd.f32 %v2035_v33, %v2034_v59  ;;  %v1963_v47 = vpop.f32.mrb[28].mxu0  ;;  %v2004_v48 = vpop.f32.mrb[28].mxu1  ;;  %v2376_v33 = vld [vmem:[#allocation9 + $0xe0] sm:$0xff]  ;;  %v2377_v59 = vld [vmem:[#allocation9 + $0xe8] sm:$0xff] }
 0x399   :  { %v2319_v56 = vadd.f32 %v1963_v47, %v390_v24  ;;  %v2321_v57 = vadd.f32 %v2004_v48, %v463_v42  ;;  %v1965_v63 = vpop.f32.mrb[29].mxu0  ;;  %v2006_v58 = vpop.f32.mrb[29].mxu1  ;;  %v10268_v24 = vcombine.low %v2365_v14, %v2369_v15  ;;  %v10272_v55 = vcombine.high %v2372_v19, %v2376_v33  ;;  %v2408_v14 = vld [vmem:[#allocation9 + $0x1e0] sm:$0xff]  ;;  %v2405_v15 = vld [vmem:[#allocation9 + $0x1c8] sm:$0xff] }
 0x39a   :  { %v2320_v62 = vadd.f32 %v1965_v63, %v392_v40  ;;  %v2322_v1 = vadd.f32 %v2006_v58, %v465_v49  ;;  %v1967_v2 = vpop.f32.mrb[30].mxu0  ;;  %v2008_v3 = vpop.f32.mrb[30].mxu1  ;;  %9226 = vtanh.f32 %v10243_v5  ;;  %v10274_v42 = vcombine.high %v2373_v37, %v2377_v59  ;;  %v2384_v40 = vld [vmem:[#allocation9 + $0x120] sm:$0xff]  ;;  %v2385_v49 = vld [vmem:[#allocation9 + $0x128] sm:$0xff] }
 0x39b   :  { %v8042_v8 = vmul.f32 -1.442695, %v2319_v56  ;;  %v1968_v10 = vpop.f32.mrb[31].mxu0  ;;  %v2009_v11 = vpop.f32.mrb[31].mxu1  ;;  %v10278_v48 = vcombine.low %v2372_v19, %v2376_v33  ;;  %v10280_v56 = vcombine.low %v2373_v37, %v2377_v59  ;;  %v10284_v63 = vcombine.high %v2380_v39, %v2384_v40  ;;  %v2392_v2 = vld [vmem:[#allocation9 + $0x160] sm:$0xff]  ;;  %v2389_v3 = vld [vmem:[#allocation9 + $0x148] sm:$0xff] }
 0x39c   :  { %v8043_v12 = vmul.f32 -1.442695, %v2320_v62  ;;  %v8044_v36 = vmul.f32 -1.442695, %v2322_v1  ;;  %v10286_v58 = vcombine.high %v2381_v45, %v2385_v49  ;;  %v2388_v62 = vld [vmem:[#allocation9 + $0x140] sm:$0xff]  ;;  %v10291_v27 = vcombine.low %v2380_v39, %v2384_v40  ;;  %v2350_v39 = vld [vmem:[#allocation9 + $0x10] sm:$0xff] }
 0x39d   :  { %9228 = vpow2.f32 %v8042_v8  ;;  %v2393_v8 = vld [vmem:[#allocation9 + $0x168] sm:$0xff]  ;;  %v10324_v37 = vcombine.high %v2404_v53, %v2408_v14  ;;  %v2354_v40 = vld [vmem:[#allocation9 + $0x30] sm:$0xff] }
 0x39e   :  { %9230 = vpow2.f32 %v8043_v12  ;;  %v10299_v44 = vcombine.high %v2389_v3, %v2393_v8  ;;  %v10307_v23 = vcombine.low %v2389_v3, %v2393_v8  ;;  %v2358_v3 = vld [vmem:[#allocation9 + $0x50] sm:$0xff] }
 0x39f   :  { %9232 = vpow2.f32 %v8044_v36  ;;  %v10297_v36 = vcombine.high %v2388_v62, %v2392_v2 }
 0x3a0   :  { %9234 = vtanh.f32 %v2321_v57 }
 0x3a4   :  { %v9227_v31 = vpop.eup %9226 }
 0x3a5   :  { %v2038_v6 = vmul.f32 %v9227_v31, %v9225_v17  ;;  %v10293_v31 = vcombine.low %v2381_v45, %v2385_v49  ;;  %v2351_v45 = vld [vmem:[#allocation9 + $0x18] sm:$0xff] }
 0x3a6   :  { %v2355_v49 = vld [vmem:[#allocation9 + $0x38] sm:$0xff] }
 0x3a7   :  { %v9229_v32 = vpop.eup %9228  ;;  %v2039_v28 = vpack.c.bf16 %v2038_v6, %v2038_v6  ;;  %v2397_v6 = vld [vmem:[#allocation9 + $0x188] sm:$0xff] }
 0x3a8   :  { %v9231_v60 = vpop.eup %9230  ;;  %v2326_v0 = vadd.f32 1.0, %v9229_v32  ;;  %v2401_v32 = vld [vmem:[#allocation9 + $0x1a8] sm:$0xff] }
 0x3a9   :  { %v2332_v38 = vadd.f32 1.0, %v9231_v60  ;;  %2040 = vst [vmem:[#allocation3 + $0x4] sm:$0xf] %v2039_v28  ;;  %2266 = vmatmul.mubr.bf16.vlgmr.msra.gmra.mrb[32].mxu0 %v2039_v28  ;;  %2307 = vmatmul.mubr.bf16.vlgmr.msra.gmra.mrb[32].mxu1 %v2039_v28  ;;  %v9233_v47 = vpop.eup %9232  ;;  %v10305_v28 = vcombine.low %v2388_v62, %v2392_v2  ;;  %v10320_v33 = vcombine.low %v2397_v6, %v2401_v32 }
 0x3aa   :  { %9236 = vrcp.f32 %v2326_v0  ;;  %2733 = vmatpush1.bf16.msra.mxu0 %v10222_v21  ;;  %2774 = vmatpush1.bf16.msra.mxu1 %v10224_v22  ;;  %v9235_v57 = vpop.eup %9234  ;;  %v2339_v12 = vadd.f32 1.0, %v9233_v47  ;;  %v10314_v0 = vcombine.high %v2397_v6, %v2401_v32  ;;  %v10330_v47 = vcombine.low %v2404_v53, %v2408_v14  ;;  %v2366_v14 = vld [vmem:[#allocation9 + $0x90] sm:$0xff] }
 0x3ab   :  { %9238 = vrcp.f32 %v2332_v38  ;;  %2734 = vmatprep.subr.bf16.mxu0 %v10246_v43  ;;  %2775 = vmatprep.subr.bf16.mxu1 %v10248_v61  ;;  %v2409_v38 = vld [vmem:[#allocation9 + $0x1e8] sm:$0xff]  ;;  %v10338_v2 = vcombine.high %v2351_v45, %v2355_v49 }
 0x3ac   :  { %2764 = vmatprep.mubr.bf16.mxu0 %v11541_v52  ;;  %2805 = vmatprep.mubr.bf16.mxu1 %v11541_v52  ;;  %9240 = vrcp.f32 %v2339_v12  ;;  %v10326_v59 = vcombine.high %v2405_v15, %v2409_v38  ;;  %v2363_v12 = vld [vmem:[#allocation9 + $0x78] sm:$0xff] }
 0x3ad   :  { %11690 = vst [vmem:[#allocation21_spill] sm:$0xff] %v10338_v2 }
 0x3ae   :  { %2735 = vmatpush1.bf16.msra.mxu0 %v10252_v34  ;;  %2776 = vmatpush1.bf16.msra.mxu1 %v10254_v30 }
 0x3af   :  { %2736 = vmatprep.subr.bf16.mxu0 %v10258_v25  ;;  %2777 = vmatprep.subr.bf16.mxu1 %v10260_v41 }
 0x3b2   :  { %2737 = vmatpush1.bf16.msra.mxu0 %v10266_v7  ;;  %2778 = vmatpush1.bf16.msra.mxu1 %v10268_v24 }
 0x3b3   :  { %2738 = vmatprep.subr.bf16.mxu0 %v10272_v55  ;;  %2779 = vmatprep.subr.bf16.mxu1 %v10274_v42 }
 0x3b4   :  { %v9237_v1 = vpop.eup %9236 }
 0x3b5   :  { %v9239_v10 = vpop.eup %9238  ;;  %v2343_v11 = vmul.f32 %v9237_v1, %v9235_v57  ;;  %v10332_v57 = vcombine.low %v2405_v15, %v2409_v38  ;;  %v10336_v1 = vcombine.high %v2350_v39, %v2354_v40  ;;  %v2370_v15 = vld [vmem:[#allocation9 + $0xb0] sm:$0xff]  ;;  %v2367_v38 = vld [vmem:[#allocation9 + $0x98] sm:$0xff] }
 0x3b6   :  { %v2342_v17 = vmul.f32 %v9239_v10, %v10135_v54  ;;  %2739 = vmatpush1.bf16.msra.mxu0 %v10278_v48  ;;  %2780 = vmatpush1.bf16.msra.mxu1 %v10280_v56  ;;  %v2400_v54 = vld [vmem:[#allocation9 + $0x1a0] sm:$0xff]  ;;  %v9241_v62 = vpop.eup %9240  ;;  %v2362_v10 = vld [vmem:[#allocation9 + $0x70] sm:$0xff] }
 0x3b7   :  { %2740 = vmatprep.subr.bf16.mxu0 %v10284_v63  ;;  %2781 = vmatprep.subr.bf16.mxu1 %v10286_v58  ;;  %v10312_v60 = vcombine.high %v2396_v50, %v2400_v54  ;;  %v10318_v19 = vcombine.low %v2396_v50, %v2400_v54  ;;  %11689 = vst [vmem:[#allocation20_spill] sm:$0xff] %v10336_v1 }
 0x3b8   :  { %v10301_v51 = vadd.f32 %v2343_v11, %v2342_v17  ;;  %v2359_v11 = vld [vmem:[#allocation9 + $0x58] sm:$0xff]  ;;  %v10342_v50 = vcombine.low %v2350_v39, %v2354_v40  ;;  %v10344_v54 = vcombine.low %v2351_v45, %v2355_v49  ;;  %v10350_v32 = vcombine.high %v2358_v3, %v2362_v10 }
 0x3b9   :  { %v10352_v53 = vcombine.high %v2359_v11, %v2363_v12  ;;  %v10358_v39 = vcombine.low %v2358_v3, %v2362_v10  ;;  %v10360_v40 = vcombine.low %v2359_v11, %v2363_v12  ;;  %v10364_v45 = vcombine.high %v2366_v14, %v2370_v15 }
 0x3ba   :  { %2741 = vmatpush1.bf16.msra.mxu0 %v10291_v27  ;;  %2782 = vmatpush1.bf16.msra.mxu1 %v10293_v31  ;;  %9242 = vtanh.f32 %v10301_v51  ;;  %11691 = vst [vmem:[#allocation18_spill] sm:$0xff] %v10342_v50  ;;  %11692 = vst [vmem:[#allocation19_spill] sm:$0xff] %v10344_v54  ;;  %v10372_v3 = vcombine.low %v2366_v14, %v2370_v15 }
 0x3bb   :  { %2742 = vmatprep.subr.bf16.mxu0 %v10297_v36  ;;  %2783 = vmatprep.subr.bf16.mxu1 %v10299_v44  ;;  %11693 = vst [vmem:[#allocation25_spill] sm:$0xff] %v10350_v32  ;;  %11694 = vst [vmem:[#allocation26_spill] sm:$0xff] %v10352_v53 }
 0x3bc   :  { %11695 = vst [vmem:[#allocation27_spill] sm:$0xff] %v10358_v39  ;;  %11696 = vst [vmem:[#allocation28_spill] sm:$0xff] %v10360_v40 }
 0x3bd   :  { %11697 = vst [vmem:[#allocation29_spill] sm:$0xff] %v10364_v45  ;;  %11699 = vst [vmem:[#allocation31_spill] sm:$0xff] %v10372_v3 }
 0x3be   :  { %2743 = vmatpush1.bf16.msra.mxu0 %v10305_v28  ;;  %2784 = vmatpush1.bf16.msra.mxu1 %v10307_v23 }
 0x3bf   :  { %2744 = vmatprep.subr.bf16.mxu0 %v10312_v60  ;;  %2785 = vmatprep.subr.bf16.mxu1 %v10314_v0 }
 0x3c2   :  { %2745 = vmatpush1.bf16.msra.mxu0 %v10318_v19  ;;  %2786 = vmatpush1.bf16.msra.mxu1 %v10320_v33 }
 0x3c3   :  { %2746 = vmatprep.subr.bf16.mxu0 %v10324_v37  ;;  %2787 = vmatprep.subr.bf16.mxu1 %v10326_v59 }
 0x3c4   :  { %v9243_v8 = vpop.eup %9242 }
 0x3c5   :  { %v2346_v17 = vmul.f32 %v9243_v8, %v9241_v62  ;;  %v2371_v62 = vld [vmem:[#allocation9 + $0xb8] sm:$0xff]  ;;  %v2374_v8 = vld [vmem:[#allocation9 + $0xd0] sm:$0xff] }
 0x3c6   :  { %2747 = vmatpush1.bf16.msra.mxu0 %v10330_v47  ;;  %2788 = vmatpush1.bf16.msra.mxu1 %v10332_v57  ;;  %v10366_v49 = vcombine.high %v2367_v38, %v2371_v62  ;;  %v10374_v10 = vcombine.low %v2367_v38, %v2371_v62 }
 0x3c7   :  { %2814 = vmatprep.subr.bf16.mxu0 %v10336_v1  ;;  %2855 = vmatprep.subr.bf16.mxu1 %v10338_v2  ;;  %v10348_v6 = vpack.c.bf16 %v2346_v17, %v2346_v17  ;;  %v2378_v17 = vld [vmem:[#allocation9 + $0xf0] sm:$0xff]  ;;  %v2375_v2 = vld [vmem:[#allocation9 + $0xd8] sm:$0xff] }
 0x3c8   :  { %11698 = vst [vmem:[#allocation30_spill] sm:$0xff] %v10366_v49  ;;  %v2379_v1 = vld [vmem:[#allocation9 + $0xf8] sm:$0xff]  ;;  %11700 = vst [vmem:[#allocation32_spill] sm:$0xff] %v10374_v10  ;;  %v10378_v11 = vcombine.high %v2374_v8, %v2378_v17  ;;  %v10384_v14 = vcombine.low %v2374_v8, %v2378_v17 }
 0x3c9   :  { %2765 = vmatmul.mubr.bf16.vlgmr.msra.gmra.mrb[32].mxu0 %v10348_v6  ;;  %2806 = vmatmul.mubr.bf16.vlgmr.msra.gmra.mrb[32].mxu1 %v10348_v6  ;;  %v10380_v12 = vcombine.high %v2375_v2, %v2379_v1  ;;  %v10386_v15 = vcombine.low %v2375_v2, %v2379_v1 }
 0x3ca   :  { %2815 = vmatpush1.bf16.msra.mxu0 %v10342_v50  ;;  %2856 = vmatpush1.bf16.msra.mxu1 %v10344_v54  ;;  %11701 = vst [vmem:[#allocation33_spill] sm:$0xff] %v10378_v11  ;;  %v2383_v54 = vld [vmem:[#allocation9 + $0x118] sm:$0xff]  ;;  %11703 = vst [vmem:[#allocation35_spill] sm:$0xff] %v10384_v14 }
 0x3cb   :  { %2816 = vmatprep.subr.bf16.mxu0 %v10350_v32  ;;  %2857 = vmatprep.subr.bf16.mxu1 %v10352_v53  ;;  %11702 = vst [vmem:[#allocation34_spill] sm:$0xff] %v10380_v12  ;;  %v2382_v53 = vld [vmem:[#allocation9 + $0x110] sm:$0xff]  ;;  %v2387_v50 = vld [vmem:[#allocation9 + $0x138] sm:$0xff]  ;;  %11704 = vst [vmem:[#allocation36_spill] sm:$0xff] %v10386_v15 }
 0x3cc   :  { %2846 = vmatprep.mubr.bf16.mxu0 %v11541_v52  ;;  %2887 = vmatprep.mubr.bf16.mxu1 %v11541_v52  ;;  %v2386_v32 = vld [vmem:[#allocation9 + $0x130] sm:$0xff]  ;;  %v10392_v62 = vcombine.high %v2383_v54, %v2387_v50  ;;  %v10398_v1 = vcombine.low %v2383_v54, %v2387_v50 }
 0x3cd   :  { %v10390_v38 = vcombine.high %v2382_v53, %v2386_v32  ;;  %v10396_v8 = vcombine.low %v2382_v53, %v2386_v32 }
 0x3ce   :  { %2817 = vmatpush1.bf16.msra.mxu0 %v10358_v39  ;;  %2858 = vmatpush1.bf16.msra.mxu1 %v10360_v40  ;;  %11706 = vst [vmem:[#allocation38_spill] sm:$0xff] %v10392_v62  ;;  %v2391_v40 = vld [vmem:[#allocation9 + $0x158] sm:$0xff] }
 0x3cf   :  { %2818 = vmatprep.subr.bf16.mxu0 %v10364_v45  ;;  %2859 = vmatprep.subr.bf16.mxu1 %v10366_v49  ;;  %11705 = vst [vmem:[#allocation37_spill] sm:$0xff] %v10390_v38  ;;  %v2390_v49 = vld [vmem:[#allocation9 + $0x150] sm:$0xff]  ;;  %v2395_v39 = vld [vmem:[#allocation9 + $0x178] sm:$0xff] }
 0x3d0   :  { %v2394_v45 = vld [vmem:[#allocation9 + $0x170] sm:$0xff]  ;;  %v10404_v17 = vcombine.high %v2391_v40, %v2395_v39  ;;  %v10410_v50 = vcombine.low %v2391_v40, %v2395_v39 }
 0x3d1   :  { %v10402_v2 = vcombine.high %v2390_v49, %v2394_v45  ;;  %v10408_v32 = vcombine.low %v2390_v49, %v2394_v45 }
 0x3d2   :  { %2819 = vmatpush1.bf16.msra.mxu0 %v10372_v3  ;;  %2860 = vmatpush1.bf16.msra.mxu1 %v10374_v10  ;;  %11707 = vst [vmem:[#allocation39_spill] sm:$0xff] %v10404_v17  ;;  %v2399_v10 = vld [vmem:[#allocation9 + $0x198] sm:$0xff] }
 0x3d3   :  { %2820 = vmatprep.subr.bf16.mxu0 %v10378_v11  ;;  %2861 = vmatprep.subr.bf16.mxu1 %v10380_v12  ;;  %v2398_v12 = vld [vmem:[#allocation9 + $0x190] sm:$0xff]  ;;  %v2403_v3 = vld [vmem:[#allocation9 + $0x1b8] sm:$0xff]  ;;  %11708 = vst [vmem:[#allocation40_spill] sm:$0xff] %v10408_v32 }
 0x3d4   :  { %v2402_v11 = vld [vmem:[#allocation9 + $0x1b0] sm:$0xff]  ;;  %v10416_v53 = vcombine.high %v2399_v10, %v2403_v3  ;;  %v10422_v39 = vcombine.low %v2399_v10, %v2403_v3  ;;  %v10446_v10 = vld [vmem:[#allocation10 + $0xc] ss:$16 sps:$4 sm:$0xff]  }
 0x3d5   :  { %v10414_v54 = vcombine.high %v2398_v12, %v2402_v11  ;;  %v10420_v45 = vcombine.low %v2398_v12, %v2402_v11  ;;  %v10444_v3 = vld [vmem:[#allocation10 + $0x4] ss:$16 sps:$4 sm:$0xff]   ;;  %11716 = vst [vmem:[#allocation48_spill] sm:$0xff] %v10446_v10  ;;  %v10448_v11 = vld [vmem:[#allocation10] ss:$16 sps:$4 sm:$0xff]  }
 0x3d6   :  { %2821 = vmatpush1.bf16.msra.mxu0 %v10384_v14  ;;  %2862 = vmatpush1.bf16.msra.mxu1 %v10386_v15  ;;  %v2407_v15 = vld [vmem:[#allocation9 + $0x1d8] sm:$0xff]  ;;  %11710 = vst [vmem:[#allocation42_spill] sm:$0xff] %v10422_v39  ;;  %11715 = vst [vmem:[#allocation47_spill] sm:$0xff] %v10444_v3 }
 0x3d7   :  { %2822 = vmatprep.subr.bf16.mxu0 %v10390_v38  ;;  %2863 = vmatprep.subr.bf16.mxu1 %v10392_v62  ;;  %v2406_v62 = vld [vmem:[#allocation9 + $0x1d0] sm:$0xff]  ;;  %v2411_v14 = vld [vmem:[#allocation9 + $0x1f8] sm:$0xff]  ;;  %11709 = vst [vmem:[#allocation41_spill] sm:$0xff] %v10420_v45  ;;  %11717 = vst [vmem:[#allocation73_spill] sm:$0xff] %v10448_v11 }
 0x3d8   :  { %v2410_v38 = vld [vmem:[#allocation9 + $0x1f0] sm:$0xff]  ;;  %v10428_v49 = vcombine.high %v2407_v15, %v2411_v14  ;;  %v10450_v12 = vld [vmem:[#allocation10 + $0x8] ss:$16 sps:$4 sm:$0xff]  }
 0x3d9   :  { %v10426_v40 = vcombine.high %v2406_v62, %v2410_v38  ;;  %11718 = vst [vmem:[#allocation74_spill] sm:$0xff] %v10450_v12 }
 0x3da   :  { %2823 = vmatpush1.bf16.msra.mxu0 %v10396_v8  ;;  %2864 = vmatpush1.bf16.msra.mxu1 %v10398_v1  ;;  %11712 = vst [vmem:[#allocation44_spill] sm:$0xff] %v10428_v49 }
 0x3db   :  { %2824 = vmatprep.subr.bf16.mxu0 %v10402_v2  ;;  %2865 = vmatprep.subr.bf16.mxu1 %v10404_v17  ;;  %11711 = vst [vmem:[#allocation43_spill] sm:$0xff] %v10426_v40  ;;  %v10432_v17 = vcombine.low %v2406_v62, %v2410_v38  ;;  %v10462_v38 = vld [vmem:[#allocation10 + $0x28] ss:$16 sps:$4 sm:$0xff]   ;;  %v10468_v62 = vld [vmem:[#allocation10 + $0x44] ss:$16 sps:$4 sm:$0xff]  }
 0x3dc   :  { %11722 = vst [vmem:[#allocation78_spill] sm:$0xff] %v10462_v38  ;;  %11723 = vst [vmem:[#allocation79_spill] sm:$0xff] %v10468_v62 }
 0x3dd   :  { %11713 = vst [vmem:[#allocation45_spill] sm:$0xff] %v10432_v17 }
 0x3de   :  { %2825 = vmatpush1.bf16.msra.mxu0 %v10408_v32  ;;  %2866 = vmatpush1.bf16.msra.mxu1 %v10410_v50  ;;  %v10434_v32 = vcombine.low %v2407_v15, %v2411_v14  ;;  %v10458_v14 = vld [vmem:[#allocation10 + $0x2c] ss:$16 sps:$4 sm:$0xff]   ;;  %v10460_v15 = vld [vmem:[#allocation10 + $0x20] ss:$16 sps:$4 sm:$0xff]  }
 0x3df   :  { %2826 = vmatprep.subr.bf16.mxu0 %v10414_v54  ;;  %2867 = vmatprep.subr.bf16.mxu1 %v10416_v53  ;;  %11720 = vst [vmem:[#allocation76_spill] sm:$0xff] %v10458_v14  ;;  %11721 = vst [vmem:[#allocation77_spill] sm:$0xff] %v10460_v15 }
 0x3e0   :  { %11714 = vst [vmem:[#allocation46_spill] sm:$0xff] %v10434_v32 }
 0x3e2   :  { %2827 = vmatpush1.bf16.msra.mxu0 %v10420_v45  ;;  %2868 = vmatpush1.bf16.msra.mxu1 %v10422_v39 }
 0x3e3   :  { %2828 = vmatprep.subr.bf16.mxu0 %v10426_v40  ;;  %2869 = vmatprep.subr.bf16.mxu1 %v10428_v49 }
 0x3e6   :  { %2829 = vmatpush1.bf16.msra.mxu0 %v10432_v17  ;;  %2870 = vmatpush1.bf16.msra.mxu1 %v10434_v32 }
 0x3e7   :  { %3118 = vmatprep.subr.bf16.mxu0 %v10444_v3  ;;  %3159 = vmatprep.subr.bf16.mxu1 %v10446_v10  ;;  %v10474_v10 = vld [vmem:[#allocation10 + $0x48] ss:$16 sps:$4 sm:$0xff]  }
 0x3e8   :  { %11726 = vst [vmem:[#allocation82_spill] sm:$0xff] %v10474_v10 }
 0x3e9   :  { %2847 = vmatmul.mubr.bf16.vlgmr.msra.gmra.mrb[36].mxu0 %v10348_v6  ;;  %2888 = vmatmul.mubr.bf16.vlgmr.msra.gmra.mrb[36].mxu1 %v10348_v6  ;;  %v10456_v6 = vld [vmem:[#allocation10 + $0x24] ss:$16 sps:$4 sm:$0xff]  }
 0x3ea   :  { %3150 = vmatprep.mubr.bf16.mxu0 %v11541_v52  ;;  %3191 = vmatprep.mubr.bf16.mxu1 %v11541_v52  ;;  %11719 = vst [vmem:[#allocation75_spill] sm:$0xff] %v10456_v6 }
 0x3eb   :  { %3119 = vmatpush1.bf16.msra.mxu0 %v10448_v11  ;;  %3160 = vmatpush1.bf16.msra.mxu1 %v10450_v12  ;;  %v10470_v11 = vld [vmem:[#allocation10 + $0x4c] ss:$16 sps:$4 sm:$0xff]   ;;  %v10472_v12 = vld [vmem:[#allocation10 + $0x40] ss:$16 sps:$4 sm:$0xff]  }
 0x3ec   :  { %3120 = vmatprep.subr.bf16.mxu0 %v10456_v6  ;;  %3161 = vmatprep.subr.bf16.mxu1 %v10458_v14  ;;  %11724 = vst [vmem:[#allocation80_spill] sm:$0xff] %v10470_v11  ;;  %11725 = vst [vmem:[#allocation81_spill] sm:$0xff] %v10472_v12  ;;  %v10480_v14 = vld [vmem:[#allocation10 + $0x64] ss:$16 sps:$4 sm:$0xff]   ;;  %v10486_v6 = vld [vmem:[#allocation10 + $0x68] ss:$16 sps:$4 sm:$0xff]  }
 0x3ed   :  { %11727 = vst [vmem:[#allocation83_spill] sm:$0xff] %v10480_v14  ;;  %11730 = vst [vmem:[#allocation86_spill] sm:$0xff] %v10486_v6 }
 0x3ef   :  { %3121 = vmatpush1.bf16.msra.mxu0 %v10460_v15  ;;  %3162 = vmatpush1.bf16.msra.mxu1 %v10462_v38  ;;  %v10482_v15 = vld [vmem:[#allocation10 + $0x6c] ss:$16 sps:$4 sm:$0xff]   ;;  %v10484_v38 = vld [vmem:[#allocation10 + $0x60] ss:$16 sps:$4 sm:$0xff]  }
 0x3f0   :  { %3122 = vmatprep.subr.bf16.mxu0 %v10468_v62  ;;  %3163 = vmatprep.subr.bf16.mxu1 %v10470_v11  ;;  %11728 = vst [vmem:[#allocation84_spill] sm:$0xff] %v10482_v15  ;;  %11729 = vst [vmem:[#allocation85_spill] sm:$0xff] %v10484_v38  ;;  %v10492_v11 = vld [vmem:[#allocation10 + $0x84] ss:$16 sps:$4 sm:$0xff]   ;;  %v10498_v62 = vld [vmem:[#allocation10 + $0x88] ss:$16 sps:$4 sm:$0xff]  }
 0x3f1   :  { %11731 = vst [vmem:[#allocation87_spill] sm:$0xff] %v10492_v11  ;;  %11734 = vst [vmem:[#allocation90_spill] sm:$0xff] %v10498_v62 }
 0x3f3   :  { %3123 = vmatpush1.bf16.msra.mxu0 %v10472_v12  ;;  %3164 = vmatpush1.bf16.msra.mxu1 %v10474_v10  ;;  %v10494_v12 = vld [vmem:[#allocation10 + $0x8c] ss:$16 sps:$4 sm:$0xff]   ;;  %v10496_v10 = vld [vmem:[#allocation10 + $0x80] ss:$16 sps:$4 sm:$0xff]  }
 0x3f4   :  { %3124 = vmatprep.subr.bf16.mxu0 %v10480_v14  ;;  %3165 = vmatprep.subr.bf16.mxu1 %v10482_v15  ;;  %11732 = vst [vmem:[#allocation88_spill] sm:$0xff] %v10494_v12  ;;  %11733 = vst [vmem:[#allocation89_spill] sm:$0xff] %v10496_v10  ;;  %v10504_v15 = vld [vmem:[#allocation10 + $0xa4] ss:$16 sps:$4 sm:$0xff]   ;;  %v10510_v14 = vld [vmem:[#allocation10 + $0xa8] ss:$16 sps:$4 sm:$0xff]  }
 0x3f5   :  { %11735 = vst [vmem:[#allocation91_spill] sm:$0xff] %v10504_v15  ;;  %11738 = vst [vmem:[#allocation94_spill] sm:$0xff] %v10510_v14 }
 0x3f7   :  { %3125 = vmatpush1.bf16.msra.mxu0 %v10484_v38  ;;  %3166 = vmatpush1.bf16.msra.mxu1 %v10486_v6  ;;  %v10506_v38 = vld [vmem:[#allocation10 + $0xac] ss:$16 sps:$4 sm:$0xff]   ;;  %v10508_v6 = vld [vmem:[#allocation10 + $0xa0] ss:$16 sps:$4 sm:$0xff]  }
 0x3f8   :  { %3126 = vmatprep.subr.bf16.mxu0 %v10492_v11  ;;  %3167 = vmatprep.subr.bf16.mxu1 %v10494_v12  ;;  %11736 = vst [vmem:[#allocation92_spill] sm:$0xff] %v10506_v38  ;;  %11737 = vst [vmem:[#allocation93_spill] sm:$0xff] %v10508_v6  ;;  %v10516_v12 = vld [vmem:[#allocation10 + $0xc4] ss:$16 sps:$4 sm:$0xff]   ;;  %v10522_v11 = vld [vmem:[#allocation10 + $0xc8] ss:$16 sps:$4 sm:$0xff]  }
 0x3f9   :  { %11739 = vst [vmem:[#allocation95_spill] sm:$0xff] %v10516_v12  ;;  %11742 = vst [vmem:[#allocation98_spill] sm:$0xff] %v10522_v11 }
 0x3fb   :  { %3127 = vmatpush1.bf16.msra.mxu0 %v10496_v10  ;;  %3168 = vmatpush1.bf16.msra.mxu1 %v10498_v62  ;;  %v10518_v10 = vld [vmem:[#allocation10 + $0xcc] ss:$16 sps:$4 sm:$0xff]   ;;  %v10520_v62 = vld [vmem:[#allocation10 + $0xc0] ss:$16 sps:$4 sm:$0xff]  }
 0x3fc   :  { %3128 = vmatprep.subr.bf16.mxu0 %v10504_v15  ;;  %3169 = vmatprep.subr.bf16.mxu1 %v10506_v38  ;;  %11740 = vst [vmem:[#allocation96_spill] sm:$0xff] %v10518_v10  ;;  %11741 = vst [vmem:[#allocation97_spill] sm:$0xff] %v10520_v62  ;;  %v10528_v38 = vld [vmem:[#allocation10 + $0xe4] ss:$16 sps:$4 sm:$0xff]   ;;  %v10534_v15 = vld [vmem:[#allocation10 + $0xe8] ss:$16 sps:$4 sm:$0xff]  }
 0x3fd   :  { %11743 = vst [vmem:[#allocation99_spill] sm:$0xff] %v10528_v38  ;;  %11746 = vst [vmem:[#allocation102_spill] sm:$0xff] %v10534_v15 }
 0x3ff   :  { %3129 = vmatpush1.bf16.msra.mxu0 %v10508_v6  ;;  %3170 = vmatpush1.bf16.msra.mxu1 %v10510_v14  ;;  %v10530_v6 = vld [vmem:[#allocation10 + $0xec] ss:$16 sps:$4 sm:$0xff]   ;;  %v10532_v14 = vld [vmem:[#allocation10 + $0xe0] ss:$16 sps:$4 sm:$0xff]  }
 0x400   :  { %3130 = vmatprep.subr.bf16.mxu0 %v10516_v12  ;;  %3171 = vmatprep.subr.bf16.mxu1 %v10518_v10  ;;  %11744 = vst [vmem:[#allocation100_spill] sm:$0xff] %v10530_v6  ;;  %11745 = vst [vmem:[#allocation101_spill] sm:$0xff] %v10532_v14 }
 0x403   :  { %3131 = vmatpush1.bf16.msra.mxu0 %v10520_v62  ;;  %3172 = vmatpush1.bf16.msra.mxu1 %v10522_v11 }
 0x404   :  { %3132 = vmatprep.subr.bf16.mxu0 %v10528_v38  ;;  %3173 = vmatprep.subr.bf16.mxu1 %v10530_v6 }
 0x407   :  { %3133 = vmatpush1.bf16.msra.mxu0 %v10532_v14  ;;  %3174 = vmatpush1.bf16.msra.mxu1 %v10534_v15 }
 0x408   :  { %3617 = vmatprep.subr.bf16.mxu0 %v10220_v16  ;;  %3658 = vmatprep.subr.bf16.mxu1 %v10226_v26 }
 0x49c   :  { %v2766_v11 = vpop.f32.mrb[32].mxu0  ;;  %v2807_v62 = vpop.f32.mrb[32].mxu1 }
 0x49d   :  { %v8755_v10 = vadd.f32 %v2766_v11, %v11682_v35  ;;  %v2768_v12 = vpop.f32.mrb[33].mxu0  ;;  %v2809_v3 = vpop.f32.mrb[33].mxu1  ;;  %v8757_v26 = vadd.f32 %v2807_v62, %v10102_v18 }
 0x49e   :  { %v8756_v32 = vadd.f32 %v2768_v12, %v10091_v9  ;;  %v2770_v17 = vpop.f32.mrb[34].mxu0  ;;  %v2811_v38 = vpop.f32.mrb[34].mxu1  ;;  %v8758_v16 = vadd.f32 %v2809_v3, %v10097_v13  ;;  %v11747_v3 = vld [vmem:[#allocation52_spill] sm:$0xff] }
 0x49f   :  { %v8109_v49 = vmul.f32 -1.442695, %v8755_v10  ;;  %v2771_v6 = vpop.f32.mrb[35].mxu0  ;;  %v2812_v40 = vpop.f32.mrb[35].mxu1  ;;  %v11748_v38 = vld [vmem:[#allocation55_spill] sm:$0xff] }
 0x4a0   :  { %v8110_v14 = vmul.f32 -1.442695, %v8756_v32  ;;  %v8111_v15 = vmul.f32 -1.442695, %v8758_v16  ;;  %v467_v62 = vadd.f32 %v11748_v38, %v11684_v29 }
 0x4a1   :  { %9244 = vpow2.f32 %v8109_v49 }
 0x4a2   :  { %9246 = vpow2.f32 %v8110_v14  ;;  %v394_v14 = vadd.f32 %v11747_v3, %v9809_v4 }
 0x4a3   :  { %9248 = vpow2.f32 %v8111_v15 }
 0x4a4   :  { %9250 = vtanh.f32 %v8757_v26 }
 0x4ab   :  { %v9245_v39 = vpop.eup %9244 }
 0x4ac   :  { %v9247_v45 = vpop.eup %9246  ;;  %v2903_v11 = vadd.f32 1.0, %v9245_v39  ;;  %v11749_v39 = vld [vmem:[#allocation54_spill] sm:$0xff] }
 0x4ad   :  { %v2909_v35 = vadd.f32 1.0, %v9247_v45  ;;  %v9249_v17 = vpop.eup %9248  ;;  %v396_v15 = vadd.f32 %v11749_v39, %v11686_v46  ;;  %v11750_v45 = vld [vmem:[#allocation56_spill] sm:$0xff] }
 0x4ae   :  { %9252 = vrcp.f32 %v2903_v11  ;;  %v9251_v10 = vpop.eup %9250  ;;  %v2916_v49 = vadd.f32 1.0, %v9249_v17 }
 0x4af   :  { %9254 = vrcp.f32 %v2909_v35  ;;  %v469_v35 = vadd.f32 %v11750_v45, %v9824_v20 }
 0x4b0   :  { %9256 = vrcp.f32 %v2916_v49 }
 0x4b8   :  { %v9253_v12 = vpop.eup %9252 }
 0x4b9   :  { %v9255_v40 = vpop.eup %9254  ;;  %v2920_v32 = vmul.f32 %v9253_v12, %v9251_v10 }
 0x4ba   :  { %v2919_v6 = vmul.f32 %v9255_v40, %v10243_v5 }
 0x4bc   :  { %v10555_v16 = vadd.f32 %v2920_v32, %v2919_v6  ;;  %v2848_v26 = vpop.f32.mrb[36].mxu0  ;;  %v2889_v11 = vpop.f32.mrb[36].mxu1 }
 0x4bd   :  { %v3204_v17 = vadd.f32 %v2848_v26, %v394_v14  ;;  %v3206_v10 = vadd.f32 %v2889_v11, %v467_v62  ;;  %v2850_v5 = vpop.f32.mrb[37].mxu0  ;;  %v2891_v12 = vpop.f32.mrb[37].mxu1 }
 0x4be   :  { %v3205_v40 = vadd.f32 %v2850_v5, %v396_v15  ;;  %v3207_v3 = vadd.f32 %v2891_v12, %v469_v35  ;;  %v2852_v4 = vpop.f32.mrb[38].mxu0  ;;  %v2893_v18 = vpop.f32.mrb[38].mxu1  ;;  %9258 = vtanh.f32 %v10555_v16  ;;  %v11773_v15 = vld [vmem:[#allocation43_spill] sm:$0xff]  ;;  %v11783_v5 = vld [vmem:[#allocation77_spill] sm:$0xff]  ;;  %v11784_v12 = vld [vmem:[#allocation78_spill] sm:$0xff] }
 0x4bf   :  { %v8144_v38 = vmul.f32 -1.442695, %v3204_v17  ;;  %v2853_v39 = vpop.f32.mrb[39].mxu0  ;;  %v2894_v46 = vpop.f32.mrb[39].mxu1  ;;  %v11777_v35 = vld [vmem:[#allocation47_spill] sm:$0xff]  ;;  %v11778_v17 = vld [vmem:[#allocation48_spill] sm:$0xff] }
 0x4c0   :  { %v8145_v29 = vmul.f32 -1.442695, %v3205_v40  ;;  %v9257_v32 = vpop.eup %9256  ;;  %v8146_v45 = vmul.f32 -1.442695, %v3207_v3  ;;  %v11785_v40 = vld [vmem:[#allocation79_spill] sm:$0xff]  ;;  %v11786_v3 = vld [vmem:[#allocation80_spill] sm:$0xff] }
 0x4c1   :  { %9260 = vpow2.f32 %v8144_v38  ;;  %v11787_v38 = vld [vmem:[#allocation81_spill] sm:$0xff]  ;;  %v11788_v39 = vld [vmem:[#allocation82_spill] sm:$0xff] }
 0x4c2   :  { %9262 = vpow2.f32 %v8145_v29 }
 0x4c3   :  { %9264 = vpow2.f32 %v8146_v45  ;;  %v11791_v45 = vld [vmem:[#allocation85_spill] sm:$0xff] }
 0x4c4   :  { %9266 = vtanh.f32 %v3206_v10  ;;  %v11782_v10 = vld [vmem:[#allocation76_spill] sm:$0xff] }
 0x4c8   :  { %v9259_v6 = vpop.eup %9258 }
 0x4c9   :  { %v2923_v49 = vmul.f32 %v9259_v6, %v9257_v32  ;;  %v11789_v32 = vld [vmem:[#allocation83_spill] sm:$0xff]  ;;  %v11790_v6 = vld [vmem:[#allocation84_spill] sm:$0xff] }
 0x4cb   :  { %v9261_v14 = vpop.eup %9260  ;;  %v2924_v62 = vpack.c.bf16 %v2923_v49, %v2923_v49  ;;  %v11792_v49 = vld [vmem:[#allocation86_spill] sm:$0xff] }
 0x4cc   :  { %v9263_v26 = vpop.eup %9262  ;;  %v3211_v11 = vadd.f32 1.0, %v9261_v14  ;;  %v11793_v14 = vld [vmem:[#allocation87_spill] sm:$0xff] }
 0x4cd   :  { %v3217_v4 = vadd.f32 1.0, %v9263_v26  ;;  %2925 = vst [vmem:[#allocation3 + $0x8] sm:$0xf] %v2924_v62  ;;  %3151 = vmatmul.mubr.bf16.vlgmr.msra.gmra.mrb[40].mxu0 %v2924_v62  ;;  %3192 = vmatmul.mubr.bf16.vlgmr.msra.gmra.mrb[40].mxu1 %v2924_v62  ;;  %v9265_v18 = vpop.eup %9264  ;;  %v11794_v62 = vld [vmem:[#allocation88_spill] sm:$0xff]  ;;  %v11795_v26 = vld [vmem:[#allocation89_spill] sm:$0xff] }
 0x4ce   :  { %9268 = vrcp.f32 %v3211_v11  ;;  %3618 = vmatpush1.bf16.msra.mxu0 %v10222_v21  ;;  %3659 = vmatpush1.bf16.msra.mxu1 %v10224_v22  ;;  %v9267_v21 = vpop.eup %9266  ;;  %v11796_v11 = vld [vmem:[#allocation90_spill] sm:$0xff] }
 0x4cf   :  { %9270 = vrcp.f32 %v3217_v4  ;;  %3619 = vmatprep.subr.bf16.mxu0 %v10246_v43  ;;  %3660 = vmatprep.subr.bf16.mxu1 %v10248_v61  ;;  %v3224_v43 = vadd.f32 1.0, %v9265_v18  ;;  %v11797_v4 = vld [vmem:[#allocation91_spill] sm:$0xff]  ;;  %v11798_v18 = vld [vmem:[#allocation92_spill] sm:$0xff] }
 0x4d0   :  { %3649 = vmatprep.mubr.bf16.mxu0 %v11541_v52  ;;  %3690 = vmatprep.mubr.bf16.mxu1 %v11541_v52 }
 0x4d1   :  { %9272 = vrcp.f32 %v3224_v43  ;;  %v11803_v43 = vld [vmem:[#allocation97_spill] sm:$0xff] }
 0x4d2   :  { %3620 = vmatpush1.bf16.msra.mxu0 %v10252_v34  ;;  %3661 = vmatpush1.bf16.msra.mxu1 %v10254_v30 }
 0x4d3   :  { %3621 = vmatprep.subr.bf16.mxu0 %v10258_v25  ;;  %3662 = vmatprep.subr.bf16.mxu1 %v10260_v41 }
 0x4d6   :  { %3622 = vmatpush1.bf16.msra.mxu0 %v10266_v7  ;;  %3663 = vmatpush1.bf16.msra.mxu1 %v10268_v24  ;;  %v11751_v24 = vld [vmem:[#allocation20_spill] sm:$0xff] }
 0x4d7   :  { %3623 = vmatprep.subr.bf16.mxu0 %v10272_v55  ;;  %3664 = vmatprep.subr.bf16.mxu1 %v10274_v42  ;;  %v11752_v55 = vld [vmem:[#allocation21_spill] sm:$0xff]  ;;  %v11753_v42 = vld [vmem:[#allocation18_spill] sm:$0xff] }
 0x4d8   :  { %v9269_v22 = vpop.eup %9268 }
 0x4d9   :  { %v9271_v29 = vpop.eup %9270  ;;  %v3228_v46 = vmul.f32 %v9269_v22, %v9267_v21  ;;  %v11799_v21 = vld [vmem:[#allocation93_spill] sm:$0xff]  ;;  %v11800_v22 = vld [vmem:[#allocation94_spill] sm:$0xff] }
 0x4da   :  { %v3227_v61 = vmul.f32 %v9271_v29, %v10301_v51  ;;  %3624 = vmatpush1.bf16.msra.mxu0 %v10278_v48  ;;  %3665 = vmatpush1.bf16.msra.mxu1 %v10280_v56  ;;  %v11754_v48 = vld [vmem:[#allocation19_spill] sm:$0xff]  ;;  %v11755_v56 = vld [vmem:[#allocation25_spill] sm:$0xff]  ;;  %v11762_v51 = vld [vmem:[#allocation32_spill] sm:$0xff] }
 0x4db   :  { %3625 = vmatprep.subr.bf16.mxu0 %v10284_v63  ;;  %3666 = vmatprep.subr.bf16.mxu1 %v10286_v58  ;;  %v9273_v30 = vpop.eup %9272  ;;  %v11756_v63 = vld [vmem:[#allocation26_spill] sm:$0xff]  ;;  %v11757_v58 = vld [vmem:[#allocation27_spill] sm:$0xff] }
 0x4dc   :  { %v10577_v34 = vadd.f32 %v3228_v46, %v3227_v61  ;;  %v11801_v29 = vld [vmem:[#allocation95_spill] sm:$0xff]  ;;  %v11802_v46 = vld [vmem:[#allocation96_spill] sm:$0xff]  ;;  %v11804_v61 = vld [vmem:[#allocation98_spill] sm:$0xff] }
 0x4de   :  { %3626 = vmatpush1.bf16.msra.mxu0 %v10291_v27  ;;  %3667 = vmatpush1.bf16.msra.mxu1 %v10293_v31  ;;  %9274 = vtanh.f32 %v10577_v34  ;;  %v11758_v27 = vld [vmem:[#allocation28_spill] sm:$0xff]  ;;  %v11759_v31 = vld [vmem:[#allocation29_spill] sm:$0xff] }
 0x4df   :  { %3627 = vmatprep.subr.bf16.mxu0 %v10297_v36  ;;  %3668 = vmatprep.subr.bf16.mxu1 %v10299_v44  ;;  %v11760_v36 = vld [vmem:[#allocation30_spill] sm:$0xff]  ;;  %v11761_v44 = vld [vmem:[#allocation31_spill] sm:$0xff] }
 0x4e2   :  { %3628 = vmatpush1.bf16.msra.mxu0 %v10305_v28  ;;  %3669 = vmatpush1.bf16.msra.mxu1 %v10307_v23  ;;  %v11763_v28 = vld [vmem:[#allocation33_spill] sm:$0xff]  ;;  %v11764_v23 = vld [vmem:[#allocation34_spill] sm:$0xff] }
 0x4e3   :  { %3629 = vmatprep.subr.bf16.mxu0 %v10312_v60  ;;  %3670 = vmatprep.subr.bf16.mxu1 %v10314_v0  ;;  %v11765_v60 = vld [vmem:[#allocation35_spill] sm:$0xff]  ;;  %v11766_v0 = vld [vmem:[#allocation36_spill] sm:$0xff] }
 0x4e6   :  { %3630 = vmatpush1.bf16.msra.mxu0 %v10318_v19  ;;  %3671 = vmatpush1.bf16.msra.mxu1 %v10320_v33  ;;  %v11767_v19 = vld [vmem:[#allocation37_spill] sm:$0xff]  ;;  %v11768_v33 = vld [vmem:[#allocation38_spill] sm:$0xff] }
 0x4e7   :  { %3631 = vmatprep.subr.bf16.mxu0 %v10324_v37  ;;  %3672 = vmatprep.subr.bf16.mxu1 %v10326_v59  ;;  %v11769_v37 = vld [vmem:[#allocation39_spill] sm:$0xff]  ;;  %v11770_v59 = vld [vmem:[#allocation40_spill] sm:$0xff] }
 0x4e8   :  { %v9275_v25 = vpop.eup %9274 }
 0x4e9   :  { %v3231_v41 = vmul.f32 %v9275_v25, %v9273_v30  ;;  %v11805_v30 = vld [vmem:[#allocation99_spill] sm:$0xff]  ;;  %v11806_v25 = vld [vmem:[#allocation100_spill] sm:$0xff] }
 0x4ea   :  { %3632 = vmatpush1.bf16.msra.mxu0 %v10330_v47  ;;  %3673 = vmatpush1.bf16.msra.mxu1 %v10332_v57  ;;  %v11771_v47 = vld [vmem:[#allocation41_spill] sm:$0xff]  ;;  %v11772_v57 = vld [vmem:[#allocation42_spill] sm:$0xff] }
 0x4eb   :  { %v3232_v7 = vpack.c.bf16 %v3231_v41, %v3231_v41  ;;  %3699 = vmatprep.subr.bf16.mxu0 %v11751_v24  ;;  %3740 = vmatprep.subr.bf16.mxu1 %v11752_v55  ;;  %v11807_v41 = vld [vmem:[#allocation101_spill] sm:$0xff] }
 0x4ec   :  { %v4118_v24 = vld [vmem:[#allocation9] sm:$0xff] }
 0x4ed   :  { %3650 = vmatmul.mubr.bf16.vlgmr.msra.gmra.mrb[40].mxu0 %v3232_v7  ;;  %3691 = vmatmul.mubr.bf16.vlgmr.msra.gmra.mrb[40].mxu1 %v3232_v7  ;;  %v4122_v55 = vld [vmem:[#allocation9 + $0x20] sm:$0xff] }
 0x4ee   :  { %3700 = vmatpush1.bf16.msra.mxu0 %v11753_v42  ;;  %3741 = vmatpush1.bf16.msra.mxu1 %v11754_v48  ;;  %v4119_v42 = vld [vmem:[#allocation9 + $0x8] sm:$0xff]  ;;  %v10662_v48 = vcombine.high %v4118_v24, %v4122_v55 }
 0x4ef   :  { %3701 = vmatprep.subr.bf16.mxu0 %v11755_v56  ;;  %3742 = vmatprep.subr.bf16.mxu1 %v11756_v63  ;;  %v4123_v56 = vld [vmem:[#allocation9 + $0x28] sm:$0xff]  ;;  %v10664_v63 = vcombine.low %v4118_v24, %v4122_v55 }
 0x4f0   :  { %3731 = vmatprep.mubr.bf16.mxu0 %v11541_v52  ;;  %3772 = vmatprep.mubr.bf16.mxu1 %v11541_v52 }
 0x4f2   :  { %3702 = vmatpush1.bf16.msra.mxu0 %v11757_v58  ;;  %3743 = vmatpush1.bf16.msra.mxu1 %v11758_v27  ;;  %v10666_v58 = vcombine.low %v4119_v42, %v4123_v56  ;;  %v10668_v27 = vcombine.high %v4119_v42, %v4123_v56 }
 0x4f3   :  { %3703 = vmatprep.subr.bf16.mxu0 %v11759_v31  ;;  %3744 = vmatprep.subr.bf16.mxu1 %v11760_v36 }
 0x4f6   :  { %3704 = vmatpush1.bf16.msra.mxu0 %v11761_v44  ;;  %3745 = vmatpush1.bf16.msra.mxu1 %v11762_v51  ;;  %v11809_v44 = vld [vmem:[#allocation105_spill] sm:$0xff] }
 0x4f7   :  { %3705 = vmatprep.subr.bf16.mxu0 %v11763_v28  ;;  %3746 = vmatprep.subr.bf16.mxu1 %v11764_v23 }
 0x4fa   :  { %3706 = vmatpush1.bf16.msra.mxu0 %v11765_v60  ;;  %3747 = vmatpush1.bf16.msra.mxu1 %v11766_v0 }
 0x4fb   :  { %3707 = vmatprep.subr.bf16.mxu0 %v11767_v19  ;;  %3748 = vmatprep.subr.bf16.mxu1 %v11768_v33 }
 0x4fe   :  { %3708 = vmatpush1.bf16.msra.mxu0 %v10396_v8  ;;  %3749 = vmatpush1.bf16.msra.mxu1 %v10398_v1  ;;  %v11774_v8 = vld [vmem:[#allocation44_spill] sm:$0xff]  ;;  %v11775_v1 = vld [vmem:[#allocation45_spill] sm:$0xff] }
 0x4ff   :  { %3709 = vmatprep.subr.bf16.mxu0 %v10402_v2  ;;  %3750 = vmatprep.subr.bf16.mxu1 %v11769_v37  ;;  %v11776_v2 = vld [vmem:[#allocation46_spill] sm:$0xff] }
 0x502   :  { %3710 = vmatpush1.bf16.msra.mxu0 %v11770_v59  ;;  %3751 = vmatpush1.bf16.msra.mxu1 %v10410_v50  ;;  %v11779_v50 = vld [vmem:[#allocation73_spill] sm:$0xff] }
 0x503   :  { %3711 = vmatprep.subr.bf16.mxu0 %v10414_v54  ;;  %3752 = vmatprep.subr.bf16.mxu1 %v10416_v53  ;;  %v11780_v54 = vld [vmem:[#allocation74_spill] sm:$0xff]  ;;  %v11781_v53 = vld [vmem:[#allocation75_spill] sm:$0xff] }
 0x506   :  { %3712 = vmatpush1.bf16.msra.mxu0 %v11771_v47  ;;  %3753 = vmatpush1.bf16.msra.mxu1 %v11772_v57 }
 0x507   :  { %3713 = vmatprep.subr.bf16.mxu0 %v11773_v15  ;;  %3754 = vmatprep.subr.bf16.mxu1 %v11774_v8  ;;  %v11810_v8 = vld [vmem:[#allocation106_spill] sm:$0xff] }
 0x50a   :  { %3714 = vmatpush1.bf16.msra.mxu0 %v11775_v1  ;;  %3755 = vmatpush1.bf16.msra.mxu1 %v11776_v2 }
 0x50b   :  { %4003 = vmatprep.subr.bf16.mxu0 %v11777_v35  ;;  %4044 = vmatprep.subr.bf16.mxu1 %v11778_v17 }
 0x50d   :  { %3732 = vmatmul.mubr.bf16.vlgmr.msra.gmra.mrb[44].mxu0 %v3232_v7  ;;  %3773 = vmatmul.mubr.bf16.vlgmr.msra.gmra.mrb[44].mxu1 %v3232_v7  ;;  %v11808_v7 = vld [vmem:[#allocation102_spill] sm:$0xff] }
 0x50e   :  { %4004 = vmatpush1.bf16.msra.mxu0 %v11779_v50  ;;  %4045 = vmatpush1.bf16.msra.mxu1 %v11780_v54 }
 0x50f   :  { %4005 = vmatprep.subr.bf16.mxu0 %v11781_v53  ;;  %4046 = vmatprep.subr.bf16.mxu1 %v11782_v10 }
 0x510   :  { %4035 = vmatprep.mubr.bf16.mxu0 %v11541_v52  ;;  %4076 = vmatprep.mubr.bf16.mxu1 %v11541_v52 }
 0x512   :  { %4006 = vmatpush1.bf16.msra.mxu0 %v11783_v5  ;;  %4047 = vmatpush1.bf16.msra.mxu1 %v11784_v12 }
 0x513   :  { %4007 = vmatprep.subr.bf16.mxu0 %v11785_v40  ;;  %4048 = vmatprep.subr.bf16.mxu1 %v11786_v3 }
 0x516   :  { %4008 = vmatpush1.bf16.msra.mxu0 %v11787_v38  ;;  %4049 = vmatpush1.bf16.msra.mxu1 %v11788_v39  ;;  %v11811_v38 = vld [vmem:[#allocation22_spill] sm:$0xff]  ;;  %v11812_v39 = vld [vmem:[#allocation57_spill] sm:$0xff] }
 0x517   :  { %4009 = vmatprep.subr.bf16.mxu0 %v11789_v32  ;;  %4050 = vmatprep.subr.bf16.mxu1 %v11790_v6  ;;  %v400_v32 = vadd.f32 %v11812_v39, %v11811_v38  ;;  %v11813_v6 = vld [vmem:[#allocation24_spill] sm:$0xff] }
 0x51a   :  { %4010 = vmatpush1.bf16.msra.mxu0 %v11791_v45  ;;  %4051 = vmatpush1.bf16.msra.mxu1 %v11792_v49  ;;  %v11814_v45 = vld [vmem:[#allocation59_spill] sm:$0xff] }
 0x51b   :  { %4011 = vmatprep.subr.bf16.mxu0 %v11793_v14  ;;  %4052 = vmatprep.subr.bf16.mxu1 %v11794_v62  ;;  %v473_v49 = vadd.f32 %v11814_v45, %v11813_v6  ;;  %v11815_v14 = vld [vmem:[#allocation23_spill] sm:$0xff]  ;;  %v11816_v62 = vld [vmem:[#allocation58_spill] sm:$0xff] }
 0x51e   :  { %4012 = vmatpush1.bf16.msra.mxu0 %v11795_v26  ;;  %4053 = vmatpush1.bf16.msra.mxu1 %v11796_v11  ;;  %v402_v26 = vadd.f32 %v11816_v62, %v11815_v14  ;;  %v11817_v11 = vld [vmem:[#allocation61_spill] sm:$0xff] }
 0x51f   :  { %4013 = vmatprep.subr.bf16.mxu0 %v11797_v4  ;;  %4054 = vmatprep.subr.bf16.mxu1 %v11798_v18  ;;  %v475_v4 = vadd.f32 %v11817_v11, %v9824_v20  ;;  %v4150_v62 = vld [vmem:[#allocation9 + $0x100] sm:$0xff]  ;;  %v4151_v11 = vld [vmem:[#allocation9 + $0x108] sm:$0xff] }
 0x522   :  { %4014 = vmatpush1.bf16.msra.mxu0 %v11799_v21  ;;  %4055 = vmatpush1.bf16.msra.mxu1 %v11800_v22 }
 0x523   :  { %4015 = vmatprep.subr.bf16.mxu0 %v11801_v29  ;;  %4056 = vmatprep.subr.bf16.mxu1 %v11802_v46 }
 0x526   :  { %4016 = vmatpush1.bf16.msra.mxu0 %v11803_v43  ;;  %4057 = vmatpush1.bf16.msra.mxu1 %v11804_v61 }
 0x527   :  { %4017 = vmatprep.subr.bf16.mxu0 %v11805_v30  ;;  %4058 = vmatprep.subr.bf16.mxu1 %v11806_v25 }
 0x52a   :  { %4018 = vmatpush1.bf16.msra.mxu0 %v11807_v41  ;;  %4059 = vmatpush1.bf16.msra.mxu1 %v11808_v7 }
 0x52b   :  { %4502 = vmatprep.subr.bf16.mxu0 %v10662_v48  ;;  %4543 = vmatprep.subr.bf16.mxu1 %v10668_v27 }
 0x5c0   :  { %v3651_v31 = vpop.f32.mrb[40].mxu0  ;;  %v3692_v36 = vpop.f32.mrb[40].mxu1 }
 0x5c1   :  { %v8759_v51 = vadd.f32 %v3651_v31, %v11809_v44  ;;  %v3653_v28 = vpop.f32.mrb[41].mxu0  ;;  %v3694_v23 = vpop.f32.mrb[41].mxu1  ;;  %v8761_v1 = vadd.f32 %v3692_v36, %v11810_v8  ;;  %v4126_v31 = vld [vmem:[#allocation9 + $0x40] sm:$0xff] }
 0x5c2   :  { %v8760_v60 = vadd.f32 %v3653_v28, %v10091_v9  ;;  %v3655_v0 = vpop.f32.mrb[42].mxu0  ;;  %v3696_v19 = vpop.f32.mrb[42].mxu1  ;;  %v8762_v57 = vadd.f32 %v3694_v23, %v10097_v13  ;;  %v4130_v28 = vld [vmem:[#allocation9 + $0x60] sm:$0xff]  ;;  %v4127_v23 = vld [vmem:[#allocation9 + $0x48] sm:$0xff] }
 0x5c3   :  { %v8211_v33 = vmul.f32 -1.442695, %v8759_v51  ;;  %v3656_v37 = vpop.f32.mrb[43].mxu0  ;;  %v3697_v59 = vpop.f32.mrb[43].mxu1 }
 0x5c4   :  { %v8212_v47 = vmul.f32 -1.442695, %v8760_v60  ;;  %v8213_v15 = vmul.f32 -1.442695, %v8762_v57  ;;  %v4131_v60 = vld [vmem:[#allocation9 + $0x68] sm:$0xff]  ;;  %v10688_v37 = vcombine.high %v4126_v31, %v4130_v28 }
 0x5c5   :  { %9276 = vpow2.f32 %v8211_v33  ;;  %v10690_v59 = vcombine.high %v4127_v23, %v4131_v60 }
 0x5c6   :  { %9278 = vpow2.f32 %v8212_v47  ;;  %v4134_v47 = vld [vmem:[#allocation9 + $0x80] sm:$0xff] }
 0x5c7   :  { %9280 = vpow2.f32 %v8213_v15 }
 0x5c8   :  { %9282 = vtanh.f32 %v8761_v1  ;;  %v4138_v1 = vld [vmem:[#allocation9 + $0xa0] sm:$0xff] }
 0x5c9   :  { %v10708_v39 = vcombine.low %v4134_v47, %v4138_v1 }
 0x5cf   :  { %v9277_v2 = vpop.eup %9276 }
 0x5d0   :  { %v9279_v35 = vpop.eup %9278  ;;  %v3788_v17 = vadd.f32 1.0, %v9277_v2  ;;  %v4135_v2 = vld [vmem:[#allocation9 + $0x88] sm:$0xff] }
 0x5d1   :  { %v3794_v50 = vadd.f32 1.0, %v9279_v35  ;;  %v9281_v54 = vpop.eup %9280  ;;  %v4139_v35 = vld [vmem:[#allocation9 + $0xa8] sm:$0xff] }
 0x5d2   :  { %9284 = vrcp.f32 %v3788_v17  ;;  %v9283_v53 = vpop.eup %9282  ;;  %v3801_v40 = vadd.f32 1.0, %v9281_v54  ;;  %v10696_v54 = vcombine.low %v4127_v23, %v4131_v60  ;;  %v4166_v23 = vld [vmem:[#allocation9 + $0x180] sm:$0xff] }
 0x5d3   :  { %9286 = vrcp.f32 %v3794_v50  ;;  %v10694_v50 = vcombine.low %v4126_v31, %v4130_v28 }
 0x5d4   :  { %9288 = vrcp.f32 %v3801_v40  ;;  %v4143_v40 = vld [vmem:[#allocation9 + $0xc8] sm:$0xff] }
 0x5dc   :  { %v9285_v10 = vpop.eup %9284 }
 0x5dd   :  { %v9287_v5 = vpop.eup %9286  ;;  %v3805_v12 = vmul.f32 %v9285_v10, %v9283_v53  ;;  %v10700_v53 = vcombine.high %v4134_v47, %v4138_v1  ;;  %v10702_v10 = vcombine.high %v4135_v2, %v4139_v35  ;;  %v4174_v1 = vld [vmem:[#allocation9 + $0x1c0] sm:$0xff] }
 0x5de   :  { %v3804_v3 = vmul.f32 %v9287_v5, %v10555_v16  ;;  %v9289_v56 = vpop.eup %9288  ;;  %v4142_v5 = vld [vmem:[#allocation9 + $0xc0] sm:$0xff] }
 0x5e0   :  { %v10685_v18 = vadd.f32 %v3805_v12, %v3804_v3  ;;  %v3733_v21 = vpop.f32.mrb[44].mxu0  ;;  %v3774_v22 = vpop.f32.mrb[44].mxu1  ;;  %v4146_v12 = vld [vmem:[#allocation9 + $0xe0] sm:$0xff]  ;;  %v4147_v3 = vld [vmem:[#allocation9 + $0xe8] sm:$0xff] }
 0x5e1   :  { %v4089_v29 = vadd.f32 %v3733_v21, %v400_v32  ;;  %v4091_v46 = vadd.f32 %v3774_v22, %v473_v49  ;;  %v3735_v16 = vpop.f32.mrb[45].mxu0  ;;  %v3776_v43 = vpop.f32.mrb[45].mxu1  ;;  %v10710_v32 = vcombine.low %v4135_v2, %v4139_v35  ;;  %v10714_v45 = vcombine.high %v4142_v5, %v4146_v12  ;;  %v4178_v2 = vld [vmem:[#allocation9 + $0x1e0] sm:$0xff]  ;;  %v4175_v35 = vld [vmem:[#allocation9 + $0x1c8] sm:$0xff] }
 0x5e2   :  { %v4090_v61 = vadd.f32 %v3735_v16, %v402_v26  ;;  %v4092_v30 = vadd.f32 %v3776_v43, %v475_v4  ;;  %v3737_v25 = vpop.f32.mrb[46].mxu0  ;;  %v3778_v41 = vpop.f32.mrb[46].mxu1  ;;  %9290 = vtanh.f32 %v10685_v18  ;;  %v10716_v49 = vcombine.high %v4143_v40, %v4147_v3  ;;  %v4154_v26 = vld [vmem:[#allocation9 + $0x120] sm:$0xff]  ;;  %v4155_v4 = vld [vmem:[#allocation9 + $0x128] sm:$0xff] }
 0x5e3   :  { %v8246_v7 = vmul.f32 -1.442695, %v4089_v29  ;;  %v3738_v24 = vpop.f32.mrb[47].mxu0  ;;  %v3779_v55 = vpop.f32.mrb[47].mxu1  ;;  %v10720_v22 = vcombine.low %v4142_v5, %v4146_v12  ;;  %v10722_v29 = vcombine.low %v4143_v40, %v4147_v3  ;;  %v10726_v16 = vcombine.high %v4150_v62, %v4154_v26  ;;  %v4162_v25 = vld [vmem:[#allocation9 + $0x160] sm:$0xff]  ;;  %v4159_v41 = vld [vmem:[#allocation9 + $0x148] sm:$0xff] }
 0x5e4   :  { %v8247_v42 = vmul.f32 -1.442695, %v4090_v61  ;;  %v8248_v51 = vmul.f32 -1.442695, %v4092_v30  ;;  %v10728_v43 = vcombine.high %v4151_v11, %v4155_v4  ;;  %v4158_v61 = vld [vmem:[#allocation9 + $0x140] sm:$0xff]  ;;  %v10733_v31 = vcombine.low %v4150_v62, %v4154_v26  ;;  %v4120_v62 = vld [vmem:[#allocation9 + $0x10] sm:$0xff] }
 0x5e5   :  { %9292 = vpow2.f32 %v8246_v7  ;;  %v4163_v7 = vld [vmem:[#allocation9 + $0x168] sm:$0xff]  ;;  %v10766_v40 = vcombine.high %v4174_v1, %v4178_v2  ;;  %v4124_v26 = vld [vmem:[#allocation9 + $0x30] sm:$0xff] }
 0x5e6   :  { %9294 = vpow2.f32 %v8247_v42  ;;  %v10741_v28 = vcombine.high %v4159_v41, %v4163_v7  ;;  %v10749_v47 = vcombine.low %v4159_v41, %v4163_v7  ;;  %v4128_v41 = vld [vmem:[#allocation9 + $0x50] sm:$0xff] }
 0x5e7   :  { %9296 = vpow2.f32 %v8248_v51  ;;  %v10739_v51 = vcombine.high %v4158_v61, %v4162_v25 }
 0x5e8   :  { %9298 = vtanh.f32 %v4091_v46 }
 0x5ec   :  { %v9291_v36 = vpop.eup %9290 }
 0x5ed   :  { %v3808_v0 = vmul.f32 %v9291_v36, %v9289_v56  ;;  %v10735_v36 = vcombine.low %v4151_v11, %v4155_v4  ;;  %v4121_v11 = vld [vmem:[#allocation9 + $0x18] sm:$0xff] }
 0x5ee   :  { %v4125_v4 = vld [vmem:[#allocation9 + $0x38] sm:$0xff] }
 0x5ef   :  { %v9293_v19 = vpop.eup %9292  ;;  %v3809_v33 = vpack.c.bf16 %v3808_v0, %v3808_v0  ;;  %v4167_v0 = vld [vmem:[#allocation9 + $0x188] sm:$0xff] }
 0x5f0   :  { %v9295_v57 = vpop.eup %9294  ;;  %v4096_v15 = vadd.f32 1.0, %v9293_v19  ;;  %v4171_v19 = vld [vmem:[#allocation9 + $0x1a8] sm:$0xff] }
 0x5f1   :  { %v4102_v17 = vadd.f32 1.0, %v9295_v57  ;;  %3810 = vst [vmem:[#allocation3 + $0xc] sm:$0xf] %v3809_v33  ;;  %4036 = vmatmul.mubr.bf16.vlgmr.msra.gmra.mrb[48].mxu0 %v3809_v33  ;;  %4077 = vmatmul.mubr.bf16.vlgmr.msra.gmra.mrb[48].mxu1 %v3809_v33  ;;  %v9297_v21 = vpop.eup %9296  ;;  %v10747_v33 = vcombine.low %v4158_v61, %v4162_v25  ;;  %v10762_v12 = vcombine.low %v4167_v0, %v4171_v19 }
 0x5f2   :  { %9300 = vrcp.f32 %v4096_v15  ;;  %4503 = vmatpush1.bf16.msra.mxu0 %v10664_v63  ;;  %4544 = vmatpush1.bf16.msra.mxu1 %v10666_v58  ;;  %v9299_v46 = vpop.eup %9298  ;;  %v4109_v42 = vadd.f32 1.0, %v9297_v21  ;;  %v10756_v15 = vcombine.high %v4167_v0, %v4171_v19  ;;  %v10772_v21 = vcombine.low %v4174_v1, %v4178_v2  ;;  %v4136_v2 = vld [vmem:[#allocation9 + $0x90] sm:$0xff] }
 0x5f3   :  { %9302 = vrcp.f32 %v4102_v17  ;;  %4504 = vmatprep.subr.bf16.mxu0 %v10688_v37  ;;  %4545 = vmatprep.subr.bf16.mxu1 %v10690_v59  ;;  %v4179_v17 = vld [vmem:[#allocation9 + $0x1e8] sm:$0xff]  ;;  %v10780_v25 = vcombine.high %v4121_v11, %v4125_v4 }
 0x5f4   :  { %4534 = vmatprep.mubr.bf16.mxu0 %v11541_v52  ;;  %4575 = vmatprep.mubr.bf16.mxu1 %v11541_v52  ;;  %9304 = vrcp.f32 %v4109_v42  ;;  %v10768_v3 = vcombine.high %v4175_v35, %v4179_v17  ;;  %v4133_v42 = vld [vmem:[#allocation9 + $0x78] sm:$0xff] }
 0x5f5   :  { %11819 = vst [vmem:[#allocation104_spill] sm:$0xff] %v10780_v25 }
 0x5f6   :  { %4505 = vmatpush1.bf16.msra.mxu0 %v10694_v50  ;;  %4546 = vmatpush1.bf16.msra.mxu1 %v10696_v54 }
 0x5f7   :  { %4506 = vmatprep.subr.bf16.mxu0 %v10700_v53  ;;  %4547 = vmatprep.subr.bf16.mxu1 %v10702_v10 }
 0x5fa   :  { %4507 = vmatpush1.bf16.msra.mxu0 %v10708_v39  ;;  %4548 = vmatpush1.bf16.msra.mxu1 %v10710_v32 }
 0x5fb   :  { %4508 = vmatprep.subr.bf16.mxu0 %v10714_v45  ;;  %4549 = vmatprep.subr.bf16.mxu1 %v10716_v49 }
 0x5fc   :  { %v9301_v30 = vpop.eup %9300 }
 0x5fd   :  { %v9303_v24 = vpop.eup %9302  ;;  %v4113_v55 = vmul.f32 %v9301_v30, %v9299_v46  ;;  %v10774_v46 = vcombine.low %v4175_v35, %v4179_v17  ;;  %v10778_v30 = vcombine.high %v4120_v62, %v4124_v26  ;;  %v4140_v35 = vld [vmem:[#allocation9 + $0xb0] sm:$0xff]  ;;  %v4137_v17 = vld [vmem:[#allocation9 + $0x98] sm:$0xff] }
 0x5fe   :  { %v4112_v56 = vmul.f32 %v9303_v24, %v10577_v34  ;;  %4509 = vmatpush1.bf16.msra.mxu0 %v10720_v22  ;;  %4550 = vmatpush1.bf16.msra.mxu1 %v10722_v29  ;;  %v4170_v34 = vld [vmem:[#allocation9 + $0x1a0] sm:$0xff]  ;;  %v9305_v61 = vpop.eup %9304  ;;  %v4132_v24 = vld [vmem:[#allocation9 + $0x70] sm:$0xff] }
 0x5ff   :  { %4510 = vmatprep.subr.bf16.mxu0 %v10726_v16  ;;  %4551 = vmatprep.subr.bf16.mxu1 %v10728_v43  ;;  %v10754_v57 = vcombine.high %v4166_v23, %v4170_v34  ;;  %v10760_v5 = vcombine.low %v4166_v23, %v4170_v34  ;;  %11818 = vst [vmem:[#allocation103_spill] sm:$0xff] %v10778_v30 }
 0x600   :  { %v10743_v60 = vadd.f32 %v4113_v55, %v4112_v56  ;;  %v4129_v55 = vld [vmem:[#allocation9 + $0x58] sm:$0xff]  ;;  %v10784_v23 = vcombine.low %v4120_v62, %v4124_v26  ;;  %v10786_v34 = vcombine.low %v4121_v11, %v4125_v4  ;;  %v10792_v19 = vcombine.high %v4128_v41, %v4132_v24 }
 0x601   :  { %v10794_v1 = vcombine.high %v4129_v55, %v4133_v42  ;;  %v10800_v62 = vcombine.low %v4128_v41, %v4132_v24  ;;  %v10802_v26 = vcombine.low %v4129_v55, %v4133_v42  ;;  %v10806_v11 = vcombine.high %v4136_v2, %v4140_v35 }
 0x602   :  { %4511 = vmatpush1.bf16.msra.mxu0 %v10733_v31  ;;  %4552 = vmatpush1.bf16.msra.mxu1 %v10735_v36  ;;  %9306 = vtanh.f32 %v10743_v60  ;;  %11820 = vst [vmem:[#allocation49_spill] sm:$0xff] %v10784_v23  ;;  %11821 = vst [vmem:[#allocation51_spill] sm:$0xff] %v10786_v34  ;;  %v10814_v41 = vcombine.low %v4136_v2, %v4140_v35 }
 0x603   :  { %4512 = vmatprep.subr.bf16.mxu0 %v10739_v51  ;;  %4553 = vmatprep.subr.bf16.mxu1 %v10741_v28  ;;  %11822 = vst [vmem:[#allocation50_spill] sm:$0xff] %v10792_v19  ;;  %11823 = vst [vmem:[#allocation53_spill] sm:$0xff] %v10794_v1 }
 0x604   :  { %11824 = vst [vmem:[#allocation52_spill] sm:$0xff] %v10800_v62  ;;  %11825 = vst [vmem:[#allocation55_spill] sm:$0xff] %v10802_v26 }
 0x605   :  { %11826 = vst [vmem:[#allocation54_spill] sm:$0xff] %v10806_v11  ;;  %11828 = vst [vmem:[#allocation20_spill] sm:$0xff] %v10814_v41 }
 0x606   :  { %4513 = vmatpush1.bf16.msra.mxu0 %v10747_v33  ;;  %4554 = vmatpush1.bf16.msra.mxu1 %v10749_v47 }
 0x607   :  { %4514 = vmatprep.subr.bf16.mxu0 %v10754_v57  ;;  %4555 = vmatprep.subr.bf16.mxu1 %v10756_v15 }
 0x60a   :  { %4515 = vmatpush1.bf16.msra.mxu0 %v10760_v5  ;;  %4556 = vmatpush1.bf16.msra.mxu1 %v10762_v12 }
 0x60b   :  { %4516 = vmatprep.subr.bf16.mxu0 %v10766_v40  ;;  %4557 = vmatprep.subr.bf16.mxu1 %v10768_v3 }
 0x60c   :  { %v9307_v7 = vpop.eup %9306 }
 0x60d   :  { %v4116_v56 = vmul.f32 %v9307_v7, %v9305_v61  ;;  %v4141_v61 = vld [vmem:[#allocation9 + $0xb8] sm:$0xff]  ;;  %v4144_v7 = vld [vmem:[#allocation9 + $0xd0] sm:$0xff] }
 0x60e   :  { %4517 = vmatpush1.bf16.msra.mxu0 %v10772_v21  ;;  %4558 = vmatpush1.bf16.msra.mxu1 %v10774_v46  ;;  %v10808_v4 = vcombine.high %v4137_v17, %v4141_v61  ;;  %v10816_v24 = vcombine.low %v4137_v17, %v4141_v61 }
 0x60f   :  { %4584 = vmatprep.subr.bf16.mxu0 %v10778_v30  ;;  %4625 = vmatprep.subr.bf16.mxu1 %v10780_v25  ;;  %v10790_v0 = vpack.c.bf16 %v4116_v56, %v4116_v56  ;;  %v4148_v56 = vld [vmem:[#allocation9 + $0xf0] sm:$0xff]  ;;  %v4145_v25 = vld [vmem:[#allocation9 + $0xd8] sm:$0xff] }
 0x610   :  { %11827 = vst [vmem:[#allocation56_spill] sm:$0xff] %v10808_v4  ;;  %v4149_v30 = vld [vmem:[#allocation9 + $0xf8] sm:$0xff]  ;;  %11829 = vst [vmem:[#allocation21_spill] sm:$0xff] %v10816_v24  ;;  %v10820_v55 = vcombine.high %v4144_v7, %v4148_v56  ;;  %v10826_v2 = vcombine.low %v4144_v7, %v4148_v56 }
 0x611   :  { %4535 = vmatmul.mubr.bf16.vlgmr.msra.gmra.mrb[48].mxu0 %v10790_v0  ;;  %4576 = vmatmul.mubr.bf16.vlgmr.msra.gmra.mrb[48].mxu1 %v10790_v0  ;;  %v10822_v42 = vcombine.high %v4145_v25, %v4149_v30  ;;  %v10828_v35 = vcombine.low %v4145_v25, %v4149_v30 }
 0x612   :  { %4585 = vmatpush1.bf16.msra.mxu0 %v10784_v23  ;;  %4626 = vmatpush1.bf16.msra.mxu1 %v10786_v34  ;;  %11830 = vst [vmem:[#allocation18_spill] sm:$0xff] %v10820_v55  ;;  %v4153_v34 = vld [vmem:[#allocation9 + $0x118] sm:$0xff]  ;;  %11832 = vst [vmem:[#allocation25_spill] sm:$0xff] %v10826_v2 }
 0x613   :  { %4586 = vmatprep.subr.bf16.mxu0 %v10792_v19  ;;  %4627 = vmatprep.subr.bf16.mxu1 %v10794_v1  ;;  %11831 = vst [vmem:[#allocation19_spill] sm:$0xff] %v10822_v42  ;;  %v4152_v1 = vld [vmem:[#allocation9 + $0x110] sm:$0xff]  ;;  %v4157_v23 = vld [vmem:[#allocation9 + $0x138] sm:$0xff]  ;;  %11833 = vst [vmem:[#allocation26_spill] sm:$0xff] %v10828_v35 }
 0x614   :  { %4616 = vmatprep.mubr.bf16.mxu0 %v11541_v52  ;;  %4657 = vmatprep.mubr.bf16.mxu1 %v11541_v52  ;;  %v4156_v19 = vld [vmem:[#allocation9 + $0x130] sm:$0xff]  ;;  %v10834_v61 = vcombine.high %v4153_v34, %v4157_v23  ;;  %v10840_v30 = vcombine.low %v4153_v34, %v4157_v23 }
 0x615   :  { %v10832_v17 = vcombine.high %v4152_v1, %v4156_v19  ;;  %v10838_v7 = vcombine.low %v4152_v1, %v4156_v19 }
 0x616   :  { %4587 = vmatpush1.bf16.msra.mxu0 %v10800_v62  ;;  %4628 = vmatpush1.bf16.msra.mxu1 %v10802_v26  ;;  %11835 = vst [vmem:[#allocation28_spill] sm:$0xff] %v10834_v61  ;;  %v4161_v26 = vld [vmem:[#allocation9 + $0x158] sm:$0xff] }
 0x617   :  { %4588 = vmatprep.subr.bf16.mxu0 %v10806_v11  ;;  %4629 = vmatprep.subr.bf16.mxu1 %v10808_v4  ;;  %11834 = vst [vmem:[#allocation27_spill] sm:$0xff] %v10832_v17  ;;  %v4160_v4 = vld [vmem:[#allocation9 + $0x150] sm:$0xff]  ;;  %v4165_v62 = vld [vmem:[#allocation9 + $0x178] sm:$0xff] }
 0x618   :  { %v4164_v11 = vld [vmem:[#allocation9 + $0x170] sm:$0xff]  ;;  %v10846_v56 = vcombine.high %v4161_v26, %v4165_v62  ;;  %v10852_v23 = vcombine.low %v4161_v26, %v4165_v62 }
 0x619   :  { %v10844_v25 = vcombine.high %v4160_v4, %v4164_v11  ;;  %v10850_v19 = vcombine.low %v4160_v4, %v4164_v11 }
 0x61a   :  { %4589 = vmatpush1.bf16.msra.mxu0 %v10814_v41  ;;  %4630 = vmatpush1.bf16.msra.mxu1 %v10816_v24  ;;  %11836 = vst [vmem:[#allocation29_spill] sm:$0xff] %v10846_v56  ;;  %v4169_v24 = vld [vmem:[#allocation9 + $0x198] sm:$0xff] }
 0x61b   :  { %4590 = vmatprep.subr.bf16.mxu0 %v10820_v55  ;;  %4631 = vmatprep.subr.bf16.mxu1 %v10822_v42  ;;  %v4168_v42 = vld [vmem:[#allocation9 + $0x190] sm:$0xff]  ;;  %v4173_v41 = vld [vmem:[#allocation9 + $0x1b8] sm:$0xff]  ;;  %11837 = vst [vmem:[#allocation30_spill] sm:$0xff] %v10850_v19 }
 0x61c   :  { %v4172_v55 = vld [vmem:[#allocation9 + $0x1b0] sm:$0xff]  ;;  %v10858_v1 = vcombine.high %v4169_v24, %v4173_v41  ;;  %v10864_v62 = vcombine.low %v4169_v24, %v4173_v41  ;;  %v10888_v24 = vld [vmem:[#allocation10 + $0xc] ss:$16 sps:$4 sm:$0xff]  }
 0x61d   :  { %v10856_v34 = vcombine.high %v4168_v42, %v4172_v55  ;;  %v10862_v11 = vcombine.low %v4168_v42, %v4172_v55  ;;  %v10886_v41 = vld [vmem:[#allocation10 + $0x4] ss:$16 sps:$4 sm:$0xff]   ;;  %11845 = vst [vmem:[#allocation38_spill] sm:$0xff] %v10888_v24  ;;  %v10890_v55 = vld [vmem:[#allocation10] ss:$16 sps:$4 sm:$0xff]  }
 0x61e   :  { %4591 = vmatpush1.bf16.msra.mxu0 %v10826_v2  ;;  %4632 = vmatpush1.bf16.msra.mxu1 %v10828_v35  ;;  %v4177_v35 = vld [vmem:[#allocation9 + $0x1d8] sm:$0xff]  ;;  %11839 = vst [vmem:[#allocation32_spill] sm:$0xff] %v10864_v62  ;;  %11844 = vst [vmem:[#allocation37_spill] sm:$0xff] %v10886_v41 }
 0x61f   :  { %4592 = vmatprep.subr.bf16.mxu0 %v10832_v17  ;;  %4633 = vmatprep.subr.bf16.mxu1 %v10834_v61  ;;  %v4176_v61 = vld [vmem:[#allocation9 + $0x1d0] sm:$0xff]  ;;  %v4181_v2 = vld [vmem:[#allocation9 + $0x1f8] sm:$0xff]  ;;  %11838 = vst [vmem:[#allocation31_spill] sm:$0xff] %v10862_v11  ;;  %11846 = vst [vmem:[#allocation39_spill] sm:$0xff] %v10890_v55 }
 0x620   :  { %v4180_v17 = vld [vmem:[#allocation9 + $0x1f0] sm:$0xff]  ;;  %v10870_v4 = vcombine.high %v4177_v35, %v4181_v2  ;;  %v10892_v42 = vld [vmem:[#allocation10 + $0x8] ss:$16 sps:$4 sm:$0xff]  }
 0x621   :  { %v10868_v26 = vcombine.high %v4176_v61, %v4180_v17  ;;  %11847 = vst [vmem:[#allocation40_spill] sm:$0xff] %v10892_v42 }
 0x622   :  { %4593 = vmatpush1.bf16.msra.mxu0 %v10838_v7  ;;  %4634 = vmatpush1.bf16.msra.mxu1 %v10840_v30  ;;  %11841 = vst [vmem:[#allocation34_spill] sm:$0xff] %v10870_v4 }
 0x623   :  { %4594 = vmatprep.subr.bf16.mxu0 %v10844_v25  ;;  %4635 = vmatprep.subr.bf16.mxu1 %v10846_v56  ;;  %11840 = vst [vmem:[#allocation33_spill] sm:$0xff] %v10868_v26  ;;  %v10874_v56 = vcombine.low %v4176_v61, %v4180_v17  ;;  %v10904_v17 = vld [vmem:[#allocation10 + $0x28] ss:$16 sps:$4 sm:$0xff]   ;;  %v10910_v61 = vld [vmem:[#allocation10 + $0x44] ss:$16 sps:$4 sm:$0xff]  }
 0x624   :  { %11851 = vst [vmem:[#allocation44_spill] sm:$0xff] %v10904_v17  ;;  %11852 = vst [vmem:[#allocation45_spill] sm:$0xff] %v10910_v61 }
 0x625   :  { %11842 = vst [vmem:[#allocation35_spill] sm:$0xff] %v10874_v56 }
 0x626   :  { %4595 = vmatpush1.bf16.msra.mxu0 %v10850_v19  ;;  %4636 = vmatpush1.bf16.msra.mxu1 %v10852_v23  ;;  %v10876_v19 = vcombine.low %v4177_v35, %v4181_v2  ;;  %v10900_v2 = vld [vmem:[#allocation10 + $0x2c] ss:$16 sps:$4 sm:$0xff]   ;;  %v10902_v35 = vld [vmem:[#allocation10 + $0x20] ss:$16 sps:$4 sm:$0xff]  }
 0x627   :  { %4596 = vmatprep.subr.bf16.mxu0 %v10856_v34  ;;  %4637 = vmatprep.subr.bf16.mxu1 %v10858_v1  ;;  %11849 = vst [vmem:[#allocation42_spill] sm:$0xff] %v10900_v2  ;;  %11850 = vst [vmem:[#allocation43_spill] sm:$0xff] %v10902_v35 }
 0x628   :  { %11843 = vst [vmem:[#allocation36_spill] sm:$0xff] %v10876_v19 }
 0x62a   :  { %4597 = vmatpush1.bf16.msra.mxu0 %v10862_v11  ;;  %4638 = vmatpush1.bf16.msra.mxu1 %v10864_v62 }
 0x62b   :  { %4598 = vmatprep.subr.bf16.mxu0 %v10868_v26  ;;  %4639 = vmatprep.subr.bf16.mxu1 %v10870_v4 }
 0x62e   :  { %4599 = vmatpush1.bf16.msra.mxu0 %v10874_v56  ;;  %4640 = vmatpush1.bf16.msra.mxu1 %v10876_v19 }
 0x62f   :  { %4888 = vmatprep.subr.bf16.mxu0 %v10886_v41  ;;  %4929 = vmatprep.subr.bf16.mxu1 %v10888_v24  ;;  %v10916_v24 = vld [vmem:[#allocation10 + $0x48] ss:$16 sps:$4 sm:$0xff]  }
 0x630   :  { %11855 = vst [vmem:[#allocation48_spill] sm:$0xff] %v10916_v24 }
 0x631   :  { %4617 = vmatmul.mubr.bf16.vlgmr.msra.gmra.mrb[52].mxu0 %v10790_v0  ;;  %4658 = vmatmul.mubr.bf16.vlgmr.msra.gmra.mrb[52].mxu1 %v10790_v0  ;;  %v10898_v0 = vld [vmem:[#allocation10 + $0x24] ss:$16 sps:$4 sm:$0xff]  }
 0x632   :  { %4920 = vmatprep.mubr.bf16.mxu0 %v11541_v52  ;;  %4961 = vmatprep.mubr.bf16.mxu1 %v11541_v52  ;;  %11848 = vst [vmem:[#allocation41_spill] sm:$0xff] %v10898_v0 }
 0x633   :  { %4889 = vmatpush1.bf16.msra.mxu0 %v10890_v55  ;;  %4930 = vmatpush1.bf16.msra.mxu1 %v10892_v42  ;;  %v10912_v55 = vld [vmem:[#allocation10 + $0x4c] ss:$16 sps:$4 sm:$0xff]   ;;  %v10914_v42 = vld [vmem:[#allocation10 + $0x40] ss:$16 sps:$4 sm:$0xff]  }
 0x634   :  { %4890 = vmatprep.subr.bf16.mxu0 %v10898_v0  ;;  %4931 = vmatprep.subr.bf16.mxu1 %v10900_v2  ;;  %11853 = vst [vmem:[#allocation46_spill] sm:$0xff] %v10912_v55  ;;  %11854 = vst [vmem:[#allocation47_spill] sm:$0xff] %v10914_v42  ;;  %v10922_v2 = vld [vmem:[#allocation10 + $0x64] ss:$16 sps:$4 sm:$0xff]   ;;  %v10928_v0 = vld [vmem:[#allocation10 + $0x68] ss:$16 sps:$4 sm:$0xff]  }
 0x635   :  { %11856 = vst [vmem:[#allocation73_spill] sm:$0xff] %v10922_v2  ;;  %11859 = vst [vmem:[#allocation76_spill] sm:$0xff] %v10928_v0 }
 0x637   :  { %4891 = vmatpush1.bf16.msra.mxu0 %v10902_v35  ;;  %4932 = vmatpush1.bf16.msra.mxu1 %v10904_v17  ;;  %v10924_v35 = vld [vmem:[#allocation10 + $0x6c] ss:$16 sps:$4 sm:$0xff]   ;;  %v10926_v17 = vld [vmem:[#allocation10 + $0x60] ss:$16 sps:$4 sm:$0xff]  }
 0x638   :  { %4892 = vmatprep.subr.bf16.mxu0 %v10910_v61  ;;  %4933 = vmatprep.subr.bf16.mxu1 %v10912_v55  ;;  %11857 = vst [vmem:[#allocation74_spill] sm:$0xff] %v10924_v35  ;;  %11858 = vst [vmem:[#allocation75_spill] sm:$0xff] %v10926_v17  ;;  %v10934_v55 = vld [vmem:[#allocation10 + $0x84] ss:$16 sps:$4 sm:$0xff]   ;;  %v10940_v61 = vld [vmem:[#allocation10 + $0x88] ss:$16 sps:$4 sm:$0xff]  }
 0x639   :  { %11860 = vst [vmem:[#allocation77_spill] sm:$0xff] %v10934_v55  ;;  %11863 = vst [vmem:[#allocation80_spill] sm:$0xff] %v10940_v61 }
 0x63b   :  { %4893 = vmatpush1.bf16.msra.mxu0 %v10914_v42  ;;  %4934 = vmatpush1.bf16.msra.mxu1 %v10916_v24  ;;  %v10936_v42 = vld [vmem:[#allocation10 + $0x8c] ss:$16 sps:$4 sm:$0xff]   ;;  %v10938_v24 = vld [vmem:[#allocation10 + $0x80] ss:$16 sps:$4 sm:$0xff]  }
 0x63c   :  { %4894 = vmatprep.subr.bf16.mxu0 %v10922_v2  ;;  %4935 = vmatprep.subr.bf16.mxu1 %v10924_v35  ;;  %11861 = vst [vmem:[#allocation78_spill] sm:$0xff] %v10936_v42  ;;  %11862 = vst [vmem:[#allocation79_spill] sm:$0xff] %v10938_v24  ;;  %v10946_v35 = vld [vmem:[#allocation10 + $0xa4] ss:$16 sps:$4 sm:$0xff]   ;;  %v10952_v2 = vld [vmem:[#allocation10 + $0xa8] ss:$16 sps:$4 sm:$0xff]  }
 0x63d   :  { %11864 = vst [vmem:[#allocation81_spill] sm:$0xff] %v10946_v35  ;;  %11867 = vst [vmem:[#allocation84_spill] sm:$0xff] %v10952_v2 }
 0x63f   :  { %4895 = vmatpush1.bf16.msra.mxu0 %v10926_v17  ;;  %4936 = vmatpush1.bf16.msra.mxu1 %v10928_v0  ;;  %v10948_v17 = vld [vmem:[#allocation10 + $0xac] ss:$16 sps:$4 sm:$0xff]   ;;  %v10950_v0 = vld [vmem:[#allocation10 + $0xa0] ss:$16 sps:$4 sm:$0xff]  }
 0x640   :  { %4896 = vmatprep.subr.bf16.mxu0 %v10934_v55  ;;  %4937 = vmatprep.subr.bf16.mxu1 %v10936_v42  ;;  %11865 = vst [vmem:[#allocation82_spill] sm:$0xff] %v10948_v17  ;;  %11866 = vst [vmem:[#allocation83_spill] sm:$0xff] %v10950_v0  ;;  %v10958_v42 = vld [vmem:[#allocation10 + $0xc4] ss:$16 sps:$4 sm:$0xff]   ;;  %v10964_v55 = vld [vmem:[#allocation10 + $0xc8] ss:$16 sps:$4 sm:$0xff]  }
 0x641   :  { %11868 = vst [vmem:[#allocation85_spill] sm:$0xff] %v10958_v42  ;;  %11871 = vst [vmem:[#allocation88_spill] sm:$0xff] %v10964_v55 }
 0x643   :  { %4897 = vmatpush1.bf16.msra.mxu0 %v10938_v24  ;;  %4938 = vmatpush1.bf16.msra.mxu1 %v10940_v61  ;;  %v10960_v24 = vld [vmem:[#allocation10 + $0xcc] ss:$16 sps:$4 sm:$0xff]   ;;  %v10962_v61 = vld [vmem:[#allocation10 + $0xc0] ss:$16 sps:$4 sm:$0xff]  }
 0x644   :  { %4898 = vmatprep.subr.bf16.mxu0 %v10946_v35  ;;  %4939 = vmatprep.subr.bf16.mxu1 %v10948_v17  ;;  %11869 = vst [vmem:[#allocation86_spill] sm:$0xff] %v10960_v24  ;;  %11870 = vst [vmem:[#allocation87_spill] sm:$0xff] %v10962_v61  ;;  %v10970_v17 = vld [vmem:[#allocation10 + $0xe4] ss:$16 sps:$4 sm:$0xff]   ;;  %v10976_v35 = vld [vmem:[#allocation10 + $0xe8] ss:$16 sps:$4 sm:$0xff]  }
 0x645   :  { %11872 = vst [vmem:[#allocation89_spill] sm:$0xff] %v10970_v17  ;;  %11875 = vst [vmem:[#allocation92_spill] sm:$0xff] %v10976_v35 }
 0x647   :  { %4899 = vmatpush1.bf16.msra.mxu0 %v10950_v0  ;;  %4940 = vmatpush1.bf16.msra.mxu1 %v10952_v2  ;;  %v10972_v0 = vld [vmem:[#allocation10 + $0xec] ss:$16 sps:$4 sm:$0xff]   ;;  %v10974_v2 = vld [vmem:[#allocation10 + $0xe0] ss:$16 sps:$4 sm:$0xff]  }
 0x648   :  { %4900 = vmatprep.subr.bf16.mxu0 %v10958_v42  ;;  %4941 = vmatprep.subr.bf16.mxu1 %v10960_v24  ;;  %11873 = vst [vmem:[#allocation90_spill] sm:$0xff] %v10972_v0  ;;  %11874 = vst [vmem:[#allocation91_spill] sm:$0xff] %v10974_v2 }
 0x64b   :  { %4901 = vmatpush1.bf16.msra.mxu0 %v10962_v61  ;;  %4942 = vmatpush1.bf16.msra.mxu1 %v10964_v55 }
 0x64c   :  { %4902 = vmatprep.subr.bf16.mxu0 %v10970_v17  ;;  %4943 = vmatprep.subr.bf16.mxu1 %v10972_v0 }
 0x64f   :  { %4903 = vmatpush1.bf16.msra.mxu0 %v10974_v2  ;;  %4944 = vmatpush1.bf16.msra.mxu1 %v10976_v35 }
 0x650   :  { %5387 = vmatprep.subr.bf16.mxu0 %v10662_v48  ;;  %5428 = vmatprep.subr.bf16.mxu1 %v10668_v27 }
 0x6e4   :  { %v4536_v55 = vpop.f32.mrb[48].mxu0  ;;  %v4577_v61 = vpop.f32.mrb[48].mxu1 }
 0x6e5   :  { %v8763_v24 = vadd.f32 %v4536_v55, %v11809_v44  ;;  %v4538_v42 = vpop.f32.mrb[49].mxu0  ;;  %v4579_v41 = vpop.f32.mrb[49].mxu1  ;;  %v8765_v27 = vadd.f32 %v4577_v61, %v11810_v8 }
 0x6e6   :  { %v8764_v19 = vadd.f32 %v4538_v42, %v10091_v9  ;;  %v4540_v56 = vpop.f32.mrb[50].mxu0  ;;  %v4581_v17 = vpop.f32.mrb[50].mxu1  ;;  %v8766_v48 = vadd.f32 %v4579_v41, %v10097_v13  ;;  %v11876_v41 = vld [vmem:[#allocation60_spill] sm:$0xff] }
 0x6e7   :  { %v8313_v4 = vmul.f32 -1.442695, %v8763_v24  ;;  %v4541_v0 = vpop.f32.mrb[51].mxu0  ;;  %v4582_v26 = vpop.f32.mrb[51].mxu1  ;;  %v11877_v17 = vld [vmem:[#allocation63_spill] sm:$0xff] }
 0x6e8   :  { %v8314_v2 = vmul.f32 -1.442695, %v8764_v19  ;;  %v8315_v35 = vmul.f32 -1.442695, %v8766_v48  ;;  %v477_v61 = vadd.f32 %v11877_v17, %v11813_v6 }
 0x6e9   :  { %9308 = vpow2.f32 %v8313_v4 }
 0x6ea   :  { %9310 = vpow2.f32 %v8314_v2  ;;  %v404_v2 = vadd.f32 %v11876_v41, %v11811_v38 }
 0x6eb   :  { %9312 = vpow2.f32 %v8315_v35 }
 0x6ec   :  { %9314 = vtanh.f32 %v8765_v27 }
 0x6f3   :  { %v9309_v62 = vpop.eup %9308 }
 0x6f4   :  { %v9311_v11 = vpop.eup %9310  ;;  %v4673_v55 = vadd.f32 1.0, %v9309_v62  ;;  %v11878_v62 = vld [vmem:[#allocation62_spill] sm:$0xff] }
 0x6f5   :  { %v4679_v44 = vadd.f32 1.0, %v9311_v11  ;;  %v9313_v56 = vpop.eup %9312  ;;  %v406_v35 = vadd.f32 %v11878_v62, %v11815_v14  ;;  %v11879_v11 = vld [vmem:[#allocation64_spill] sm:$0xff] }
 0x6f6   :  { %9316 = vrcp.f32 %v4673_v55  ;;  %v9315_v24 = vpop.eup %9314  ;;  %v4686_v4 = vadd.f32 1.0, %v9313_v56 }
 0x6f7   :  { %9318 = vrcp.f32 %v4679_v44  ;;  %v479_v44 = vadd.f32 %v11879_v11, %v9824_v20 }
 0x6f8   :  { %9320 = vrcp.f32 %v4686_v4 }
 0x700   :  { %v9317_v42 = vpop.eup %9316 }
 0x701   :  { %v9319_v26 = vpop.eup %9318  ;;  %v4690_v19 = vmul.f32 %v9317_v42, %v9315_v24 }
 0x702   :  { %v4689_v0 = vmul.f32 %v9319_v26, %v10685_v18 }
 0x704   :  { %v10997_v48 = vadd.f32 %v4690_v19, %v4689_v0  ;;  %v4618_v27 = vpop.f32.mrb[52].mxu0  ;;  %v4659_v55 = vpop.f32.mrb[52].mxu1 }
 0x705   :  { %v4974_v56 = vadd.f32 %v4618_v27, %v404_v2  ;;  %v4976_v24 = vadd.f32 %v4659_v55, %v477_v61  ;;  %v4620_v18 = vpop.f32.mrb[53].mxu0  ;;  %v4661_v42 = vpop.f32.mrb[53].mxu1 }
 0x706   :  { %v4975_v26 = vadd.f32 %v4620_v18, %v406_v35  ;;  %v4977_v41 = vadd.f32 %v4661_v42, %v479_v44  ;;  %v4622_v38 = vpop.f32.mrb[54].mxu0  ;;  %v4663_v8 = vpop.f32.mrb[54].mxu1  ;;  %9322 = vtanh.f32 %v10997_v48  ;;  %v11902_v35 = vld [vmem:[#allocation33_spill] sm:$0xff]  ;;  %v11912_v18 = vld [vmem:[#allocation43_spill] sm:$0xff]  ;;  %v11913_v42 = vld [vmem:[#allocation44_spill] sm:$0xff] }
 0x707   :  { %v8348_v17 = vmul.f32 -1.442695, %v4974_v56  ;;  %v4623_v62 = vpop.f32.mrb[55].mxu0  ;;  %v4664_v14 = vpop.f32.mrb[55].mxu1  ;;  %v11906_v44 = vld [vmem:[#allocation37_spill] sm:$0xff]  ;;  %v11907_v56 = vld [vmem:[#allocation38_spill] sm:$0xff] }
 0x708   :  { %v8349_v6 = vmul.f32 -1.442695, %v4975_v26  ;;  %v9321_v19 = vpop.eup %9320  ;;  %v8350_v11 = vmul.f32 -1.442695, %v4977_v41  ;;  %v11914_v26 = vld [vmem:[#allocation45_spill] sm:$0xff]  ;;  %v11915_v41 = vld [vmem:[#allocation46_spill] sm:$0xff] }
 0x709   :  { %9324 = vpow2.f32 %v8348_v17  ;;  %v11916_v17 = vld [vmem:[#allocation47_spill] sm:$0xff]  ;;  %v11917_v62 = vld [vmem:[#allocation48_spill] sm:$0xff] }
 0x70a   :  { %9326 = vpow2.f32 %v8349_v6 }
 0x70b   :  { %9328 = vpow2.f32 %v8350_v11  ;;  %v11920_v11 = vld [vmem:[#allocation75_spill] sm:$0xff] }
 0x70c   :  { %9330 = vtanh.f32 %v4976_v24  ;;  %v11911_v24 = vld [vmem:[#allocation42_spill] sm:$0xff] }
 0x710   :  { %v9323_v0 = vpop.eup %9322 }
 0x711   :  { %v4693_v4 = vmul.f32 %v9323_v0, %v9321_v19  ;;  %v11918_v19 = vld [vmem:[#allocation73_spill] sm:$0xff]  ;;  %v11919_v0 = vld [vmem:[#allocation74_spill] sm:$0xff] }
 0x713   :  { %v9325_v2 = vpop.eup %9324  ;;  %v4694_v61 = vpack.c.bf16 %v4693_v4, %v4693_v4  ;;  %v11921_v4 = vld [vmem:[#allocation76_spill] sm:$0xff] }
 0x714   :  { %v9327_v27 = vpop.eup %9326  ;;  %v4981_v55 = vadd.f32 1.0, %v9325_v2  ;;  %v11922_v2 = vld [vmem:[#allocation77_spill] sm:$0xff] }
 0x715   :  { %v4987_v38 = vadd.f32 1.0, %v9327_v27  ;;  %4695 = vst [vmem:[#allocation3 + $0x10] sm:$0xf] %v4694_v61  ;;  %4921 = vmatmul.mubr.bf16.vlgmr.msra.gmra.mrb[56].mxu0 %v4694_v61  ;;  %4962 = vmatmul.mubr.bf16.vlgmr.msra.gmra.mrb[56].mxu1 %v4694_v61  ;;  %v11923_v61 = vld [vmem:[#allocation78_spill] sm:$0xff]  ;;  %v11924_v27 = vld [vmem:[#allocation79_spill] sm:$0xff] }
 0x716   :  { %9332 = vrcp.f32 %v4981_v55  ;;  %5388 = vmatpush1.bf16.msra.mxu0 %v10664_v63  ;;  %5429 = vmatpush1.bf16.msra.mxu1 %v10666_v58  ;;  %v9329_v63 = vpop.eup %9328  ;;  %v11925_v55 = vld [vmem:[#allocation80_spill] sm:$0xff] }
 0x717   :  { %9334 = vrcp.f32 %v4987_v38  ;;  %5389 = vmatprep.subr.bf16.mxu0 %v10688_v37  ;;  %5430 = vmatprep.subr.bf16.mxu1 %v10690_v59  ;;  %v9331_v58 = vpop.eup %9330  ;;  %v4994_v37 = vadd.f32 1.0, %v9329_v63  ;;  %v11926_v38 = vld [vmem:[#allocation81_spill] sm:$0xff]  ;;  %v11927_v63 = vld [vmem:[#allocation82_spill] sm:$0xff] }
 0x718   :  { %5419 = vmatprep.mubr.bf16.mxu0 %v11541_v52  ;;  %5460 = vmatprep.mubr.bf16.mxu1 %v11541_v52 }
 0x719   :  { %9336 = vrcp.f32 %v4994_v37  ;;  %v11932_v37 = vld [vmem:[#allocation87_spill] sm:$0xff] }
 0x71a   :  { %5390 = vmatpush1.bf16.msra.mxu0 %v10694_v50  ;;  %5431 = vmatpush1.bf16.msra.mxu1 %v10696_v54 }
 0x71b   :  { %5391 = vmatprep.subr.bf16.mxu0 %v10700_v53  ;;  %5432 = vmatprep.subr.bf16.mxu1 %v10702_v10 }
 0x71e   :  { %5392 = vmatpush1.bf16.msra.mxu0 %v10708_v39  ;;  %5433 = vmatpush1.bf16.msra.mxu1 %v10710_v32  ;;  %v11880_v32 = vld [vmem:[#allocation103_spill] sm:$0xff] }
 0x71f   :  { %5393 = vmatprep.subr.bf16.mxu0 %v10714_v45  ;;  %5434 = vmatprep.subr.bf16.mxu1 %v10716_v49  ;;  %v11881_v45 = vld [vmem:[#allocation104_spill] sm:$0xff]  ;;  %v11882_v49 = vld [vmem:[#allocation49_spill] sm:$0xff] }
 0x720   :  { %v9333_v8 = vpop.eup %9332 }
 0x721   :  { %v9335_v6 = vpop.eup %9334  ;;  %v4998_v14 = vmul.f32 %v9333_v8, %v9331_v58  ;;  %v11928_v58 = vld [vmem:[#allocation83_spill] sm:$0xff]  ;;  %v11929_v8 = vld [vmem:[#allocation84_spill] sm:$0xff] }
 0x722   :  { %v4997_v59 = vmul.f32 %v9335_v6, %v10743_v60  ;;  %5394 = vmatpush1.bf16.msra.mxu0 %v10720_v22  ;;  %5435 = vmatpush1.bf16.msra.mxu1 %v10722_v29  ;;  %v11883_v22 = vld [vmem:[#allocation51_spill] sm:$0xff]  ;;  %v11884_v29 = vld [vmem:[#allocation50_spill] sm:$0xff]  ;;  %v11891_v60 = vld [vmem:[#allocation21_spill] sm:$0xff] }
 0x723   :  { %5395 = vmatprep.subr.bf16.mxu0 %v10726_v16  ;;  %5436 = vmatprep.subr.bf16.mxu1 %v10728_v43  ;;  %v9337_v54 = vpop.eup %9336  ;;  %v11885_v16 = vld [vmem:[#allocation53_spill] sm:$0xff]  ;;  %v11886_v43 = vld [vmem:[#allocation52_spill] sm:$0xff] }
 0x724   :  { %v11019_v50 = vadd.f32 %v4998_v14, %v4997_v59  ;;  %v11930_v6 = vld [vmem:[#allocation85_spill] sm:$0xff]  ;;  %v11931_v14 = vld [vmem:[#allocation86_spill] sm:$0xff]  ;;  %v11933_v59 = vld [vmem:[#allocation88_spill] sm:$0xff] }
 0x726   :  { %5396 = vmatpush1.bf16.msra.mxu0 %v10733_v31  ;;  %5437 = vmatpush1.bf16.msra.mxu1 %v10735_v36  ;;  %9338 = vtanh.f32 %v11019_v50  ;;  %v11887_v31 = vld [vmem:[#allocation55_spill] sm:$0xff]  ;;  %v11888_v36 = vld [vmem:[#allocation54_spill] sm:$0xff] }
 0x727   :  { %5397 = vmatprep.subr.bf16.mxu0 %v10739_v51  ;;  %5438 = vmatprep.subr.bf16.mxu1 %v10741_v28  ;;  %v11889_v51 = vld [vmem:[#allocation56_spill] sm:$0xff] }
 0x728   :  { %v11890_v28 = vld [vmem:[#allocation20_spill] sm:$0xff] }
 0x72a   :  { %5398 = vmatpush1.bf16.msra.mxu0 %v10747_v33  ;;  %5439 = vmatpush1.bf16.msra.mxu1 %v10749_v47  ;;  %v11892_v33 = vld [vmem:[#allocation18_spill] sm:$0xff]  ;;  %v11893_v47 = vld [vmem:[#allocation19_spill] sm:$0xff] }
 0x72b   :  { %5399 = vmatprep.subr.bf16.mxu0 %v10754_v57  ;;  %5440 = vmatprep.subr.bf16.mxu1 %v10756_v15  ;;  %v11894_v57 = vld [vmem:[#allocation25_spill] sm:$0xff]  ;;  %v11895_v15 = vld [vmem:[#allocation26_spill] sm:$0xff] }
 0x72e   :  { %5400 = vmatpush1.bf16.msra.mxu0 %v10760_v5  ;;  %5441 = vmatpush1.bf16.msra.mxu1 %v10762_v12  ;;  %v11896_v5 = vld [vmem:[#allocation27_spill] sm:$0xff]  ;;  %v11897_v12 = vld [vmem:[#allocation28_spill] sm:$0xff] }
 0x72f   :  { %5401 = vmatprep.subr.bf16.mxu0 %v10766_v40  ;;  %5442 = vmatprep.subr.bf16.mxu1 %v10768_v3  ;;  %v11898_v40 = vld [vmem:[#allocation29_spill] sm:$0xff]  ;;  %v11899_v3 = vld [vmem:[#allocation30_spill] sm:$0xff] }
 0x730   :  { %v9339_v53 = vpop.eup %9338 }
 0x731   :  { %v5001_v10 = vmul.f32 %v9339_v53, %v9337_v54  ;;  %v11934_v54 = vld [vmem:[#allocation89_spill] sm:$0xff]  ;;  %v11935_v53 = vld [vmem:[#allocation90_spill] sm:$0xff] }
 0x732   :  { %5402 = vmatpush1.bf16.msra.mxu0 %v10772_v21  ;;  %5443 = vmatpush1.bf16.msra.mxu1 %v10774_v46  ;;  %v11900_v21 = vld [vmem:[#allocation31_spill] sm:$0xff]  ;;  %v11901_v46 = vld [vmem:[#allocation32_spill] sm:$0xff] }
 0x733   :  { %v5002_v39 = vpack.c.bf16 %v5001_v10, %v5001_v10  ;;  %5469 = vmatprep.subr.bf16.mxu0 %v11880_v32  ;;  %5510 = vmatprep.subr.bf16.mxu1 %v11881_v45  ;;  %v11936_v10 = vld [vmem:[#allocation91_spill] sm:$0xff]  ;;  %v5888_v32 = vld [vmem:[#allocation9] sm:$0xff] }
 0x734   :  { %v5892_v45 = vld [vmem:[#allocation9 + $0x20] sm:$0xff] }
 0x735   :  { %5420 = vmatmul.mubr.bf16.vlgmr.msra.gmra.mrb[56].mxu0 %v5002_v39  ;;  %5461 = vmatmul.mubr.bf16.vlgmr.msra.gmra.mrb[56].mxu1 %v5002_v39 }
 0x736   :  { %5470 = vmatpush1.bf16.msra.mxu0 %v11882_v49  ;;  %5511 = vmatpush1.bf16.msra.mxu1 %v11883_v22  ;;  %v5889_v49 = vld [vmem:[#allocation9 + $0x8] sm:$0xff]  ;;  %v11104_v22 = vcombine.high %v5888_v32, %v5892_v45 }
 0x737   :  { %5471 = vmatprep.subr.bf16.mxu0 %v11884_v29  ;;  %5512 = vmatprep.subr.bf16.mxu1 %v11885_v16  ;;  %v5893_v29 = vld [vmem:[#allocation9 + $0x28] sm:$0xff]  ;;  %v11106_v16 = vcombine.low %v5888_v32, %v5892_v45 }
 0x738   :  { %5501 = vmatprep.mubr.bf16.mxu0 %v11541_v52  ;;  %5542 = vmatprep.mubr.bf16.mxu1 %v11541_v52 }
 0x73a   :  { %5472 = vmatpush1.bf16.msra.mxu0 %v11886_v43  ;;  %5513 = vmatpush1.bf16.msra.mxu1 %v11887_v31  ;;  %v11108_v43 = vcombine.low %v5889_v49, %v5893_v29  ;;  %v11110_v31 = vcombine.high %v5889_v49, %v5893_v29 }
 0x73b   :  { %5473 = vmatprep.subr.bf16.mxu0 %v11888_v36  ;;  %5514 = vmatprep.subr.bf16.mxu1 %v11889_v51 }
 0x73e   :  { %5474 = vmatpush1.bf16.msra.mxu0 %v11890_v28  ;;  %5515 = vmatpush1.bf16.msra.mxu1 %v11891_v60  ;;  %v11938_v28 = vld [vmem:[#allocation105_spill] sm:$0xff] }
 0x73f   :  { %5475 = vmatprep.subr.bf16.mxu0 %v11892_v33  ;;  %5516 = vmatprep.subr.bf16.mxu1 %v11893_v47 }
 0x742   :  { %5476 = vmatpush1.bf16.msra.mxu0 %v11894_v57  ;;  %5517 = vmatpush1.bf16.msra.mxu1 %v11895_v15 }
 0x743   :  { %5477 = vmatprep.subr.bf16.mxu0 %v11896_v5  ;;  %5518 = vmatprep.subr.bf16.mxu1 %v11897_v12 }
 0x746   :  { %5478 = vmatpush1.bf16.msra.mxu0 %v10838_v7  ;;  %5519 = vmatpush1.bf16.msra.mxu1 %v10840_v30  ;;  %v11903_v7 = vld [vmem:[#allocation34_spill] sm:$0xff]  ;;  %v11904_v30 = vld [vmem:[#allocation35_spill] sm:$0xff] }
 0x747   :  { %5479 = vmatprep.subr.bf16.mxu0 %v10844_v25  ;;  %5520 = vmatprep.subr.bf16.mxu1 %v11898_v40  ;;  %v11905_v25 = vld [vmem:[#allocation36_spill] sm:$0xff] }
 0x74a   :  { %5480 = vmatpush1.bf16.msra.mxu0 %v11899_v3  ;;  %5521 = vmatpush1.bf16.msra.mxu1 %v10852_v23  ;;  %v11908_v23 = vld [vmem:[#allocation39_spill] sm:$0xff] }
 0x74b   :  { %5481 = vmatprep.subr.bf16.mxu0 %v10856_v34  ;;  %5522 = vmatprep.subr.bf16.mxu1 %v10858_v1  ;;  %v11909_v34 = vld [vmem:[#allocation40_spill] sm:$0xff]  ;;  %v11910_v1 = vld [vmem:[#allocation41_spill] sm:$0xff] }
 0x74e   :  { %5482 = vmatpush1.bf16.msra.mxu0 %v11900_v21  ;;  %5523 = vmatpush1.bf16.msra.mxu1 %v11901_v46 }
 0x74f   :  { %5483 = vmatprep.subr.bf16.mxu0 %v11902_v35  ;;  %5524 = vmatprep.subr.bf16.mxu1 %v11903_v7  ;;  %v11939_v7 = vld [vmem:[#allocation106_spill] sm:$0xff] }
 0x752   :  { %5484 = vmatpush1.bf16.msra.mxu0 %v11904_v30  ;;  %5525 = vmatpush1.bf16.msra.mxu1 %v11905_v25 }
 0x753   :  { %5773 = vmatprep.subr.bf16.mxu0 %v11906_v44  ;;  %5814 = vmatprep.subr.bf16.mxu1 %v11907_v56 }
 0x755   :  { %5502 = vmatmul.mubr.bf16.vlgmr.msra.gmra.mrb[60].mxu0 %v5002_v39  ;;  %5543 = vmatmul.mubr.bf16.vlgmr.msra.gmra.mrb[60].mxu1 %v5002_v39  ;;  %v11937_v39 = vld [vmem:[#allocation92_spill] sm:$0xff] }
 0x756   :  { %5774 = vmatpush1.bf16.msra.mxu0 %v11908_v23  ;;  %5815 = vmatpush1.bf16.msra.mxu1 %v11909_v34 }
 0x757   :  { %5775 = vmatprep.subr.bf16.mxu0 %v11910_v1  ;;  %5816 = vmatprep.subr.bf16.mxu1 %v11911_v24 }
 0x758   :  { %5805 = vmatprep.mubr.bf16.mxu0 %v11541_v52  ;;  %5846 = vmatprep.mubr.bf16.mxu1 %v11541_v52 }
 0x75a   :  { %5776 = vmatpush1.bf16.msra.mxu0 %v11912_v18  ;;  %5817 = vmatpush1.bf16.msra.mxu1 %v11913_v42 }
 0x75b   :  { %5777 = vmatprep.subr.bf16.mxu0 %v11914_v26  ;;  %5818 = vmatprep.subr.bf16.mxu1 %v11915_v41 }
 0x75e   :  { %5778 = vmatpush1.bf16.msra.mxu0 %v11916_v17  ;;  %5819 = vmatpush1.bf16.msra.mxu1 %v11917_v62  ;;  %v11940_v17 = vld [vmem:[#allocation22_spill] sm:$0xff]  ;;  %v11941_v62 = vld [vmem:[#allocation65_spill] sm:$0xff] }
 0x75f   :  { %5779 = vmatprep.subr.bf16.mxu0 %v11918_v19  ;;  %5820 = vmatprep.subr.bf16.mxu1 %v11919_v0  ;;  %v410_v19 = vadd.f32 %v11941_v62, %v11940_v17  ;;  %v11942_v0 = vld [vmem:[#allocation24_spill] sm:$0xff] }
 0x762   :  { %5780 = vmatpush1.bf16.msra.mxu0 %v11920_v11  ;;  %5821 = vmatpush1.bf16.msra.mxu1 %v11921_v4  ;;  %v11943_v11 = vld [vmem:[#allocation68_spill] sm:$0xff] }
 0x763   :  { %5781 = vmatprep.subr.bf16.mxu0 %v11922_v2  ;;  %5822 = vmatprep.subr.bf16.mxu1 %v11923_v61  ;;  %v483_v4 = vadd.f32 %v11943_v11, %v11942_v0  ;;  %v11944_v2 = vld [vmem:[#allocation23_spill] sm:$0xff]  ;;  %v11945_v61 = vld [vmem:[#allocation66_spill] sm:$0xff] }
 0x766   :  { %5782 = vmatpush1.bf16.msra.mxu0 %v11924_v27  ;;  %5823 = vmatpush1.bf16.msra.mxu1 %v11925_v55  ;;  %v412_v27 = vadd.f32 %v11945_v61, %v11944_v2  ;;  %v11946_v55 = vld [vmem:[#allocation70_spill] sm:$0xff]  ;;  %v5920_v61 = vld [vmem:[#allocation9 + $0x100] sm:$0xff] }
 0x767   :  { %5783 = vmatprep.subr.bf16.mxu0 %v11926_v38  ;;  %5824 = vmatprep.subr.bf16.mxu1 %v11927_v63  ;;  %v485_v38 = vadd.f32 %v11946_v55, %v9824_v20  ;;  %v5921_v55 = vld [vmem:[#allocation9 + $0x108] sm:$0xff] }
 0x76a   :  { %5784 = vmatpush1.bf16.msra.mxu0 %v11928_v58  ;;  %5825 = vmatpush1.bf16.msra.mxu1 %v11929_v8 }
 0x76b   :  { %5785 = vmatprep.subr.bf16.mxu0 %v11930_v6  ;;  %5826 = vmatprep.subr.bf16.mxu1 %v11931_v14 }
 0x76e   :  { %5786 = vmatpush1.bf16.msra.mxu0 %v11932_v37  ;;  %5827 = vmatpush1.bf16.msra.mxu1 %v11933_v59 }
 0x76f   :  { %5787 = vmatprep.subr.bf16.mxu0 %v11934_v54  ;;  %5828 = vmatprep.subr.bf16.mxu1 %v11935_v53 }
 0x772   :  { %5788 = vmatpush1.bf16.msra.mxu0 %v11936_v10  ;;  %5829 = vmatpush1.bf16.msra.mxu1 %v11937_v39 }
 0x773   :  { %6272 = vmatprep.subr.bf16.mxu0 %v11104_v22  ;;  %6313 = vmatprep.subr.bf16.mxu1 %v11110_v31 }
 0x808   :  { %v5421_v36 = vpop.f32.mrb[56].mxu0  ;;  %v5462_v51 = vpop.f32.mrb[56].mxu1 }
 0x809   :  { %v8767_v60 = vadd.f32 %v5421_v36, %v11938_v28  ;;  %v5423_v33 = vpop.f32.mrb[57].mxu0  ;;  %v5464_v47 = vpop.f32.mrb[57].mxu1  ;;  %v8769_v30 = vadd.f32 %v5462_v51, %v11939_v7  ;;  %v5896_v36 = vld [vmem:[#allocation9 + $0x40] sm:$0xff] }
 0x80a   :  { %v8768_v57 = vadd.f32 %v5423_v33, %v10091_v9  ;;  %v5425_v15 = vpop.f32.mrb[58].mxu0  ;;  %v5466_v5 = vpop.f32.mrb[58].mxu1  ;;  %v8770_v46 = vadd.f32 %v5464_v47, %v10097_v13  ;;  %v5900_v33 = vld [vmem:[#allocation9 + $0x60] sm:$0xff]  ;;  %v5897_v47 = vld [vmem:[#allocation9 + $0x48] sm:$0xff] }
 0x80b   :  { %v8415_v12 = vmul.f32 -1.442695, %v8767_v60  ;;  %v5426_v40 = vpop.f32.mrb[59].mxu0  ;;  %v5467_v3 = vpop.f32.mrb[59].mxu1 }
 0x80c   :  { %v8416_v21 = vmul.f32 -1.442695, %v8768_v57  ;;  %v8417_v35 = vmul.f32 -1.442695, %v8770_v46  ;;  %v5901_v57 = vld [vmem:[#allocation9 + $0x68] sm:$0xff]  ;;  %v11130_v40 = vcombine.high %v5896_v36, %v5900_v33 }
 0x80d   :  { %9340 = vpow2.f32 %v8415_v12  ;;  %v11132_v3 = vcombine.high %v5897_v47, %v5901_v57 }
 0x80e   :  { %9342 = vpow2.f32 %v8416_v21  ;;  %v5904_v21 = vld [vmem:[#allocation9 + $0x80] sm:$0xff] }
 0x80f   :  { %9344 = vpow2.f32 %v8417_v35 }
 0x810   :  { %9346 = vtanh.f32 %v8769_v30  ;;  %v5908_v30 = vld [vmem:[#allocation9 + $0xa0] sm:$0xff] }
 0x811   :  { %v11150_v62 = vcombine.low %v5904_v21, %v5908_v30 }
 0x817   :  { %v9341_v25 = vpop.eup %9340 }
 0x818   :  { %v9343_v44 = vpop.eup %9342  ;;  %v5558_v56 = vadd.f32 1.0, %v9341_v25  ;;  %v5905_v25 = vld [vmem:[#allocation9 + $0x88] sm:$0xff] }
 0x819   :  { %v5564_v23 = vadd.f32 1.0, %v9343_v44  ;;  %v9345_v34 = vpop.eup %9344  ;;  %v5909_v44 = vld [vmem:[#allocation9 + $0xa8] sm:$0xff] }
 0x81a   :  { %9348 = vrcp.f32 %v5558_v56  ;;  %v9347_v1 = vpop.eup %9346  ;;  %v5571_v26 = vadd.f32 1.0, %v9345_v34  ;;  %v11138_v34 = vcombine.low %v5897_v47, %v5901_v57  ;;  %v5936_v47 = vld [vmem:[#allocation9 + $0x180] sm:$0xff] }
 0x81b   :  { %9350 = vrcp.f32 %v5564_v23  ;;  %v11136_v23 = vcombine.low %v5896_v36, %v5900_v33 }
 0x81c   :  { %9352 = vrcp.f32 %v5571_v26  ;;  %v5913_v26 = vld [vmem:[#allocation9 + $0xc8] sm:$0xff] }
 0x824   :  { %v9349_v24 = vpop.eup %9348 }
 0x825   :  { %v9351_v18 = vpop.eup %9350  ;;  %v5575_v42 = vmul.f32 %v9349_v24, %v9347_v1  ;;  %v11142_v1 = vcombine.high %v5904_v21, %v5908_v30  ;;  %v11144_v24 = vcombine.high %v5905_v25, %v5909_v44  ;;  %v5944_v30 = vld [vmem:[#allocation9 + $0x1c0] sm:$0xff] }
 0x826   :  { %v5574_v41 = vmul.f32 %v9351_v18, %v10997_v48  ;;  %v9353_v29 = vpop.eup %9352  ;;  %v5912_v18 = vld [vmem:[#allocation9 + $0xc0] sm:$0xff] }
 0x828   :  { %v11127_v63 = vadd.f32 %v5575_v42, %v5574_v41  ;;  %v5503_v58 = vpop.f32.mrb[60].mxu0  ;;  %v5544_v8 = vpop.f32.mrb[60].mxu1  ;;  %v5916_v42 = vld [vmem:[#allocation9 + $0xe0] sm:$0xff]  ;;  %v5917_v41 = vld [vmem:[#allocation9 + $0xe8] sm:$0xff] }
 0x829   :  { %v5859_v6 = vadd.f32 %v5503_v58, %v410_v19  ;;  %v5861_v14 = vadd.f32 %v5544_v8, %v483_v4  ;;  %v5505_v48 = vpop.f32.mrb[61].mxu0  ;;  %v5546_v37 = vpop.f32.mrb[61].mxu1  ;;  %v11152_v19 = vcombine.low %v5905_v25, %v5909_v44  ;;  %v11156_v11 = vcombine.high %v5912_v18, %v5916_v42  ;;  %v5948_v25 = vld [vmem:[#allocation9 + $0x1e0] sm:$0xff]  ;;  %v5945_v44 = vld [vmem:[#allocation9 + $0x1c8] sm:$0xff] }
 0x82a   :  { %v5860_v59 = vadd.f32 %v5505_v48, %v412_v27  ;;  %v5862_v54 = vadd.f32 %v5546_v37, %v485_v38  ;;  %v5507_v53 = vpop.f32.mrb[62].mxu0  ;;  %v5548_v10 = vpop.f32.mrb[62].mxu1  ;;  %9354 = vtanh.f32 %v11127_v63  ;;  %v11158_v4 = vcombine.high %v5913_v26, %v5917_v41  ;;  %v5924_v27 = vld [vmem:[#allocation9 + $0x120] sm:$0xff]  ;;  %v5925_v38 = vld [vmem:[#allocation9 + $0x128] sm:$0xff] }
 0x82b   :  { %v8450_v39 = vmul.f32 -1.442695, %v5859_v6  ;;  %v5508_v32 = vpop.f32.mrb[63].mxu0  ;;  %v5549_v45 = vpop.f32.mrb[63].mxu1  ;;  %v11162_v8 = vcombine.low %v5912_v18, %v5916_v42  ;;  %v11164_v6 = vcombine.low %v5913_v26, %v5917_v41  ;;  %v11168_v48 = vcombine.high %v5920_v61, %v5924_v27  ;;  %v5932_v53 = vld [vmem:[#allocation9 + $0x160] sm:$0xff]  ;;  %v5929_v10 = vld [vmem:[#allocation9 + $0x148] sm:$0xff] }
 0x82c   :  { %v8451_v49 = vmul.f32 -1.442695, %v5860_v59  ;;  %v8452_v60 = vmul.f32 -1.442695, %v5862_v54  ;;  %v11170_v37 = vcombine.high %v5921_v55, %v5925_v38  ;;  %v5928_v59 = vld [vmem:[#allocation9 + $0x140] sm:$0xff]  ;;  %v11175_v36 = vcombine.low %v5920_v61, %v5924_v27  ;;  %v5890_v61 = vld [vmem:[#allocation9 + $0x10] sm:$0xff] }
 0x82d   :  { %9356 = vpow2.f32 %v8450_v39  ;;  %v5933_v39 = vld [vmem:[#allocation9 + $0x168] sm:$0xff]  ;;  %v11208_v26 = vcombine.high %v5944_v30, %v5948_v25  ;;  %v5894_v27 = vld [vmem:[#allocation9 + $0x30] sm:$0xff] }
 0x82e   :  { %9358 = vpow2.f32 %v8451_v49  ;;  %v11183_v33 = vcombine.high %v5929_v10, %v5933_v39  ;;  %v11191_v21 = vcombine.low %v5929_v10, %v5933_v39  ;;  %v5898_v10 = vld [vmem:[#allocation9 + $0x50] sm:$0xff] }
 0x82f   :  { %9360 = vpow2.f32 %v8452_v60  ;;  %v11181_v60 = vcombine.high %v5928_v59, %v5932_v53  ;;  %11947 = vst [vmem:[#allocation93_spill] sm:$0xff] %v11208_v26 }
 0x830   :  { %9362 = vtanh.f32 %v5861_v14 }
 0x834   :  { %v9355_v51 = vpop.eup %9354 }
 0x835   :  { %v5578_v15 = vmul.f32 %v9355_v51, %v9353_v29  ;;  %v11177_v51 = vcombine.low %v5921_v55, %v5925_v38  ;;  %v5891_v55 = vld [vmem:[#allocation9 + $0x18] sm:$0xff] }
 0x836   :  { %v5895_v38 = vld [vmem:[#allocation9 + $0x38] sm:$0xff] }
 0x837   :  { %v9357_v5 = vpop.eup %9356  ;;  %v5579_v12 = vpack.c.bf16 %v5578_v15, %v5578_v15  ;;  %v5937_v15 = vld [vmem:[#allocation9 + $0x188] sm:$0xff] }
 0x838   :  { %v9359_v46 = vpop.eup %9358  ;;  %v5866_v35 = vadd.f32 1.0, %v9357_v5  ;;  %v5941_v5 = vld [vmem:[#allocation9 + $0x1a8] sm:$0xff] }
 0x839   :  { %v5872_v56 = vadd.f32 1.0, %v9359_v46  ;;  %5580 = vst [vmem:[#allocation3 + $0x14] sm:$0xf] %v5579_v12  ;;  %5806 = vmatmul.mubr.bf16.vlgmr.msra.gmra.mrb[64].mxu0 %v5579_v12  ;;  %5847 = vmatmul.mubr.bf16.vlgmr.msra.gmra.mrb[64].mxu1 %v5579_v12  ;;  %v9361_v58 = vpop.eup %9360  ;;  %v11189_v12 = vcombine.low %v5928_v59, %v5932_v53  ;;  %v11204_v42 = vcombine.low %v5937_v15, %v5941_v5 }
 0x83a   :  { %9364 = vrcp.f32 %v5866_v35  ;;  %6273 = vmatpush1.bf16.msra.mxu0 %v11106_v16  ;;  %6314 = vmatpush1.bf16.msra.mxu1 %v11108_v43  ;;  %v9363_v14 = vpop.eup %9362  ;;  %v5879_v49 = vadd.f32 1.0, %v9361_v58  ;;  %v11198_v35 = vcombine.high %v5937_v15, %v5941_v5  ;;  %v11214_v58 = vcombine.low %v5944_v30, %v5948_v25  ;;  %v5906_v25 = vld [vmem:[#allocation9 + $0x90] sm:$0xff] }
 0x83b   :  { %9366 = vrcp.f32 %v5872_v56  ;;  %6274 = vmatprep.subr.bf16.mxu0 %v11130_v40  ;;  %6315 = vmatprep.subr.bf16.mxu1 %v11132_v3  ;;  %v5949_v56 = vld [vmem:[#allocation9 + $0x1e8] sm:$0xff]  ;;  %v8460_v53 = vcombine.high %v5891_v55, %v5895_v38 }
 0x83c   :  { %6304 = vmatprep.mubr.bf16.mxu0 %v11541_v52  ;;  %6345 = vmatprep.mubr.bf16.mxu1 %v11541_v52  ;;  %9368 = vrcp.f32 %v5879_v49  ;;  %v11210_v41 = vcombine.high %v5945_v44, %v5949_v56  ;;  %11949 = vst [vmem:[#allocation95_spill] sm:$0xff] %v11214_v58  ;;  %v5903_v49 = vld [vmem:[#allocation9 + $0x78] sm:$0xff] }
 0x83e   :  { %6275 = vmatpush1.bf16.msra.mxu0 %v11136_v23  ;;  %6316 = vmatpush1.bf16.msra.mxu1 %v11138_v34  ;;  %11948 = vst [vmem:[#allocation94_spill] sm:$0xff] %v11210_v41 }
 0x83f   :  { %6276 = vmatprep.subr.bf16.mxu0 %v11142_v1  ;;  %6317 = vmatprep.subr.bf16.mxu1 %v11144_v24 }
 0x842   :  { %6277 = vmatpush1.bf16.msra.mxu0 %v11150_v62  ;;  %6318 = vmatpush1.bf16.msra.mxu1 %v11152_v19 }
 0x843   :  { %6278 = vmatprep.subr.bf16.mxu0 %v11156_v11  ;;  %6319 = vmatprep.subr.bf16.mxu1 %v11158_v4 }
 0x844   :  { %v9365_v54 = vpop.eup %9364 }
 0x845   :  { %v9367_v32 = vpop.eup %9366  ;;  %v5883_v45 = vmul.f32 %v9365_v54, %v9363_v14  ;;  %v11216_v14 = vcombine.low %v5945_v44, %v5949_v56  ;;  %v8458_v54 = vcombine.high %v5890_v61, %v5894_v27  ;;  %v5910_v44 = vld [vmem:[#allocation9 + $0xb0] sm:$0xff]  ;;  %v5907_v56 = vld [vmem:[#allocation9 + $0x98] sm:$0xff] }
 0x846   :  { %v5882_v29 = vmul.f32 %v9367_v32, %v11019_v50  ;;  %6279 = vmatpush1.bf16.msra.mxu0 %v11162_v8  ;;  %6320 = vmatpush1.bf16.msra.mxu1 %v11164_v6  ;;  %v5940_v50 = vld [vmem:[#allocation9 + $0x1a0] sm:$0xff]  ;;  %v9369_v59 = vpop.eup %9368  ;;  %v5902_v32 = vld [vmem:[#allocation9 + $0x70] sm:$0xff] }
 0x847   :  { %6280 = vmatprep.subr.bf16.mxu0 %v11168_v48  ;;  %6321 = vmatprep.subr.bf16.mxu1 %v11170_v37  ;;  %v11196_v46 = vcombine.high %v5936_v47, %v5940_v50  ;;  %v11202_v18 = vcombine.low %v5936_v47, %v5940_v50  ;;  %11950 = vst [vmem:[#allocation96_spill] sm:$0xff] %v11216_v14 }
 0x848   :  { %v11185_v57 = vadd.f32 %v5883_v45, %v5882_v29  ;;  %v5899_v45 = vld [vmem:[#allocation9 + $0x58] sm:$0xff]  ;;  %v8457_v47 = vcombine.low %v5890_v61, %v5894_v27  ;;  %v8459_v50 = vcombine.low %v5891_v55, %v5895_v38  ;;  %v8466_v5 = vcombine.high %v5898_v10, %v5902_v32  ;;  %v5914_v55 = vld [vmem:[#allocation9 + $0xd0] sm:$0xff] }
 0x849   :  { %v8468_v30 = vcombine.high %v5899_v45, %v5903_v49  ;;  %v8474_v61 = vcombine.high %v5906_v25, %v5910_v44  ;;  %v5918_v38 = vld [vmem:[#allocation9 + $0xf0] sm:$0xff] }
 0x84a   :  { %6281 = vmatpush1.bf16.msra.mxu0 %v11175_v36  ;;  %6322 = vmatpush1.bf16.msra.mxu1 %v11177_v51  ;;  %9370 = vtanh.f32 %v11185_v57 }
 0x84b   :  { %6282 = vmatprep.subr.bf16.mxu0 %v11181_v60  ;;  %6323 = vmatprep.subr.bf16.mxu1 %v11183_v33 }
 0x84e   :  { %6283 = vmatpush1.bf16.msra.mxu0 %v11189_v12  ;;  %6324 = vmatpush1.bf16.msra.mxu1 %v11191_v21 }
 0x84f   :  { %6284 = vmatprep.subr.bf16.mxu0 %v11196_v46  ;;  %6325 = vmatprep.subr.bf16.mxu1 %v11198_v35 }
 0x852   :  { %6285 = vmatpush1.bf16.msra.mxu0 %v11202_v18  ;;  %6326 = vmatpush1.bf16.msra.mxu1 %v11204_v42 }
 0x853   :  { %6286 = vmatprep.subr.bf16.mxu0 %v11208_v26  ;;  %6327 = vmatprep.subr.bf16.mxu1 %v11210_v41  ;;  %v5911_v41 = vld [vmem:[#allocation9 + $0xb8] sm:$0xff] }
 0x854   :  { %v9371_v39 = vpop.eup %9370  ;;  %v8476_v27 = vcombine.high %v5907_v56, %v5911_v41 }
 0x855   :  { %v5886_v29 = vmul.f32 %v9371_v39, %v9369_v59  ;;  %v8465_v59 = vcombine.low %v5898_v10, %v5902_v32  ;;  %v8467_v39 = vcombine.low %v5899_v45, %v5903_v49  ;;  %v8482_v10 = vcombine.high %v5914_v55, %v5918_v38  ;;  %v5922_v45 = vld [vmem:[#allocation9 + $0x110] sm:$0xff] }
 0x856   :  { %6287 = vmatpush1.bf16.msra.mxu0 %v11214_v58  ;;  %6328 = vmatpush1.bf16.msra.mxu1 %v11216_v14  ;;  %v8475_v14 = vcombine.low %v5907_v56, %v5911_v41  ;;  %v5926_v49 = vld [vmem:[#allocation9 + $0x130] sm:$0xff]  ;;  %v5935_v41 = vld [vmem:[#allocation9 + $0x178] sm:$0xff] }
 0x857   :  { %6354 = vmatprep.subr.bf16.mxu0 %v8458_v54  ;;  %6395 = vmatprep.subr.bf16.mxu1 %v8460_v53  ;;  %v11222_v15 = vpack.c.bf16 %v5886_v29, %v5886_v29  ;;  %v5915_v54 = vld [vmem:[#allocation9 + $0xd8] sm:$0xff]  ;;  %v8473_v29 = vcombine.low %v5906_v25, %v5910_v44  ;;  %v8490_v58 = vcombine.high %v5922_v45, %v5926_v49 }
 0x858   :  { %v5919_v53 = vld [vmem:[#allocation9 + $0xf8] sm:$0xff]  ;;  %v8489_v44 = vcombine.low %v5922_v45, %v5926_v49 }
 0x859   :  { %6305 = vmatmul.mubr.bf16.vlgmr.msra.gmra.mrb[64].mxu0 %v11222_v15  ;;  %6346 = vmatmul.mubr.bf16.vlgmr.msra.gmra.mrb[64].mxu1 %v11222_v15  ;;  %v8484_v32 = vcombine.high %v5915_v54, %v5919_v53  ;;  %v5931_v25 = vld [vmem:[#allocation9 + $0x158] sm:$0xff] }
 0x85a   :  { %6355 = vmatpush1.bf16.msra.mxu0 %v8457_v47  ;;  %6396 = vmatpush1.bf16.msra.mxu1 %v8459_v50  ;;  %v5923_v47 = vld [vmem:[#allocation9 + $0x118] sm:$0xff] }
 0x85b   :  { %6356 = vmatprep.subr.bf16.mxu0 %v8466_v5  ;;  %6397 = vmatprep.subr.bf16.mxu1 %v8468_v30  ;;  %v5927_v50 = vld [vmem:[#allocation9 + $0x138] sm:$0xff]  ;;  %v8481_v5 = vcombine.low %v5914_v55, %v5918_v38  ;;  %v8483_v30 = vcombine.low %v5915_v54, %v5919_v53  ;;  %v8499_v53 = vcombine.low %v5931_v25, %v5935_v41 }
 0x85c   :  { %6386 = vmatprep.mubr.bf16.mxu0 %v11541_v52  ;;  %6427 = vmatprep.mubr.bf16.mxu1 %v11541_v52  ;;  %v8492_v26 = vcombine.high %v5923_v47, %v5927_v50  ;;  %v8491_v56 = vcombine.low %v5923_v47, %v5927_v50  ;;  %v5939_v55 = vld [vmem:[#allocation9 + $0x198] sm:$0xff] }
 0x85d   :  { %v5943_v38 = vld [vmem:[#allocation9 + $0x1b8] sm:$0xff] }
 0x85e   :  { %6357 = vmatpush1.bf16.msra.mxu0 %v8465_v59  ;;  %6398 = vmatpush1.bf16.msra.mxu1 %v8467_v39  ;;  %v5930_v59 = vld [vmem:[#allocation9 + $0x150] sm:$0xff]  ;;  %v5947_v45 = vld [vmem:[#allocation9 + $0x1d8] sm:$0xff] }
 0x85f   :  { %6358 = vmatprep.subr.bf16.mxu0 %v8474_v61  ;;  %6399 = vmatprep.subr.bf16.mxu1 %v8476_v27  ;;  %v5934_v39 = vld [vmem:[#allocation9 + $0x170] sm:$0xff]  ;;  %v8500_v27 = vcombine.high %v5931_v25, %v5935_v41  ;;  %v5951_v49 = vld [vmem:[#allocation9 + $0x1f8] sm:$0xff] }
 0x860   :  { %v8498_v61 = vcombine.high %v5930_v59, %v5934_v39  ;;  %v8497_v54 = vcombine.low %v5930_v59, %v5934_v39  ;;  %v8516_v50 = vcombine.high %v5947_v45, %v5951_v49  ;;  %v8515_v39 = vcombine.low %v5947_v45, %v5951_v49  ;;  %v9046_v25 = vld [vmem:[#allocation10 + $0x4] ss:$16 sps:$4 sm:$0xff]   ;;  %v9049_v41 = vld [vmem:[#allocation10 + $0xc] ss:$16 sps:$4 sm:$0xff]   ;;  %v9068_v49 = vld [vmem:[#allocation10 + $0x80] ss:$16 sps:$4 sm:$0xff]  }
 0x861   :  { %v9073_v45 = vld [vmem:[#allocation10 + $0x8c] ss:$16 sps:$4 sm:$0xff]  }
 0x862   :  { %6359 = vmatpush1.bf16.msra.mxu0 %v8473_v29  ;;  %6400 = vmatpush1.bf16.msra.mxu1 %v8475_v14  ;;  %v5938_v29 = vld [vmem:[#allocation9 + $0x190] sm:$0xff] }
 0x863   :  { %6360 = vmatprep.subr.bf16.mxu0 %v8482_v10  ;;  %6401 = vmatprep.subr.bf16.mxu1 %v8484_v32  ;;  %v5942_v14 = vld [vmem:[#allocation9 + $0x1b0] sm:$0xff]  ;;  %v8508_v32 = vcombine.high %v5939_v55, %v5943_v38 }
 0x864   :  { %v8506_v10 = vcombine.high %v5938_v29, %v5942_v14 }
 0x866   :  { %6361 = vmatpush1.bf16.msra.mxu0 %v8481_v5  ;;  %6402 = vmatpush1.bf16.msra.mxu1 %v8483_v30  ;;  %v5946_v5 = vld [vmem:[#allocation9 + $0x1d0] sm:$0xff] }
 0x867   :  { %6362 = vmatprep.subr.bf16.mxu0 %v8490_v58  ;;  %6403 = vmatprep.subr.bf16.mxu1 %v8492_v26  ;;  %v5950_v30 = vld [vmem:[#allocation9 + $0x1f0] sm:$0xff]  ;;  %v8505_v26 = vcombine.low %v5938_v29, %v5942_v14  ;;  %v8507_v58 = vcombine.low %v5939_v55, %v5943_v38  ;;  %v9053_v14 = vld [vmem:[#allocation10 + $0x28] ss:$16 sps:$4 sm:$0xff]   ;;  %v9061_v55 = vld [vmem:[#allocation10 + $0x4c] ss:$16 sps:$4 sm:$0xff]  }
 0x868   :  { %v8514_v47 = vcombine.high %v5946_v5, %v5950_v30  ;;  %v8513_v59 = vcombine.low %v5946_v5, %v5950_v30  ;;  %v9050_v29 = vld [vmem:[#allocation10 + $0x20] ss:$16 sps:$4 sm:$0xff]   ;;  %v9065_v5 = vld [vmem:[#allocation10 + $0x68] ss:$16 sps:$4 sm:$0xff]   ;;  %v9070_v30 = vld [vmem:[#allocation10 + $0x84] ss:$16 sps:$4 sm:$0xff]  }
 0x869   :  { %v9056_v38 = vld [vmem:[#allocation10 + $0x40] ss:$16 sps:$4 sm:$0xff]  }
 0x86a   :  { %6363 = vmatpush1.bf16.msra.mxu0 %v8489_v44  ;;  %6404 = vmatpush1.bf16.msra.mxu1 %v8491_v56  ;;  %v9044_v44 = vld [vmem:[#allocation10] ss:$16 sps:$4 sm:$0xff]   ;;  %v9047_v56 = vld [vmem:[#allocation10 + $0x8] ss:$16 sps:$4 sm:$0xff]  }
 0x86b   :  { %6364 = vmatprep.subr.bf16.mxu0 %v8498_v61  ;;  %6405 = vmatprep.subr.bf16.mxu1 %v8500_v27  ;;  %v9052_v61 = vld [vmem:[#allocation10 + $0x24] ss:$16 sps:$4 sm:$0xff]   ;;  %v9055_v27 = vld [vmem:[#allocation10 + $0x2c] ss:$16 sps:$4 sm:$0xff]  }
 0x86e   :  { %6365 = vmatpush1.bf16.msra.mxu0 %v8497_v54  ;;  %6406 = vmatpush1.bf16.msra.mxu1 %v8499_v53  ;;  %v9059_v54 = vld [vmem:[#allocation10 + $0x48] ss:$16 sps:$4 sm:$0xff]   ;;  %v9064_v53 = vld [vmem:[#allocation10 + $0x64] ss:$16 sps:$4 sm:$0xff]  }
 0x86f   :  { %6366 = vmatprep.subr.bf16.mxu0 %v8506_v10  ;;  %6407 = vmatprep.subr.bf16.mxu1 %v8508_v32  ;;  %v9067_v10 = vld [vmem:[#allocation10 + $0x6c] ss:$16 sps:$4 sm:$0xff]   ;;  %v9062_v32 = vld [vmem:[#allocation10 + $0x60] ss:$16 sps:$4 sm:$0xff]  }
 0x872   :  { %6367 = vmatpush1.bf16.msra.mxu0 %v8505_v26  ;;  %6408 = vmatpush1.bf16.msra.mxu1 %v8507_v58  ;;  %v9071_v26 = vld [vmem:[#allocation10 + $0x88] ss:$16 sps:$4 sm:$0xff]   ;;  %v9076_v58 = vld [vmem:[#allocation10 + $0xa4] ss:$16 sps:$4 sm:$0xff]  }
 0x873   :  { %6368 = vmatprep.subr.bf16.mxu0 %v8514_v47  ;;  %6409 = vmatprep.subr.bf16.mxu1 %v8516_v50  ;;  %v9079_v47 = vld [vmem:[#allocation10 + $0xac] ss:$16 sps:$4 sm:$0xff]   ;;  %v9074_v50 = vld [vmem:[#allocation10 + $0xa0] ss:$16 sps:$4 sm:$0xff]  }
 0x876   :  { %6369 = vmatpush1.bf16.msra.mxu0 %v8513_v59  ;;  %6410 = vmatpush1.bf16.msra.mxu1 %v8515_v39  ;;  %v9077_v59 = vld [vmem:[#allocation10 + $0xa8] ss:$16 sps:$4 sm:$0xff]   ;;  %v9082_v39 = vld [vmem:[#allocation10 + $0xc4] ss:$16 sps:$4 sm:$0xff]  }
 0x877   :  { %6658 = vmatprep.subr.bf16.mxu0 %v9046_v25  ;;  %6699 = vmatprep.subr.bf16.mxu1 %v9049_v41  ;;  %v9085_v25 = vld [vmem:[#allocation10 + $0xcc] ss:$16 sps:$4 sm:$0xff]   ;;  %v9080_v41 = vld [vmem:[#allocation10 + $0xc0] ss:$16 sps:$4 sm:$0xff]  }
 0x879   :  { %6387 = vmatmul.mubr.bf16.vlgmr.msra.gmra.mrb[68].mxu0 %v11222_v15  ;;  %6428 = vmatmul.mubr.bf16.vlgmr.msra.gmra.mrb[68].mxu1 %v11222_v15  ;;  %v9058_v15 = vld [vmem:[#allocation10 + $0x44] ss:$16 sps:$4 sm:$0xff]  }
 0x87a   :  { %6690 = vmatprep.mubr.bf16.mxu0 %v11541_v52  ;;  %6731 = vmatprep.mubr.bf16.mxu1 %v11541_v52 }
 0x87b   :  { %6659 = vmatpush1.bf16.msra.mxu0 %v9044_v44  ;;  %6700 = vmatpush1.bf16.msra.mxu1 %v9047_v56  ;;  %v9083_v44 = vld [vmem:[#allocation10 + $0xc8] ss:$16 sps:$4 sm:$0xff]   ;;  %v9088_v56 = vld [vmem:[#allocation10 + $0xe4] ss:$16 sps:$4 sm:$0xff]  }
 0x87c   :  { %6660 = vmatprep.subr.bf16.mxu0 %v9052_v61  ;;  %6701 = vmatprep.subr.bf16.mxu1 %v9055_v27  ;;  %v9091_v61 = vld [vmem:[#allocation10 + $0xec] ss:$16 sps:$4 sm:$0xff]   ;;  %v9086_v27 = vld [vmem:[#allocation10 + $0xe0] ss:$16 sps:$4 sm:$0xff]  }
 0x87f   :  { %6661 = vmatpush1.bf16.msra.mxu0 %v9050_v29  ;;  %6702 = vmatpush1.bf16.msra.mxu1 %v9053_v14  ;;  %v9089_v29 = vld [vmem:[#allocation10 + $0xe8] ss:$16 sps:$4 sm:$0xff]  }
 0x880   :  { %6662 = vmatprep.subr.bf16.mxu0 %v9058_v15  ;;  %6703 = vmatprep.subr.bf16.mxu1 %v9061_v55 }
 0x883   :  { %6663 = vmatpush1.bf16.msra.mxu0 %v9056_v38  ;;  %6704 = vmatpush1.bf16.msra.mxu1 %v9059_v54 }
 0x884   :  { %6664 = vmatprep.subr.bf16.mxu0 %v9064_v53  ;;  %6705 = vmatprep.subr.bf16.mxu1 %v9067_v10 }
 0x887   :  { %6665 = vmatpush1.bf16.msra.mxu0 %v9062_v32  ;;  %6706 = vmatpush1.bf16.msra.mxu1 %v9065_v5 }
 0x888   :  { %6666 = vmatprep.subr.bf16.mxu0 %v9070_v30  ;;  %6707 = vmatprep.subr.bf16.mxu1 %v9073_v45 }
 0x88b   :  { %6667 = vmatpush1.bf16.msra.mxu0 %v9068_v49  ;;  %6708 = vmatpush1.bf16.msra.mxu1 %v9071_v26 }
 0x88c   :  { %6668 = vmatprep.subr.bf16.mxu0 %v9076_v58  ;;  %6709 = vmatprep.subr.bf16.mxu1 %v9079_v47 }
 0x88f   :  { %6669 = vmatpush1.bf16.msra.mxu0 %v9074_v50  ;;  %6710 = vmatpush1.bf16.msra.mxu1 %v9077_v59 }
 0x890   :  { %6670 = vmatprep.subr.bf16.mxu0 %v9082_v39  ;;  %6711 = vmatprep.subr.bf16.mxu1 %v9085_v25 }
 0x893   :  { %6671 = vmatpush1.bf16.msra.mxu0 %v9080_v41  ;;  %6712 = vmatpush1.bf16.msra.mxu1 %v9083_v44 }
 0x894   :  { %6672 = vmatprep.subr.bf16.mxu0 %v9088_v56  ;;  %6713 = vmatprep.subr.bf16.mxu1 %v9091_v61 }
 0x897   :  { %6673 = vmatpush1.bf16.msra.mxu0 %v9086_v27  ;;  %6714 = vmatpush1.bf16.msra.mxu1 %v9089_v29  ;;  %v11951_v29 = vld [vmem:[#allocation67_spill] sm:$0xff] }
 0x898   :  { %6965 = vmatprep.subr.bf16.mxu0 %v11104_v22  ;;  %7006 = vmatprep.subr.bf16.mxu1 %v11110_v31 }
 0x92c   :  { %v6306_v14 = vpop.f32.mrb[64].mxu0  ;;  %v6347_v15 = vpop.f32.mrb[64].mxu1 }
 0x92d   :  { %v8771_v55 = vadd.f32 %v6306_v14, %v11938_v28  ;;  %v6308_v38 = vpop.f32.mrb[65].mxu0  ;;  %v6349_v54 = vpop.f32.mrb[65].mxu1  ;;  %v8773_v31 = vadd.f32 %v6347_v15, %v11939_v7  ;;  %v414_v14 = vadd.f32 %v11951_v29, %v11940_v17  ;;  %v11952_v15 = vld [vmem:[#allocation71_spill] sm:$0xff] }
 0x92e   :  { %v8772_v53 = vadd.f32 %v6308_v38, %v10091_v9  ;;  %v6310_v10 = vpop.f32.mrb[66].mxu0  ;;  %v6351_v32 = vpop.f32.mrb[66].mxu1  ;;  %v8774_v22 = vadd.f32 %v6349_v54, %v10097_v13  ;;  %v11953_v38 = vld [vmem:[#allocation69_spill] sm:$0xff]  ;;  %v9104_v29 = vld [vmem:[#allocation12 + $0x50] sm:$0xff]  }
 0x92f   :  { %v8517_v5 = vmul.f32 -1.442695, %v8771_v55  ;;  %v6311_v30 = vpop.f32.mrb[67].mxu0  ;;  %v6352_v45 = vpop.f32.mrb[67].mxu1  ;;  %v487_v55 = vadd.f32 %v11952_v15, %v11942_v0  ;;  %v416_v54 = vadd.f32 %v11953_v38, %v11944_v2  ;;  %v9106_v15 = vld [vmem:[#allocation12 + $0x10] sm:$0xff]   ;;  %v9108_v38 = vld [vmem:[#allocation12 + $0x58] sm:$0xff]  }
 0x930   :  { %v8518_v49 = vmul.f32 -1.442695, %v8772_v53  ;;  %v8519_v26 = vmul.f32 -1.442695, %v8774_v22  ;;  %v11954_v53 = vld [vmem:[#allocation72_spill] sm:$0xff] }
 0x931   :  { %9372 = vpow2.f32 %v8517_v5  ;;  %v489_v10 = vadd.f32 %v11954_v53, %v9824_v20  ;;  %v9110_v53 = vld [vmem:[#allocation12 + $0x18] sm:$0xff]  }
 0x932   :  { %9374 = vpow2.f32 %v8518_v49 }
 0x933   :  { %9376 = vpow2.f32 %v8519_v26 }
 0x934   :  { %9378 = vtanh.f32 %v8773_v31 }
 0x93b   :  { %v9373_v58 = vpop.eup %9372 }
 0x93c   :  { %v9375_v47 = vpop.eup %9374  ;;  %v6443_v50 = vadd.f32 1.0, %v9373_v58 }
 0x93d   :  { %v6449_v59 = vadd.f32 1.0, %v9375_v47  ;;  %v9377_v39 = vpop.eup %9376 }
 0x93e   :  { %9380 = vrcp.f32 %v6443_v50  ;;  %v9379_v25 = vpop.eup %9378  ;;  %v6456_v61 = vadd.f32 1.0, %v9377_v39 }
 0x93f   :  { %9382 = vrcp.f32 %v6449_v59 }
 0x940   :  { %9384 = vrcp.f32 %v6456_v61 }
 0x948   :  { %v9381_v41 = vpop.eup %9380 }
 0x949   :  { %v9383_v44 = vpop.eup %9382  ;;  %v6460_v56 = vmul.f32 %v9381_v41, %v9379_v25 }
 0x94a   :  { %v6459_v27 = vmul.f32 %v9383_v44, %v11127_v63  ;;  %v9385_v20 = vpop.eup %9384 }
 0x94c   :  { %v11247_v32 = vadd.f32 %v6460_v56, %v6459_v27  ;;  %v6388_v5 = vpop.f32.mrb[68].mxu0  ;;  %v6429_v30 = vpop.f32.mrb[68].mxu1 }
 0x94d   :  { %v6744_v45 = vadd.f32 %v6388_v5, %v414_v14  ;;  %v6746_v49 = vadd.f32 %v6429_v30, %v487_v55  ;;  %v6390_v63 = vpop.f32.mrb[69].mxu0  ;;  %v6431_v22 = vpop.f32.mrb[69].mxu1  ;;  %v9105_v14 = vld [vmem:[#allocation12 + $0xd0] sm:$0xff]   ;;  %v9112_v5 = vld [vmem:[#allocation12 + $0x60] sm:$0xff]  }
 0x94e   :  { %v6745_v26 = vadd.f32 %v6390_v63, %v416_v54  ;;  %v6747_v17 = vadd.f32 %v6431_v22, %v489_v10  ;;  %v6392_v31 = vpop.f32.mrb[70].mxu0  ;;  %v6433_v58 = vpop.f32.mrb[70].mxu1  ;;  %9386 = vtanh.f32 %v11247_v32  ;;  %v9107_v55 = vld [vmem:[#allocation12 + $0x90] sm:$0xff]   ;;  %v9109_v54 = vld [vmem:[#allocation12 + $0xd8] sm:$0xff]   ;;  %v9113_v30 = vld [vmem:[#allocation12 + $0xe0] sm:$0xff]  }
 0x94f   :  { %v8552_v0 = vmul.f32 -1.442695, %v6744_v45  ;;  %v6393_v2 = vpop.f32.mrb[71].mxu0  ;;  %v6434_v47 = vpop.f32.mrb[71].mxu1  ;;  %v9111_v10 = vld [vmem:[#allocation12 + $0x98] sm:$0xff]   ;;  %v9114_v45 = vld [vmem:[#allocation12 + $0x20] sm:$0xff]  }
 0x950   :  { %v8553_v50 = vmul.f32 -1.442695, %v6745_v26  ;;  %v8554_v39 = vmul.f32 -1.442695, %v6747_v17  ;;  %v9116_v63 = vld [vmem:[#allocation12 + $0x68] sm:$0xff]   ;;  %v9120_v31 = vld [vmem:[#allocation12 + $0x70] sm:$0xff]  }
 0x951   :  { %9388 = vpow2.f32 %v8552_v0  ;;  %v9117_v22 = vld [vmem:[#allocation12 + $0xe8] sm:$0xff]   ;;  %v9121_v58 = vld [vmem:[#allocation12 + $0xf0] sm:$0xff]   ;;  %v9124_v47 = vld [vmem:[#allocation12 + $0x78] sm:$0xff]  }
 0x952   :  { %9390 = vpow2.f32 %v8553_v50  ;;  %v9118_v26 = vld [vmem:[#allocation12 + $0x28] sm:$0xff]   ;;  %v9122_v0 = vld [vmem:[#allocation12 + $0x30] sm:$0xff]   ;;  %v9125_v50 = vld [vmem:[#allocation12 + $0xf8] sm:$0xff]  }
 0x953   :  { %9392 = vpow2.f32 %v8554_v39  ;;  %v9119_v17 = vld [vmem:[#allocation12 + $0xa8] sm:$0xff]   ;;  %v9123_v2 = vld [vmem:[#allocation12 + $0xb0] sm:$0xff]   ;;  %v9128_v39 = vld [vmem:[#allocation12 + $0x140] sm:$0xff]  }
 0x954   :  { %9394 = vtanh.f32 %v6746_v49  ;;  %v9115_v49 = vld [vmem:[#allocation12 + $0xa0] sm:$0xff]  }
 0x958   :  { %v9387_v59 = vpop.eup %9386 }
 0x959   :  { %v6463_v25 = vmul.f32 %v9387_v59, %v9385_v20  ;;  %v9126_v20 = vld [vmem:[#allocation12 + $0x38] sm:$0xff]  }
 0x95a   :  { %v9127_v59 = vld [vmem:[#allocation12 + $0xb8] sm:$0xff]  }
 0x95b   :  { %v9389_v41 = vpop.eup %9388  ;;  %v6464_v44 = vpack.c.bf16 %v6463_v25, %v6463_v25  ;;  %v9129_v25 = vld [vmem:[#allocation12 + $0x100] sm:$0xff]  }
 0x95c   :  { %v9391_v56 = vpop.eup %9390  ;;  %v6751_v61 = vadd.f32 1.0, %v9389_v41  ;;  %v7075_v41 = vld [vmem:[#allocation3 + $0x10] sm:$0xff] }
 0x95d   :  { %v6757_v27 = vadd.f32 1.0, %v9391_v56  ;;  %6465 = vst [vmem:[#allocation3 + $0x18] sm:$0xf] %v6464_v44  ;;  %6691 = vmatmul.mubr.bf16.vlgmr.msra.gmra.mrb[72].mxu0 %v6464_v44  ;;  %6732 = vmatmul.mubr.bf16.vlgmr.msra.gmra.mrb[72].mxu1 %v6464_v44  ;;  %v9132_v56 = vld [vmem:[#allocation12 + $0x148] sm:$0xff]  }
 0x95e   :  { %9396 = vrcp.f32 %v6751_v61  ;;  %6966 = vmatpush1.bf16.msra.mxu0 %v11106_v16  ;;  %7007 = vmatpush1.bf16.msra.mxu1 %v11108_v43  ;;  %v9393_v16 = vpop.eup %9392 }
 0x95f   :  { %9398 = vrcp.f32 %v6757_v27  ;;  %6967 = vmatprep.subr.bf16.mxu0 %v11130_v40  ;;  %7008 = vmatprep.subr.bf16.mxu1 %v11132_v3  ;;  %v9395_v43 = vpop.eup %9394  ;;  %v8596_v27 = vcombine.high %v7075_v41, %v7075_v41 }
 0x960   :  { %6997 = vmatprep.mubr.bf16.mxu0 %v11541_v52  ;;  %7038 = vmatprep.mubr.bf16.mxu1 %v11541_v52 }
 0x962   :  { %6968 = vmatpush1.bf16.msra.mxu0 %v11136_v23  ;;  %7009 = vmatpush1.bf16.msra.mxu1 %v11138_v34  ;;  %v6764_v23 = vadd.f32 1.0, %v9393_v16  ;;  %v9133_v16 = vld [vmem:[#allocation12 + $0x108] sm:$0xff]  }
 0x963   :  { %6969 = vmatprep.subr.bf16.mxu0 %v11142_v1  ;;  %7010 = vmatprep.subr.bf16.mxu1 %v11144_v24 }
 0x964   :  { %9400 = vrcp.f32 %v6764_v23  ;;  %v9138_v23 = vld [vmem:[#allocation12 + $0x160] sm:$0xff]  }
 0x966   :  { %6970 = vmatpush1.bf16.msra.mxu0 %v11150_v62  ;;  %7011 = vmatpush1.bf16.msra.mxu1 %v11152_v19  ;;  %v11955_v62 = vld [vmem:[#allocation93_spill] sm:$0xff]  ;;  %v11956_v19 = vld [vmem:[#allocation94_spill] sm:$0xff] }
 0x967   :  { %6971 = vmatprep.subr.bf16.mxu0 %v11156_v11  ;;  %7012 = vmatprep.subr.bf16.mxu1 %v11158_v4  ;;  %v9092_v11 = vld [vmem:[#allocation12 + $0x40] sm:$0xff]  }
 0x968   :  { %v9397_v40 = vpop.eup %9396  ;;  %v9093_v4 = vld [vmem:[#allocation12 + $0xc0] sm:$0xff]  }
 0x969   :  { %v9399_v52 = vpop.eup %9398  ;;  %v6768_v3 = vmul.f32 %v9397_v40, %v9395_v43  ;;  %v9134_v43 = vld [vmem:[#allocation12 + $0x150] sm:$0xff]  }
 0x96a   :  { %v6767_v34 = vmul.f32 %v9399_v52, %v11185_v57  ;;  %6972 = vmatpush1.bf16.msra.mxu0 %v11162_v8  ;;  %7013 = vmatpush1.bf16.msra.mxu1 %v11164_v6  ;;  %v9097_v57 = vld [vmem:[#allocation12 + $0x80] sm:$0xff]   ;;  %v9135_v40 = vld [vmem:[#allocation12 + $0x110] sm:$0xff]   ;;  %v9136_v52 = vld [vmem:[#allocation12 + $0x158] sm:$0xff]  }
 0x96b   :  { %6973 = vmatprep.subr.bf16.mxu0 %v11168_v48  ;;  %7014 = vmatprep.subr.bf16.mxu1 %v11170_v37  ;;  %v11281_v48 = vld [vmem:[#allocation3] sm:$0xff]  ;;  %v11957_v37 = vld [vmem:[#allocation95_spill] sm:$0xff] }
 0x96c   :  { %v6769_v1 = vadd.f32 %v6768_v3, %v6767_v34  ;;  %v8591_v44 = vcombine.low %v11281_v48, %v11281_v48  ;;  %v9137_v3 = vld [vmem:[#allocation12 + $0x118] sm:$0xff]   ;;  %v9139_v34 = vld [vmem:[#allocation12 + $0x120] sm:$0xff]  }
 0x96e   :  { %9402 = vtanh.f32 %v6769_v1  ;;  %6974 = vmatpush1.bf16.msra.mxu0 %v11175_v36  ;;  %7015 = vmatpush1.bf16.msra.mxu1 %v11177_v51  ;;  %v9401_v24 = vpop.eup %9400  ;;  %v11958_v36 = vld [vmem:[#allocation96_spill] sm:$0xff]  ;;  %v9094_v51 = vld [vmem:[#allocation12] sm:$0xff]   ;;  %v9140_v1 = vld [vmem:[#allocation12 + $0x168] sm:$0xff]  }
 0x96f   :  { %6975 = vmatprep.subr.bf16.mxu0 %v11181_v60  ;;  %7016 = vmatprep.subr.bf16.mxu1 %v11183_v33  ;;  %v11285_v60 = vld [vmem:[#allocation3 + $0x8] sm:$0xff] }
 0x970   :  { %v8593_v61 = vcombine.low %v11285_v60, %v11285_v60 }
 0x972   :  { %6976 = vmatpush1.bf16.msra.mxu0 %v11189_v12  ;;  %7017 = vmatpush1.bf16.msra.mxu1 %v11191_v21  ;;  %v8592_v12 = vcombine.high %v11281_v48, %v11281_v48  ;;  %v9100_v21 = vld [vmem:[#allocation12 + $0x48] sm:$0xff]   ;;  %v9147_v48 = vld [vmem:[#allocation12 + $0x180] sm:$0xff]  }
 0x973   :  { %6977 = vmatprep.subr.bf16.mxu0 %v11196_v46  ;;  %7018 = vmatprep.subr.bf16.mxu1 %v11198_v35  ;;  %v9101_v46 = vld [vmem:[#allocation12 + $0xc8] sm:$0xff]   ;;  %v8594_v35 = vcombine.high %v11285_v60, %v11285_v60  ;;  %v9151_v60 = vld [vmem:[#allocation12 + $0x190] sm:$0xff]  }
 0x976   :  { %6978 = vmatpush1.bf16.msra.mxu0 %v11202_v18  ;;  %7019 = vmatpush1.bf16.msra.mxu1 %v11204_v42  ;;  %v9102_v18 = vld [vmem:[#allocation12 + $0x8] sm:$0xff]  }
 0x977   :  { %6979 = vmatprep.subr.bf16.mxu0 %v11955_v62  ;;  %7020 = vmatprep.subr.bf16.mxu1 %v11956_v19  ;;  %v9103_v42 = vld [vmem:[#allocation12 + $0x88] sm:$0xff]   ;;  %v9142_v62 = vld [vmem:[#allocation12 + $0x170] sm:$0xff]  }
 0x978   :  { %v9403_v8 = vpop.eup %9402  ;;  %v9143_v19 = vld [vmem:[#allocation12 + $0x130] sm:$0xff]  }
 0x979   :  { %v6771_v6 = vmul.f32 %v9403_v8, %v9401_v24  ;;  %v9141_v24 = vld [vmem:[#allocation12 + $0x128] sm:$0xff]   ;;  %v8595_v8 = vcombine.low %v7075_v41, %v7075_v41 }
 0x97a   :  { %6980 = vmatpush1.bf16.msra.mxu0 %v11957_v37  ;;  %7021 = vmatpush1.bf16.msra.mxu1 %v11958_v36  ;;  %v9148_v37 = vld [vmem:[#allocation12 + $0x1c8] sm:$0xff]  }
 0x97b   :  { %v6772_v33 = vpack.c.bf16 %v6771_v6, %v6771_v6  ;;  %8663 = vmatprep.subr.bf16.mxu0 %v9092_v11  ;;  %8685 = vmatprep.subr.bf16.mxu1 %v9093_v4  ;;  %v9144_v11 = vld [vmem:[#allocation12 + $0x178] sm:$0xff]   ;;  %v9146_v6 = vld [vmem:[#allocation12 + $0x1c0] sm:$0xff]   ;;  %v9149_v36 = vld [vmem:[#allocation12 + $0x188] sm:$0xff]  }
 0x97c   :  { %v9145_v4 = vld [vmem:[#allocation12 + $0x138] sm:$0xff]  }
 0x97d   :  { %6998 = vmatmul.mubr.bf16.vlgmr.msra.gmra.mrb[72].mxu0 %v6772_v33  ;;  %7039 = vmatmul.mubr.bf16.vlgmr.msra.gmra.mrb[72].mxu1 %v6772_v33  ;;  %v9152_v33 = vld [vmem:[#allocation12 + $0x1d8] sm:$0xff]  }
 0x97e   :  { %8664 = vmatpush3.bf16.msra.mxu0 %v9094_v51  ;;  %7656 = vmatprep.mubr.bf16.mxu0 %v8592_v12  ;;  %v9150_v51 = vld [vmem:[#allocation12 + $0x1d0] sm:$0xff]   ;;  %v9154_v12 = vld [vmem:[#allocation12 + $0x1e0] sm:$0xff]  }
 0x97f   :  { %8686 = vmatpush3.bf16.msra.mxu1 %v9097_v57  ;;  %7696 = vmatprep.mubr.bf16.mxu1 %v8594_v35  ;;  %v9153_v57 = vld [vmem:[#allocation12 + $0x198] sm:$0xff]   ;;  %v9157_v35 = vld [vmem:[#allocation12 + $0x1a8] sm:$0xff]  }
 0x980   :  { %8665 = vmatprep.subr.bf16.mxu0 %v9100_v21  ;;  %8687 = vmatprep.subr.bf16.mxu1 %v9101_v46  ;;  %v9155_v21 = vld [vmem:[#allocation12 + $0x1a0] sm:$0xff]   ;;  %v9156_v46 = vld [vmem:[#allocation12 + $0x1e8] sm:$0xff]  }
 0x982   :  { %8666 = vmatpush3.bf16.msra.mxu0 %v9102_v18  ;;  %v9158_v18 = vld [vmem:[#allocation12 + $0x1f0] sm:$0xff]  }
 0x983   :  { %8688 = vmatpush3.bf16.msra.mxu1 %v9103_v42  ;;  %8667 = vmatprep.subr.bf16.mxu0 %v9104_v29  ;;  %v9159_v42 = vld [vmem:[#allocation12 + $0x1b0] sm:$0xff]   ;;  %v9160_v29 = vld [vmem:[#allocation12 + $0x1f8] sm:$0xff]  }
 0x984   :  { %8689 = vmatprep.subr.bf16.mxu1 %v9105_v14  ;;  %v9161_v14 = vld [vmem:[#allocation12 + $0x1b8] sm:$0xff]  }
 0x986   :  { %8668 = vmatpush3.bf16.msra.mxu0 %v9106_v15 }
 0x987   :  { %8690 = vmatpush3.bf16.msra.mxu1 %v9107_v55  ;;  %8669 = vmatprep.subr.bf16.mxu0 %v9108_v38 }
 0x988   :  { %8691 = vmatprep.subr.bf16.mxu1 %v9109_v54 }
 0x98a   :  { %8670 = vmatpush3.bf16.msra.mxu0 %v9110_v53 }
 0x98b   :  { %8692 = vmatpush3.bf16.msra.mxu1 %v9111_v10  ;;  %8671 = vmatprep.subr.bf16.mxu0 %v9112_v5 }
 0x98c   :  { %8693 = vmatprep.subr.bf16.mxu1 %v9113_v30 }
 0x98e   :  { %8672 = vmatpush3.bf16.msra.mxu0 %v9114_v45 }
 0x98f   :  { %8694 = vmatpush3.bf16.msra.mxu1 %v9115_v49  ;;  %8673 = vmatprep.subr.bf16.mxu0 %v9116_v63 }
 0x990   :  { %8695 = vmatprep.subr.bf16.mxu1 %v9117_v22 }
 0x992   :  { %8674 = vmatpush3.bf16.msra.mxu0 %v9118_v26 }
 0x993   :  { %8696 = vmatpush3.bf16.msra.mxu1 %v9119_v17  ;;  %8675 = vmatprep.subr.bf16.mxu0 %v9120_v31 }
 0x994   :  { %8697 = vmatprep.subr.bf16.mxu1 %v9121_v58 }
 0x996   :  { %8676 = vmatpush3.bf16.msra.mxu0 %v9122_v0 }
 0x997   :  { %8698 = vmatpush3.bf16.msra.mxu1 %v9123_v2  ;;  %8677 = vmatprep.subr.bf16.mxu0 %v9124_v47 }
 0x998   :  { %8699 = vmatprep.subr.bf16.mxu1 %v9125_v50 }
 0x99a   :  { %8678 = vmatpush3.bf16.msra.mxu0 %v9126_v20 }
 0x99b   :  { %8700 = vmatpush3.bf16.msra.mxu1 %v9127_v59  ;;  %8707 = vmatprep.subr.bf16.mxu0 %v9128_v39 }
 0x99c   :  { %8729 = vmatprep.subr.bf16.mxu1 %v9146_v6 }
 0x99d   :  { %7657 = vmatmul.mubr.bf16.vlgmr.msra.gmra.mrb[76].mxu0 %v8591_v44  ;;  %v8590_v44 = vld [vmem:[%s11322_s7] ss:$0 sm:$0xff]  ;;  %s9572_s7 = smov [#allocation13]  }
 0x99e   :  { %7697 = vmatmul.mubr.bf16.vlgmr.msra.gmra.mrb[76].mxu1 %v8593_v61  ;;  %8708 = vmatpush3.bf16.msra.mxu0 %v9129_v25  ;;  %s7791_s25 = sshll.u32 %s9572_s7, 4  ;;  %s7792_s25 = int_to_ptr.vmem [resolvable:$true] %s7791_s25 }
 0x99f   :  { %7736 = vmatprep.mubr.bf16.mxu0 %v8596_v27  ;;  %8709 = vmatprep.subr.bf16.mxu0 %v9132_v56  ;;  %s9530_s26 = scalar_lea.vmem %s7792_s25, 128  ;;  %p9535_p13 = scmp.lt.s32.totalorder %s7792_s25, %s7792_s25 }
 0x9a0   :  { %8730 = vmatpush3.bf16.msra.mxu1 %v9147_v48  ;;  %p9531_p12 = scmp.ne.s32.totalorder %s7792_s25, %s9530_s26  ;;  %p9536_p0 = scmp.lt.s32.totalorder %s9530_s26, %s9530_s26 }
 0x9a1   :  { %8731 = vmatprep.subr.bf16.mxu1 %v9148_v37 }
 0x9a2   :  { %8710 = vmatpush3.bf16.msra.mxu0 %v9133_v16  ;;  %p9537_p1 = por %p9536_p0, %p9535_p13 }
 0x9a3   :  { %8711 = vmatprep.subr.bf16.mxu0 %v9134_v43 }
 0x9a4   :  { %8732 = vmatpush3.bf16.msra.mxu1 %v9149_v36  ;;  %p9538_p2 = pnand %p9537_p1, %p9531_p12 }
 0x9a5   :  { %8733 = vmatprep.subr.bf16.mxu1 %v9150_v51 }
 0x9a6   :  { %8712 = vmatpush3.bf16.msra.mxu0 %v9135_v40 }
 0x9a7   :  { %8713 = vmatprep.subr.bf16.mxu0 %v9136_v52 }
 0x9a8   :  { %8734 = vmatpush3.bf16.msra.mxu1 %v9151_v60 }
 0x9a9   :  { %8735 = vmatprep.subr.bf16.mxu1 %v9152_v33 }
 0x9aa   :  { %8714 = vmatpush3.bf16.msra.mxu0 %v9137_v3 }
 0x9ab   :  { %8715 = vmatprep.subr.bf16.mxu0 %v9138_v23 }
 0x9ac   :  { %8736 = vmatpush3.bf16.msra.mxu1 %v9153_v57 }
 0x9ad   :  { %8737 = vmatprep.subr.bf16.mxu1 %v9154_v12 }
 0x9ae   :  { %8716 = vmatpush3.bf16.msra.mxu0 %v9139_v34 }
 0x9af   :  { %8717 = vmatprep.subr.bf16.mxu0 %v9140_v1 }
 0x9b0   :  { %8738 = vmatpush3.bf16.msra.mxu1 %v9155_v21 }
 0x9b1   :  { %8739 = vmatprep.subr.bf16.mxu1 %v9156_v46 }
 0x9b2   :  { %8718 = vmatpush3.bf16.msra.mxu0 %v9141_v24 }
 0x9b3   :  { %8719 = vmatprep.subr.bf16.mxu0 %v9142_v62 }
 0x9b4   :  { %8740 = vmatpush3.bf16.msra.mxu1 %v9157_v35 }
 0x9b5   :  { %8741 = vmatprep.subr.bf16.mxu1 %v9158_v18 }
 0x9b6   :  { %8720 = vmatpush3.bf16.msra.mxu0 %v9143_v19 }
 0x9b7   :  { %8721 = vmatprep.subr.bf16.mxu0 %v9144_v11 }
 0x9b8   :  { %8742 = vmatpush3.bf16.msra.mxu1 %v9159_v42 }
 0x9b9   :  { %8743 = vmatprep.subr.bf16.mxu1 %v9160_v29 }
 0x9ba   :  { %8722 = vmatpush3.bf16.msra.mxu0 %v9145_v4 }
 0x9bc   :  { %8744 = vmatpush3.bf16.msra.mxu1 %v9161_v14 }
 0x9bd   :  { %7737 = vmatmul.mubr.bf16.vlgmr.msra.gmra.mrb[80].mxu0 %v8595_v8 }
 0xa50   :  { %v6999_v15 = vpop.f32.mrb[72].mxu0  ;;  %v7040_v55 = vpop.f32.mrb[72].mxu1 }
 0xa51   :  { %v8775_v38 = vadd.f32 %v6999_v15, %v11938_v28  ;;  %v7001_v54 = vpop.f32.mrb[73].mxu0  ;;  %v7042_v53 = vpop.f32.mrb[73].mxu1  ;;  %v8777_v31 = vadd.f32 %v7040_v55, %v11939_v7 }
 0xa52   :  { %v8776_v10 = vadd.f32 %v7001_v54, %v10091_v9  ;;  %v7003_v5 = vpop.f32.mrb[74].mxu0  ;;  %v7044_v30 = vpop.f32.mrb[74].mxu1  ;;  %v8778_v26 = vadd.f32 %v7042_v53, %v10097_v13 }
 0xa53   :  { %v8587_v45 = vmul.f32 -1.442695, %v8775_v38  ;;  %v7004_v49 = vpop.f32.mrb[75].mxu0  ;;  %v7045_v63 = vpop.f32.mrb[75].mxu1 }
 0xa54   :  { %v8588_v22 = vmul.f32 -1.442695, %v8776_v10  ;;  %v8589_v17 = vmul.f32 -1.442695, %v8778_v26 }
 0xa55   :  { %9404 = vpow2.f32 %v8587_v45 }
 0xa56   :  { %9406 = vpow2.f32 %v8588_v22 }
 0xa57   :  { %9408 = vpow2.f32 %v8589_v17 }
 0xa58   :  { %9410 = vtanh.f32 %v8777_v31 }
 0xa5f   :  { %v9405_v58 = vpop.eup %9404 }
 0xa60   :  { %v9407_v0 = vpop.eup %9406  ;;  %v7050_v28 = vadd.f32 1.0, %v9405_v58 }
 0xa61   :  { %v7056_v2 = vadd.f32 1.0, %v9407_v0  ;;  %v9409_v9 = vpop.eup %9408 }
 0xa62   :  { %9412 = vrcp.f32 %v7050_v28  ;;  %v9411_v47 = vpop.eup %9410  ;;  %v7063_v39 = vadd.f32 1.0, %v9409_v9 }
 0xa63   :  { %9414 = vrcp.f32 %v7056_v2 }
 0xa64   :  { %9416 = vrcp.f32 %v7063_v39 }
 0xa6c   :  { %v9413_v50 = vpop.eup %9412 }
 0xa6d   :  { %v9415_v20 = vpop.eup %9414  ;;  %v7067_v59 = vmul.f32 %v9413_v50, %v9411_v47 }
 0xa6e   :  { %v7066_v25 = vmul.f32 %v9415_v20, %v11247_v32  ;;  %v9417_v32 = vpop.eup %9416 }
 0xa70   :  { %v7068_v13 = vadd.f32 %v7067_v59, %v7066_v25  ;;  %v8679_v41 = vpop.f32.mrb[76].mxu0 }
 0xa71   :  { %v8701_v7 = vpop.f32.mrb[76].mxu1  ;;  %v8680_v56 = vpop.f32.mrb[77].mxu0 }
 0xa72   :  { %9418 = vtanh.f32 %v7068_v13  ;;  %v8681_v61 = vadd.f32 %v8680_v56, %v8679_v41  ;;  %v8702_v27 = vpop.f32.mrb[77].mxu1  ;;  %v8682_v16 = vpop.f32.mrb[78].mxu0 }
 0xa73   :  { %v8703_v43 = vadd.f32 %v8702_v27, %v8701_v7  ;;  %v8704_v40 = vpop.f32.mrb[78].mxu1  ;;  %v8683_v52 = vpop.f32.mrb[79].mxu0 }
 0xa74   :  { %v7659_v3 = vadd.f32 %v8681_v61, %v8590_v44  ;;  %v8705_v23 = vpop.f32.mrb[79].mxu1 }
 0xa76   :  { %v7699_v34 = vadd.f32 %v8703_v43, %v7659_v3 }
 0xa7c   :  { %v9419_v1 = vpop.eup %9418 }
 0xa7d   :  { %v7070_v24 = vmul.f32 %v9419_v1, %v9417_v32 }
 0xa7f   :  { %v7071_v62 = vpack.c.bf16 %v7070_v24, %v7070_v24 }
 0xa81   :  { %7072 = vst [vmem:[#allocation3 + $0x1c] sm:$0xf] %v7071_v62 }
 0xa88   :  { %v7076_v19 = vld [vmem:[#allocation3 + $0x18] sm:$0xff] }
 0xa89   :  { %v8597_v11 = vcombine.low %v7076_v19, %v7076_v19  ;;  %v8598_v4 = vcombine.high %v7076_v19, %v7076_v19 }
 0xa8b   :  { %7776 = vmatprep.mubr.bf16.mxu1 %v8598_v4 }
 0xa8c   :  { %7777 = vmatmul.mubr.bf16.vlgmr.msra.gmra.mrb[80].mxu1 %v8597_v11 }
 0xa90   :  { %v8723_v8 = vpop.f32.mrb[80].mxu0 }
 0xa91   :  { %v8724_v6 = vpop.f32.mrb[81].mxu0 }
 0xa92   :  { %v8725_v48 = vadd.f32 %v8724_v6, %v8723_v8  ;;  %v8726_v37 = vpop.f32.mrb[82].mxu0 }
 0xa93   :  { %v8727_v36 = vpop.f32.mrb[83].mxu0 }
 0xa94   :  { %v7739_v51 = vadd.f32 %v8725_v48, %v7699_v34 }
 0xb5f   :  { %v8745_v60 = vpop.f32.mrb[80].mxu1 }
 0xb60   :  { %v8746_v33 = vpop.f32.mrb[81].mxu1 }
 0xb61   :  { %v8747_v57 = vadd.f32 %v8746_v33, %v8745_v60  ;;  %v8748_v12 = vpop.f32.mrb[82].mxu1 }
 0xb62   :  { %v8749_v21 = vpop.f32.mrb[83].mxu1 }
 0xb63   :  { %v7779_v46 = vadd.f32 %v8747_v57, %v7739_v51 }
 0xb65   :  { %7784 = vst [vmem:[#allocation13] sm:$0xff] %v7779_v46 }
 0xb66   :  { %9541 = shalt.err (!%p9538_p2)
}
 0xb67   :  { %s9542_s30 = scalar_lea.hbm %s11323_s8, 128 }
 0xb68   :  { %p9543_p3 = scmp.ne.s32.totalorder %s11323_s8, %s9542_s30  ;;  %p9546_p4 = scmp.lt.u32.totalorder %s9542_s30, %s11323_s8 }
 0xb6a   :  { %p9548_p5 = pnand %p9546_p4, %p9543_p3 }
 0xb6c   :  { %9551 = shalt.err (!%p9548_p5)
}
 0xb6d   :  { %7794 = dma.vmem_to_hbm [thread:$0]  %s7792_s25, 128, %s11323_s8, [#allocation6]  }
 0xb6e   :  { %9558 = dma.done.wait [#allocation6], 128  }
 0xb6f   :  { %9559 = vsyncadd [#allocation6], 4294967168 }
 0xb70   :  { %7798 = vsyncpa [#allocation5], 1 }
 0xb71   :  { %7799 = vsyncpa [#allocation8], 1 }
 0xb72   :  { %7800 = vsyncpa [#allocation11], 1 }
 0xb73   :  { %7801 = vsyncpa [#allocation6], 1 }

</bundles_post_ra>
